<compile_context>
chip_gen: v7x
topology: tpu7x:2x2x1
jax: 0.10.0
libtpu: 0.0.40
codegen_flags: <defaults>
</compile_context>

<pallas_src>
import functools

import jax
import jax.numpy as jnp
from jax.experimental import pallas as pl
from jax.experimental.pallas import tpu as pltpu

_EPS = 1e-5
_NEG_SLOPE = 0.2


def _norm_conv_act(x, halo_ref, w_ref, b_ref, *, H, W, halo_pad):
    """One stage (InstanceNorm -> 3x3 conv pad=1 -> LeakyReLU) for a single sample.

    x:        (H*W, C_in)  activations, channels-minor (bf16 or f32).
    halo_ref: (2*halo_pad + H*W, 3*C_in) bf16 VMEM scratch; lane blocks hold the
              pre-masked dx=-1 / dx=0 / dx=+1 copies of the normalized plane.
    w_ref:    (3, 3*C_in, C_out) bf16 conv weights; K index = kx*C_in + c (HWIO order).
    b_ref:    (1, C_out) f32 bias.
    returns:  (H*W, C_out) f32 activations.
    """
    HW = H * W
    c_in = x.shape[1]
    c_out = w_ref.shape[2]

    # ---- InstanceNorm2d (affine=False): single-pass f32 stats, variance clamped. ----
    xf = x.astype(jnp.float32)
    s = jnp.sum(xf, axis=0, keepdims=True)                    # (1, C_in)
    ss = jnp.sum(xf * xf, axis=0, keepdims=True)
    mean = s * (1.0 / HW)
    var = jnp.maximum(ss * (1.0 / HW) - mean * mean, 0.0)
    xn = (xf - mean) * jax.lax.rsqrt(var + _EPS)              # (HW, C_in) f32

    # ---- Column-wrap masks, hoisted: applied once while building the dx copies. ----
    col = jax.lax.broadcasted_iota(jnp.int32, (HW, 1), 0) % W
    left_ok = col > 0            # output column > 0     -> dx = -1 tap is in-bounds
    right_ok = col < (W - 1)     # output column < W - 1 -> dx = +1 tap is in-bounds

    # dx-shifted + pre-masked copies (f32 sublane shifts), then a single bf16 cast.
    zero_row = jnp.zeros((1, c_in), jnp.float32)
    xm1 = jnp.where(left_ok, jnp.concatenate([zero_row, xn[:-1, :]], axis=0), 0.0)
    xp1 = jnp.where(right_ok, jnp.concatenate([xn[1:, :], zero_row], axis=0), 0.0)
    combined = jnp.concatenate([xm1, xn, xp1], axis=1).astype(jnp.bfloat16)

    # ---- Flat row-halo buffer (bf16): zero only halo rows, aligned interior store. ----
    halo_ref[0:halo_pad, :] = jnp.zeros((halo_pad, 3 * c_in), jnp.bfloat16)
    halo_ref[halo_pad + HW:2 * halo_pad + HW, :] = jnp.zeros((halo_pad, 3 * c_in),
                                                             jnp.bfloat16)
    halo_ref[halo_pad:halo_pad + HW, :] = combined

    # ---- 3x3 conv: 3 fat bf16 matmuls (K = 3*C_in), f32 accumulation. ----
    acc = jnp.zeros((HW, c_out), jnp.float32)
    for dy in range(3):
        off = halo_pad + (dy - 1) * W            # static offset (aligned when W%16==0)
        acc = acc + jnp.dot(halo_ref[off:off + HW, :], w_ref[dy],
                            preferred_element_type=jnp.float32)

    acc = acc + b_ref[...]                        # (1, C_out) broadcast
    return jnp.where(acc > 0, acc, _NEG_SLOPE * acc)          # LeakyReLU(0.2)


def _block_kernel(x_ref, w1_ref, b1_ref, w2_ref, b2_ref, o_ref,
                  halo1_ref, halo2_ref, *, H, W, halo_pad):
    """Fused UnetBasicBlock for one batch element.

    x_ref: (1, C_in_p, H*W) bf16, lane-dense (H*W on lanes)
    o_ref: (1, C_out, H*W)  f32, lane-dense store
    """
    # channels-major (C, HW) -> channels-minor (HW, C).  Transpose in f32: the f32 plane
    # is needed for the norm stats anyway and 32-bit XLU transposes are the most portable.
    x = jnp.transpose(x_ref[0].astype(jnp.float32))
    h = _norm_conv_act(x, halo1_ref, w1_ref, b1_ref, H=H, W=W, halo_pad=halo_pad)
    y = _norm_conv_act(h, halo2_ref, w2_ref, b2_ref, H=H, W=W, halo_pad=halo_pad)
    # back to channels-major for a lane-dense output store.
    o_ref[0] = jnp.transpose(y).astype(o_ref.dtype)


def unet_basic_block(x_nchw, params):
    """Forward pass of UnetBasicBlock.  Input/output layout: NCHW (PyTorch).

    params (HWIO weights; a PyTorch Conv2d weight (Cout,Cin,3,3) maps via transpose(2,3,1,0)):
      w1: (3, 3, Cin, Cmid)   b1: (Cmid,)
      w2: (3, 3, Cmid, Cout)  b2: (Cout,)
    """
    N, Cin, H, W = x_nchw.shape
    w1, b1, w2, b2 = params["w1"], params["b1"], params["w2"], params["b2"]
    Cmid = w1.shape[-1]
    Cout = w2.shape[-1]
    HW = H * W

    cin_p = ((Cin + 7) // 8) * 8            # pad input channels to a sublane multiple
    halo_pad = ((W + 15) // 16) * 16        # >= W and 16-row aligned (bf16 packing)
    rows = 2 * halo_pad + HW

    # NCHW -> (N, C, H*W) is a free reshape (no XLA transpose); ship activations as bf16.
    x = x_nchw.reshape(N, Cin, HW).astype(jnp.bfloat16)
    if cin_p != Cin:
        x = jnp.pad(x, ((0, 0), (0, cin_p - Cin), (0, 0)))

    w1_k = w1
    if cin_p != Cin:
        w1_k = jnp.pad(w1_k, ((0, 0), (0, 0), (0, cin_p - Cin), (0, 0)))
    w1_k = w1_k.reshape(3, 3 * cin_p, Cmid).astype(jnp.bfloat16)   # K = kx*Cin_p + c
    w2_k = w2.reshape(3, 3 * Cmid, Cout).astype(jnp.bfloat16)
    b1_k = b1.reshape(1, Cmid).astype(jnp.float32)
    b2_k = b2.reshape(1, Cout).astype(jnp.float32)

    kernel = functools.partial(_block_kernel, H=H, W=W, halo_pad=halo_pad)

    # Explicit scoped-VMEM budget: double-buffered I/O blocks + weights + bf16 halo
    # scratch + headroom for full-plane temporaries.  Clamp to [16 MiB, 56 MiB].
    est = (2 * (cin_p * HW * 2 + Cout * HW * 4)
           + 2 * (3 * 3 * cin_p * Cmid * 2 + 3 * 3 * Cmid * Cout * 2 + (Cmid + Cout) * 4)
           + rows * 3 * (cin_p + Cmid) * 2
           + 8 * HW * max(cin_p, Cmid, Cout) * 4)
    vmem_limit = int(min(56 * 2 ** 20, max(2 * est, 16 * 2 ** 20)))

    out = pl.pallas_call(
        kernel,
        out_shape=jax.ShapeDtypeStruct((N, Cout, HW), jnp.float32),
        grid_spec=pltpu.PrefetchScalarGridSpec(
            num_scalar_prefetch=0,
            grid=(N,),
            in_specs=[
                pl.BlockSpec((1, cin_p, HW), lambda n: (n, 0, 0)),
                pl.BlockSpec((3, 3 * cin_p, Cmid), lambda n: (0, 0, 0)),
                pl.BlockSpec((1, Cmid), lambda n: (0, 0)),
                pl.BlockSpec((3, 3 * Cmid, Cout), lambda n: (0, 0, 0)),
                pl.BlockSpec((1, Cout), lambda n: (0, 0)),
            ],
            out_specs=pl.BlockSpec((1, Cout, HW), lambda n: (n, 0, 0)),
            scratch_shapes=[
                pltpu.VMEM((rows, 3 * cin_p), jnp.bfloat16),   # stage-1 halo buffer
                pltpu.VMEM((rows, 3 * Cmid), jnp.bfloat16),    # stage-2 halo buffer
            ],
        ),
        compiler_params=pltpu.CompilerParams(
            dimension_semantics=("parallel",),
            vmem_limit_bytes=vmem_limit),
    )(x, w1_k, b1_k, w2_k, b2_k)

    return out.reshape(N, Cout, H, W)


# ---------------- pure-JAX reference for verification ----------------
def _ref_stage(x_nhwc, w, b):
    xf = x_nhwc.astype(jnp.float32)
    mean = jnp.mean(xf, axis=(1, 2), keepdims=True)
    var = jnp.var(xf, axis=(1, 2), keepdims=True)
    xn = (xf - mean) * jax.lax.rsqrt(var + _EPS)
    # matmul inputs in bf16 / f32 accumulation, matching the kernel's precision choice.
    y = jax.lax.conv_general_dilated(
        xn.astype(jnp.bfloat16), w.astype(jnp.bfloat16),
        window_strides=(1, 1), padding="SAME",
        dimension_numbers=("NHWC", "HWIO", "NHWC"),
        preferred_element_type=jnp.float32)
    y = y + b.reshape(1, 1, 1, -1)
    return jnp.where(y > 0, y, _NEG_SLOPE * y)


def _ref_block(x_nchw, params):
    # Match the kernel's bf16 HBM activation cast.
    x = jnp.transpose(x_nchw, (0, 2, 3, 1)).astype(jnp.bfloat16)
    x = _ref_stage(x, params["w1"], params["b1"])
    x = _ref_stage(x, params["w2"], params["b2"])
    return jnp.transpose(x, (0, 3, 1, 2))


if __name__ == "__main__":
    # Small shapes: batch=2, in_features=4, mid_features=out_features=8, spatial=16.
    N, Cin, Cmid, Cout, H, W = 2, 4, 8, 8, 16, 16

    key = jax.random.PRNGKey(0)
    k_x, k_w1, k_b1, k_w2, k_b2 = jax.random.split(key, 5)

    x = jax.random.normal(k_x, (N, Cin, H, W), dtype=jnp.float32)

    # Deterministic parameter init (kaiming-ish scale), HWIO layout.
    params = {
        "w1": jax.random.normal(k_w1, (3, 3, Cin, Cmid), jnp.float32)
              * (2.0 / (9 * Cin)) ** 0.5,
        "b1": jax.random.uniform(k_b1, (Cmid,), jnp.float32, -0.1, 0.1),
        "w2": jax.random.normal(k_w2, (3, 3, Cmid, Cout), jnp.float32)
              * (2.0 / (9 * Cmid)) ** 0.5,
        "b2": jax.random.uniform(k_b2, (Cout,), jnp.float32, -0.1, 0.1),
    }

    out = jax.block_until_ready(unet_basic_block(x, params))
    ref = jax.block_until_ready(_ref_block(x, params))

    assert out.shape == (N, Cout, H, W), out.shape
    max_err = float(jnp.max(jnp.abs(out - ref)))
    assert jnp.allclose(out, ref, atol=1e-2, rtol=1e-2), max_err

    print("KERNEL_OK")
</pallas_src>

<mosaic_0001>
module attributes {stable_mosaic.version = 11 : i64} {
  func.func @_block_kernel(%arg0: i32, %arg1: memref<1x8x256xbf16, #tpu.memory_space<vmem>>, %arg2: memref<3x24x8xbf16, #tpu.memory_space<vmem>>, %arg3: memref<1x8xf32, #tpu.memory_space<vmem>>, %arg4: memref<3x24x8xbf16, #tpu.memory_space<vmem>>, %arg5: memref<1x8xf32, #tpu.memory_space<vmem>>, %arg6: memref<1x8x256xf32, #tpu.memory_space<vmem>>, %arg7: memref<288x24xbf16, #tpu.memory_space<vmem>>, %arg8: memref<288x24xbf16, #tpu.memory_space<vmem>>) attributes {dimension_semantics = [#tpu.dimension_semantics<parallel>], iteration_bounds = array<i64: 2>, scalar_prefetch = 0 : i64, scratch_operands = 2 : i64, tpu.core_type = #tpu.core_type<tc>, window_params = [{transform_indices = @transform_0, window_bounds = array<i64: 1, 8, 256>}, {pipeline_mode = #tpu.pipeline_mode<synchronous>, transform_indices = @transform_1, window_bounds = array<i64: 3, 24, 8>}, {pipeline_mode = #tpu.pipeline_mode<synchronous>, transform_indices = @transform_2, window_bounds = array<i64: 1, 8>}, {pipeline_mode = #tpu.pipeline_mode<synchronous>, transform_indices = @transform_3, window_bounds = array<i64: 3, 24, 8>}, {pipeline_mode = #tpu.pipeline_mode<synchronous>, transform_indices = @transform_4, window_bounds = array<i64: 1, 8>}, {transform_indices = @transform_5, window_bounds = array<i64: 1, 8, 256>}]} {
    %c0 = arith.constant 0 : index
    %c0_0 = arith.constant 0 : index
    %c0_1 = arith.constant 0 : index
    %0 = vector.load %arg1[%c0, %c0_0, %c0_1] : memref<1x8x256xbf16, #tpu.memory_space<vmem>>, vector<1x8x256xbf16>
    %1 = vector.shape_cast %0 : vector<1x8x256xbf16> to vector<8x256xbf16>
    %2 = arith.extf %1 : vector<8x256xbf16> to vector<8x256xf32>
    %3 = tpu.transpose %2, [1, 0] : vector<8x256xf32> -> vector<256x8xf32>
    %cst = arith.constant dense<0.000000e+00> : vector<8xf32>
    %4 = vector.multi_reduction <add>, %3, %cst [0] : vector<256x8xf32> to vector<8xf32>
    %5 = vector.shape_cast %4 : vector<8xf32> to vector<1x8xf32>
    %6 = arith.mulf %3, %3 : vector<256x8xf32>
    %cst_2 = arith.constant dense<0.000000e+00> : vector<8xf32>
    %7 = vector.multi_reduction <add>, %6, %cst_2 [0] : vector<256x8xf32> to vector<8xf32>
    %8 = vector.shape_cast %7 : vector<8xf32> to vector<1x8xf32>
    %cst_3 = arith.constant 3.906250e-03 : f32
    %9 = vector.broadcast %cst_3 : f32 to vector<1x8xf32>
    %10 = arith.mulf %5, %9 : vector<1x8xf32>
    %cst_4 = arith.constant 3.906250e-03 : f32
    %11 = vector.broadcast %cst_4 : f32 to vector<1x8xf32>
    %12 = arith.mulf %8, %11 : vector<1x8xf32>
    %13 = arith.mulf %10, %10 : vector<1x8xf32>
    %14 = arith.subf %12, %13 : vector<1x8xf32>
    %cst_5 = arith.constant 0.000000e+00 : f32
    %15 = vector.broadcast %cst_5 : f32 to vector<1x8xf32>
    %16 = arith.maximumf %14, %15 : vector<1x8xf32>
    %17 = vector.broadcast %10 : vector<1x8xf32> to vector<256x8xf32>
    %18 = arith.subf %3, %17 : vector<256x8xf32>
    %cst_6 = arith.constant 9.99999974E-6 : f32
    %19 = vector.broadcast %cst_6 : f32 to vector<1x8xf32>
    %20 = arith.addf %16, %19 : vector<1x8xf32>
    %21 = math.rsqrt %20 : vector<1x8xf32>
    %22 = vector.broadcast %21 : vector<1x8xf32> to vector<256x8xf32>
    %23 = arith.mulf %18, %22 : vector<256x8xf32>
    %24 = tpu.iota {dimensions = array<i32: 0>} : vector<256x1xi32>
    %c16_i32 = arith.constant 16 : i32
    %c0_i32 = arith.constant 0 : i32
    %25 = arith.cmpi eq, %c16_i32, %c0_i32 : i32
    %c1_i32 = arith.constant 1 : i32
    %26 = arith.select %25, %c1_i32, %c16_i32 : i32
    %27 = vector.broadcast %26 : i32 to vector<256x1xi32>
    %28 = arith.remsi %24, %27 : vector<256x1xi32>
    %c0_i32_7 = arith.constant 0 : i32
    %29 = vector.broadcast %c0_i32_7 : i32 to vector<256x1xi32>
    %30 = arith.cmpi ne, %28, %29 : vector<256x1xi32>
    %c0_i32_8 = arith.constant 0 : i32
    %31 = vector.broadcast %c0_i32_8 : i32 to vector<256x1xi32>
    %32 = arith.cmpi slt, %28, %31 : vector<256x1xi32>
    %c0_i32_9 = arith.constant 0 : i32
    %33 = arith.cmpi slt, %26, %c0_i32_9 : i32
    %34 = vector.broadcast %33 : i1 to vector<256x1xi1>
    %35 = vector.broadcast %34 : vector<256x1xi1> to vector<256x1xi1>
    %36 = arith.xori %32, %35 : vector<256x1xi1>
    %37 = arith.andi %36, %30 : vector<256x1xi1>
    %38 = vector.broadcast %26 : i32 to vector<256x1xi32>
    %39 = arith.addi %28, %38 : vector<256x1xi32>
    %40 = arith.select %37, %39, %28 : vector<256x1xi1>, vector<256x1xi32>
    %c0_i32_10 = arith.constant 0 : i32
    %41 = vector.broadcast %c0_i32_10 : i32 to vector<256x1xi32>
    %42 = arith.cmpi sgt, %40, %41 : vector<256x1xi32>
    %c15_i32 = arith.constant 15 : i32
    %43 = vector.broadcast %c15_i32 : i32 to vector<256x1xi32>
    %44 = arith.cmpi slt, %40, %43 : vector<256x1xi32>
    %cst_11 = arith.constant 0.000000e+00 : f32
    %45 = vector.broadcast %cst_11 : f32 to vector<1x8xf32>
    %46 = vector.extract_strided_slice %23 {offsets = [0, 0], sizes = [255, 8], strides = [1, 1]} : vector<256x8xf32> to vector<255x8xf32>
    %47 = tpu.concatenate %45, %46 in 0 : vector<1x8xf32>, vector<255x8xf32> -> vector<256x8xf32>
    %cst_12 = arith.constant 0.000000e+00 : f32
    %48 = vector.shape_cast %42 : vector<256x1xi1> to vector<256x1xi1>
    %49 = vector.broadcast %48 : vector<256x1xi1> to vector<256x8xi1>
    %50 = vector.broadcast %cst_12 : f32 to vector<256x8xf32>
    %51 = arith.select %49, %47, %50 : vector<256x8xi1>, vector<256x8xf32>
    %52 = vector.extract_strided_slice %23 {offsets = [1, 0], sizes = [255, 8], strides = [1, 1]} : vector<256x8xf32> to vector<255x8xf32>
    %53 = tpu.concatenate %52, %45 in 0 : vector<255x8xf32>, vector<1x8xf32> -> vector<256x8xf32>
    %cst_13 = arith.constant 0.000000e+00 : f32
    %54 = vector.shape_cast %44 : vector<256x1xi1> to vector<256x1xi1>
    %55 = vector.broadcast %54 : vector<256x1xi1> to vector<256x8xi1>
    %56 = vector.broadcast %cst_13 : f32 to vector<256x8xf32>
    %57 = arith.select %55, %53, %56 : vector<256x8xi1>, vector<256x8xf32>
    %58 = tpu.concatenate %51, %23, %57 in 1 : vector<256x8xf32>, vector<256x8xf32>, vector<256x8xf32> -> vector<256x24xf32>
    %59 = arith.truncf %58 : vector<256x24xf32> to vector<256x24xbf16>
    %cst_14 = arith.constant 0.000000e+00 : bf16
    %60 = vector.broadcast %cst_14 : bf16 to vector<16x24xbf16>
    %c0_15 = arith.constant 0 : index
    %c0_16 = arith.constant 0 : index
    %61 = vector.load %arg7[%c0_15, %c0_16] : memref<288x24xbf16, #tpu.memory_space<vmem>>, vector<16x24xbf16>
    tpu.vector_store %arg7[%c0_15, %c0_16], %60 {strides = array<i32>} : memref<288x24xbf16, #tpu.memory_space<vmem>>, vector<16x24xbf16>,
    %cst_17 = arith.constant 0.000000e+00 : bf16
    %62 = vector.broadcast %cst_17 : bf16 to vector<16x24xbf16>
    %c272 = arith.constant 272 : index
    %c0_18 = arith.constant 0 : index
    %63 = vector.load %arg7[%c272, %c0_18] : memref<288x24xbf16, #tpu.memory_space<vmem>>, vector<16x24xbf16>
    tpu.vector_store %arg7[%c272, %c0_18], %62 {strides = array<i32>} : memref<288x24xbf16, #tpu.memory_space<vmem>>, vector<16x24xbf16>,
    %c16 = arith.constant 16 : index
    %c0_19 = arith.constant 0 : index
    %64 = vector.load %arg7[%c16, %c0_19] : memref<288x24xbf16, #tpu.memory_space<vmem>>, vector<256x24xbf16>
    tpu.vector_store %arg7[%c16, %c0_19], %59 {strides = array<i32>} : memref<288x24xbf16, #tpu.memory_space<vmem>>, vector<256x24xbf16>,
    %cst_20 = arith.constant 0.000000e+00 : f32
    %65 = vector.broadcast %cst_20 : f32 to vector<256x8xf32>
    %c0_21 = arith.constant 0 : index
    %c0_22 = arith.constant 0 : index
    %66 = vector.load %arg7[%c0_21, %c0_22] : memref<288x24xbf16, #tpu.memory_space<vmem>>, vector<256x24xbf16>
    %c0_23 = arith.constant 0 : index
    %c0_24 = arith.constant 0 : index
    %c0_25 = arith.constant 0 : index
    %67 = vector.load %arg2[%c0_23, %c0_24, %c0_25] : memref<3x24x8xbf16, #tpu.memory_space<vmem>>, vector<1x24x8xbf16>
    %68 = vector.shape_cast %67 : vector<1x24x8xbf16> to vector<24x8xbf16>
    %cst_26 = arith.constant dense<0.000000e+00> : vector<256x8xf32>
    %69 = tpu.matmul %66, %68, %cst_26 {dimension_numbers = #tpu.dot_dimension_numbers<[1], [0], [0], [1], [0, 0, 1, 1], [], []>} : vector<256x24xbf16>, vector<24x8xbf16>, vector<256x8xf32> -> vector<256x8xf32>
    %70 = arith.addf %65, %69 : vector<256x8xf32>
    %c16_27 = arith.constant 16 : index
    %c0_28 = arith.constant 0 : index
    %71 = vector.load %arg7[%c16_27, %c0_28] : memref<288x24xbf16, #tpu.memory_space<vmem>>, vector<256x24xbf16>
    %c1 = arith.constant 1 : index
    %c0_29 = arith.constant 0 : index
    %c0_30 = arith.constant 0 : index
    %72 = vector.load %arg2[%c1, %c0_29, %c0_30] : memref<3x24x8xbf16, #tpu.memory_space<vmem>>, vector<1x24x8xbf16>
    %73 = vector.shape_cast %72 : vector<1x24x8xbf16> to vector<24x8xbf16>
    %cst_31 = arith.constant dense<0.000000e+00> : vector<256x8xf32>
    %74 = tpu.matmul %71, %73, %cst_31 {dimension_numbers = #tpu.dot_dimension_numbers<[1], [0], [0], [1], [0, 0, 1, 1], [], []>} : vector<256x24xbf16>, vector<24x8xbf16>, vector<256x8xf32> -> vector<256x8xf32>
    %75 = arith.addf %70, %74 : vector<256x8xf32>
    %c32 = arith.constant 32 : index
    %c0_32 = arith.constant 0 : index
    %76 = vector.load %arg7[%c32, %c0_32] : memref<288x24xbf16, #tpu.memory_space<vmem>>, vector<256x24xbf16>
    %c2 = arith.constant 2 : index
    %c0_33 = arith.constant 0 : index
    %c0_34 = arith.constant 0 : index
    %77 = vector.load %arg2[%c2, %c0_33, %c0_34] : memref<3x24x8xbf16, #tpu.memory_space<vmem>>, vector<1x24x8xbf16>
    %78 = vector.shape_cast %77 : vector<1x24x8xbf16> to vector<24x8xbf16>
    %cst_35 = arith.constant dense<0.000000e+00> : vector<256x8xf32>
    %79 = tpu.matmul %76, %78, %cst_35 {dimension_numbers = #tpu.dot_dimension_numbers<[1], [0], [0], [1], [0, 0, 1, 1], [], []>} : vector<256x24xbf16>, vector<24x8xbf16>, vector<256x8xf32> -> vector<256x8xf32>
    %80 = arith.addf %75, %79 : vector<256x8xf32>
    %c0_36 = arith.constant 0 : index
    %c0_37 = arith.constant 0 : index
    %81 = vector.load %arg3[%c0_36, %c0_37] : memref<1x8xf32, #tpu.memory_space<vmem>>, vector<1x8xf32>
    %82 = vector.broadcast %81 : vector<1x8xf32> to vector<256x8xf32>
    %83 = arith.addf %80, %82 : vector<256x8xf32>
    %cst_38 = arith.constant 0.000000e+00 : f32
    %84 = vector.broadcast %cst_38 : f32 to vector<256x8xf32>
    %85 = arith.cmpf ogt, %83, %84 : vector<256x8xf32>
    %cst_39 = arith.constant 2.000000e-01 : f32
    %86 = vector.broadcast %cst_39 : f32 to vector<256x8xf32>
    %87 = arith.mulf %86, %83 : vector<256x8xf32>
    %88 = arith.select %85, %83, %87 : vector<256x8xi1>, vector<256x8xf32>
    %cst_40 = arith.constant dense<0.000000e+00> : vector<8xf32>
    %89 = vector.multi_reduction <add>, %88, %cst_40 [0] : vector<256x8xf32> to vector<8xf32>
    %90 = vector.shape_cast %89 : vector<8xf32> to vector<1x8xf32>
    %91 = arith.mulf %88, %88 : vector<256x8xf32>
    %cst_41 = arith.constant dense<0.000000e+00> : vector<8xf32>
    %92 = vector.multi_reduction <add>, %91, %cst_41 [0] : vector<256x8xf32> to vector<8xf32>
    %93 = vector.shape_cast %92 : vector<8xf32> to vector<1x8xf32>
    %cst_42 = arith.constant 3.906250e-03 : f32
    %94 = vector.broadcast %cst_42 : f32 to vector<1x8xf32>
    %95 = arith.mulf %90, %94 : vector<1x8xf32>
    %cst_43 = arith.constant 3.906250e-03 : f32
    %96 = vector.broadcast %cst_43 : f32 to vector<1x8xf32>
    %97 = arith.mulf %93, %96 : vector<1x8xf32>
    %98 = arith.mulf %95, %95 : vector<1x8xf32>
    %99 = arith.subf %97, %98 : vector<1x8xf32>
    %cst_44 = arith.constant 0.000000e+00 : f32
    %100 = vector.broadcast %cst_44 : f32 to vector<1x8xf32>
    %101 = arith.maximumf %99, %100 : vector<1x8xf32>
    %102 = vector.broadcast %95 : vector<1x8xf32> to vector<256x8xf32>
    %103 = arith.subf %88, %102 : vector<256x8xf32>
    %cst_45 = arith.constant 9.99999974E-6 : f32
    %104 = vector.broadcast %cst_45 : f32 to vector<1x8xf32>
    %105 = arith.addf %101, %104 : vector<1x8xf32>
    %106 = math.rsqrt %105 : vector<1x8xf32>
    %107 = vector.broadcast %106 : vector<1x8xf32> to vector<256x8xf32>
    %108 = arith.mulf %103, %107 : vector<256x8xf32>
    %109 = tpu.iota {dimensions = array<i32: 0>} : vector<256x1xi32>
    %c16_i32_46 = arith.constant 16 : i32
    %c0_i32_47 = arith.constant 0 : i32
    %110 = arith.cmpi eq, %c16_i32_46, %c0_i32_47 : i32
    %c1_i32_48 = arith.constant 1 : i32
    %111 = arith.select %110, %c1_i32_48, %c16_i32_46 : i32
    %112 = vector.broadcast %111 : i32 to vector<256x1xi32>
    %113 = arith.remsi %109, %112 : vector<256x1xi32>
    %c0_i32_49 = arith.constant 0 : i32
    %114 = vector.broadcast %c0_i32_49 : i32 to vector<256x1xi32>
    %115 = arith.cmpi ne, %113, %114 : vector<256x1xi32>
    %c0_i32_50 = arith.constant 0 : i32
    %116 = vector.broadcast %c0_i32_50 : i32 to vector<256x1xi32>
    %117 = arith.cmpi slt, %113, %116 : vector<256x1xi32>
    %c0_i32_51 = arith.constant 0 : i32
    %118 = arith.cmpi slt, %111, %c0_i32_51 : i32
    %119 = vector.broadcast %118 : i1 to vector<256x1xi1>
    %120 = vector.broadcast %119 : vector<256x1xi1> to vector<256x1xi1>
    %121 = arith.xori %117, %120 : vector<256x1xi1>
    %122 = arith.andi %121, %115 : vector<256x1xi1>
    %123 = vector.broadcast %111 : i32 to vector<256x1xi32>
    %124 = arith.addi %113, %123 : vector<256x1xi32>
    %125 = arith.select %122, %124, %113 : vector<256x1xi1>, vector<256x1xi32>
    %c0_i32_52 = arith.constant 0 : i32
    %126 = vector.broadcast %c0_i32_52 : i32 to vector<256x1xi32>
    %127 = arith.cmpi sgt, %125, %126 : vector<256x1xi32>
    %c15_i32_53 = arith.constant 15 : i32
    %128 = vector.broadcast %c15_i32_53 : i32 to vector<256x1xi32>
    %129 = arith.cmpi slt, %125, %128 : vector<256x1xi32>
    %cst_54 = arith.constant 0.000000e+00 : f32
    %130 = vector.broadcast %cst_54 : f32 to vector<1x8xf32>
    %131 = vector.extract_strided_slice %108 {offsets = [0, 0], sizes = [255, 8], strides = [1, 1]} : vector<256x8xf32> to vector<255x8xf32>
    %132 = tpu.concatenate %130, %131 in 0 : vector<1x8xf32>, vector<255x8xf32> -> vector<256x8xf32>
    %cst_55 = arith.constant 0.000000e+00 : f32
    %133 = vector.shape_cast %127 : vector<256x1xi1> to vector<256x1xi1>
    %134 = vector.broadcast %133 : vector<256x1xi1> to vector<256x8xi1>
    %135 = vector.broadcast %cst_55 : f32 to vector<256x8xf32>
    %136 = arith.select %134, %132, %135 : vector<256x8xi1>, vector<256x8xf32>
    %137 = vector.extract_strided_slice %108 {offsets = [1, 0], sizes = [255, 8], strides = [1, 1]} : vector<256x8xf32> to vector<255x8xf32>
    %138 = tpu.concatenate %137, %130 in 0 : vector<255x8xf32>, vector<1x8xf32> -> vector<256x8xf32>
    %cst_56 = arith.constant 0.000000e+00 : f32
    %139 = vector.shape_cast %129 : vector<256x1xi1> to vector<256x1xi1>
    %140 = vector.broadcast %139 : vector<256x1xi1> to vector<256x8xi1>
    %141 = vector.broadcast %cst_56 : f32 to vector<256x8xf32>
    %142 = arith.select %140, %138, %141 : vector<256x8xi1>, vector<256x8xf32>
    %143 = tpu.concatenate %136, %108, %142 in 1 : vector<256x8xf32>, vector<256x8xf32>, vector<256x8xf32> -> vector<256x24xf32>
    %144 = arith.truncf %143 : vector<256x24xf32> to vector<256x24xbf16>
    %cst_57 = arith.constant 0.000000e+00 : bf16
    %145 = vector.broadcast %cst_57 : bf16 to vector<16x24xbf16>
    %c0_58 = arith.constant 0 : index
    %c0_59 = arith.constant 0 : index
    %146 = vector.load %arg8[%c0_58, %c0_59] : memref<288x24xbf16, #tpu.memory_space<vmem>>, vector<16x24xbf16>
    tpu.vector_store %arg8[%c0_58, %c0_59], %145 {strides = array<i32>} : memref<288x24xbf16, #tpu.memory_space<vmem>>, vector<16x24xbf16>,
    %cst_60 = arith.constant 0.000000e+00 : bf16
    %147 = vector.broadcast %cst_60 : bf16 to vector<16x24xbf16>
    %c272_61 = arith.constant 272 : index
    %c0_62 = arith.constant 0 : index
    %148 = vector.load %arg8[%c272_61, %c0_62] : memref<288x24xbf16, #tpu.memory_space<vmem>>, vector<16x24xbf16>
    tpu.vector_store %arg8[%c272_61, %c0_62], %147 {strides = array<i32>} : memref<288x24xbf16, #tpu.memory_space<vmem>>, vector<16x24xbf16>,
    %c16_63 = arith.constant 16 : index
    %c0_64 = arith.constant 0 : index
    %149 = vector.load %arg8[%c16_63, %c0_64] : memref<288x24xbf16, #tpu.memory_space<vmem>>, vector<256x24xbf16>
    tpu.vector_store %arg8[%c16_63, %c0_64], %144 {strides = array<i32>} : memref<288x24xbf16, #tpu.memory_space<vmem>>, vector<256x24xbf16>,
    %cst_65 = arith.constant 0.000000e+00 : f32
    %150 = vector.broadcast %cst_65 : f32 to vector<256x8xf32>
    %c0_66 = arith.constant 0 : index
    %c0_67 = arith.constant 0 : index
    %151 = vector.load %arg8[%c0_66, %c0_67] : memref<288x24xbf16, #tpu.memory_space<vmem>>, vector<256x24xbf16>
    %c0_68 = arith.constant 0 : index
    %c0_69 = arith.constant 0 : index
    %c0_70 = arith.constant 0 : index
    %152 = vector.load %arg4[%c0_68, %c0_69, %c0_70] : memref<3x24x8xbf16, #tpu.memory_space<vmem>>, vector<1x24x8xbf16>
    %153 = vector.shape_cast %152 : vector<1x24x8xbf16> to vector<24x8xbf16>
    %cst_71 = arith.constant dense<0.000000e+00> : vector<256x8xf32>
    %154 = tpu.matmul %151, %153, %cst_71 {dimension_numbers = #tpu.dot_dimension_numbers<[1], [0], [0], [1], [0, 0, 1, 1], [], []>} : vector<256x24xbf16>, vector<24x8xbf16>, vector<256x8xf32> -> vector<256x8xf32>
    %155 = arith.addf %150, %154 : vector<256x8xf32>
    %c16_72 = arith.constant 16 : index
    %c0_73 = arith.constant 0 : index
    %156 = vector.load %arg8[%c16_72, %c0_73] : memref<288x24xbf16, #tpu.memory_space<vmem>>, vector<256x24xbf16>
    %c1_74 = arith.constant 1 : index
    %c0_75 = arith.constant 0 : index
    %c0_76 = arith.constant 0 : index
    %157 = vector.load %arg4[%c1_74, %c0_75, %c0_76] : memref<3x24x8xbf16, #tpu.memory_space<vmem>>, vector<1x24x8xbf16>
    %158 = vector.shape_cast %157 : vector<1x24x8xbf16> to vector<24x8xbf16>
    %cst_77 = arith.constant dense<0.000000e+00> : vector<256x8xf32>
    %159 = tpu.matmul %156, %158, %cst_77 {dimension_numbers = #tpu.dot_dimension_numbers<[1], [0], [0], [1], [0, 0, 1, 1], [], []>} : vector<256x24xbf16>, vector<24x8xbf16>, vector<256x8xf32> -> vector<256x8xf32>
    %160 = arith.addf %155, %159 : vector<256x8xf32>
    %c32_78 = arith.constant 32 : index
    %c0_79 = arith.constant 0 : index
    %161 = vector.load %arg8[%c32_78, %c0_79] : memref<288x24xbf16, #tpu.memory_space<vmem>>, vector<256x24xbf16>
    %c2_80 = arith.constant 2 : index
    %c0_81 = arith.constant 0 : index
    %c0_82 = arith.constant 0 : index
    %162 = vector.load %arg4[%c2_80, %c0_81, %c0_82] : memref<3x24x8xbf16, #tpu.memory_space<vmem>>, vector<1x24x8xbf16>
    %163 = vector.shape_cast %162 : vector<1x24x8xbf16> to vector<24x8xbf16>
    %cst_83 = arith.constant dense<0.000000e+00> : vector<256x8xf32>
    %164 = tpu.matmul %161, %163, %cst_83 {dimension_numbers = #tpu.dot_dimension_numbers<[1], [0], [0], [1], [0, 0, 1, 1], [], []>} : vector<256x24xbf16>, vector<24x8xbf16>, vector<256x8xf32> -> vector<256x8xf32>
    %165 = arith.addf %160, %164 : vector<256x8xf32>
    %c0_84 = arith.constant 0 : index
    %c0_85 = arith.constant 0 : index
    %166 = vector.load %arg5[%c0_84, %c0_85] : memref<1x8xf32, #tpu.memory_space<vmem>>, vector<1x8xf32>
    %167 = vector.broadcast %166 : vector<1x8xf32> to vector<256x8xf32>
    %168 = arith.addf %165, %167 : vector<256x8xf32>
    %cst_86 = arith.constant 0.000000e+00 : f32
    %169 = vector.broadcast %cst_86 : f32 to vector<256x8xf32>
    %170 = arith.cmpf ogt, %168, %169 : vector<256x8xf32>
    %cst_87 = arith.constant 2.000000e-01 : f32
    %171 = vector.broadcast %cst_87 : f32 to vector<256x8xf32>
    %172 = arith.mulf %171, %168 : vector<256x8xf32>
    %173 = arith.select %170, %168, %172 : vector<256x8xi1>, vector<256x8xf32>
    %174 = tpu.transpose %173, [1, 0] : vector<256x8xf32> -> vector<8x256xf32>
    %c0_88 = arith.constant 0 : index
    %c0_89 = arith.constant 0 : index
    %c0_90 = arith.constant 0 : index
    %175 = vector.load %arg6[%c0_88, %c0_89, %c0_90] : memref<1x8x256xf32, #tpu.memory_space<vmem>>, vector<1x8x256xf32>
    %176 = vector.shape_cast %175 : vector<1x8x256xf32> to vector<8x256xf32>
    %177 = vector.shape_cast %174 : vector<8x256xf32> to vector<1x8x256xf32>
    tpu.vector_store %arg6[%c0_88, %c0_89, %c0_90], %177 {strides = array<i32>} : memref<1x8x256xf32, #tpu.memory_space<vmem>>, vector<1x8x256xf32>,
    return
  }
  func.func @transform_0(%arg0: i32) -> (i32, i32, i32) {
    %c0_i32 = arith.constant 0 : i32
    %c0_i32_0 = arith.constant 0 : i32
    %c0_i32_1 = arith.constant 0 : i32
    return %arg0, %c0_i32, %c0_i32_0 : i32, i32, i32
  }
  func.func @transform_1(%arg0: i32) -> (i32, i32, i32) {
    %c0_i32 = arith.constant 0 : i32
    %c0_i32_0 = arith.constant 0 : i32
    %c0_i32_1 = arith.constant 0 : i32
    %c0_i32_2 = arith.constant 0 : i32
    return %c0_i32, %c0_i32_0, %c0_i32_1 : i32, i32, i32
  }
  func.func @transform_2(%arg0: i32) -> (i32, i32) {
    %c0_i32 = arith.constant 0 : i32
    %c0_i32_0 = arith.constant 0 : i32
    %c0_i32_1 = arith.constant 0 : i32
    return %c0_i32, %c0_i32_0 : i32, i32
  }
  func.func @transform_3(%arg0: i32) -> (i32, i32, i32) {
    %c0_i32 = arith.constant 0 : i32
    %c0_i32_0 = arith.constant 0 : i32
    %c0_i32_1 = arith.constant 0 : i32
    %c0_i32_2 = arith.constant 0 : i32
    return %c0_i32, %c0_i32_0, %c0_i32_1 : i32, i32, i32
  }
  func.func @transform_4(%arg0: i32) -> (i32, i32) {
    %c0_i32 = arith.constant 0 : i32
    %c0_i32_0 = arith.constant 0 : i32
    %c0_i32_1 = arith.constant 0 : i32
    return %c0_i32, %c0_i32_0 : i32, i32
  }
  func.func @transform_5(%arg0: i32) -> (i32, i32, i32) {
    %c0_i32 = arith.constant 0 : i32
    %c0_i32_0 = arith.constant 0 : i32
    %c0_i32_1 = arith.constant 0 : i32
    return %arg0, %c0_i32, %c0_i32_0 : i32, i32, i32
  }
}

</mosaic_0001>

<bundles_post_ra>
// kernel: tpu_custom_call.1
= control target key start
LH: loop header
LB: loop body
LE: loop exit
PB: predicated region body
PF: predicated region fallthrough
CT: control target
= control target key end

     0   :  { %10 = vsyncpa [#allocation5], 0  ;;  %s8113_s0 = inlined_call_operand.vmem [shape: bf16[2,8,256], index: 0, kind: input, shape index: {}]   ;;  %s8114_s1 = inlined_call_operand.vmem [shape: bf16[3,24,8], index: 1, kind: input, shape index: {}]   ;;  %s8115_s2 = inlined_call_operand.vmem [shape: f32[1,8], index: 2, kind: input, shape index: {}]   ;;  %s8116_s3 = inlined_call_operand.vmem [shape: bf16[3,24,8], index: 3, kind: input, shape index: {}]   ;;  %s8117_s4 = inlined_call_operand.vmem [shape: f32[1,8], index: 4, kind: input, shape index: {}]   ;;  %s8118_s5 = inlined_call_operand.hbm [shape: f32[2,8,256], index: 5, kind: output, shape index: {}]  }
   0x1   :  { %12 = vsyncpa [#allocation5 + $0x1], 0  ;;  %s5559_s18 = smov 0   ;;  %s5561_s19 = smov 0  }
   0x2   :  { %s5563_s20 = smov 0   ;;  %s5565_s21 = smov 0  }
   0x3 LB: > { %s5580_s22 = sadd.s32 4294967295, %s5523_s21   ;;  %s4406_s23 = sadd.s32 4294967294, %s5523_s21   ;;  %s5523_s21 = sphi %s5565_s21, %s8709_s21   ;;  %s5519_s20 = sphi %s5563_s20, %s8708_s20   ;;  %s5515_s19 = sphi %s5561_s19, %s8707_s19   ;;  %s5511_s18 = sphi %s5559_s18, %s8706_s18  }
   0x4   : > { %s5584_s24 = sadd.s32 1, %s5523_s21   ;;  %s135_s25 = sadd.s32 1, %s5519_s20 }
   0x5   : > { %s132_s26 = ssub.s32 %s5523_s21, %s5584_s24  ;;  %p145_p0 = scmp.ne.s32.totalorder %s5519_s20, %s5515_s19 }
   0x6   : > { %p133_p1 = scmp.eq.s32.totalorder %s132_s26, 0  ;;  %p146_p2 = scmp.eq.s32.totalorder %s5580_s22, 1 }
   0x7   : > { %p151_p3 = scmp.ne.s32.totalorder %s5515_s19, %s5511_s18  ;;  %p152_p4 = scmp.eq.s32.totalorder %s4406_s23, 1 }
   0x8   : > { %s5595_s27 = scalar_select %p133_p1, %s5519_s20, %s135_s25  }
   0x9   : > { %p5597_p5 = por %p146_p2, %p145_p0  ;;  %p5601_p6 = por %p152_p4, %p151_p3 }
   0xa   : > { %p4409_p7 = scmp.ge.s32.totalorder %s5523_s21, 1  ;;  %p190_p8 = scmp.lt.s32.totalorder %s5523_s21, 3 }
   0xc   : > { %p191_p9 = pnand %p4409_p7, %p190_p8 }
   0xe   : > { %194 = sbr.rel (%p191_p9) target bundleno = 1598 (0x63e), region = 40 }
  0x15   : > { %p218_p10 = scmp.lt.s32.totalorder %s5580_s22, 1  ;;  %vm8132_vm0 = vcmask 64512   ;;  %vm8134_vm1 = vcmask 1046528   ;;  %s5525_s10 = smov 8   ;;  %vm8131_vm6 = vcmask 1040384   ;;  %vm8130_vm12 = vcmask 1043456  }
  0x16   : > { %s5526_s11 = smov 16   ;;  %s215_s8 = sand.u32 1, %s5515_s19  }
  0x17   : > { %s219_s30 = scalar_select %p218_p10, %s5580_s22, 1 }
  0x18   : > { %s4541_s14 = sshll.u32 %s5580_s22, 8  ;;  %s5528_s23 = smov [#allocation4]  }
  0x19   : > { %s4540_s6 = sshll.u32 %s219_s30, 3  ;;  %s8073_s17 = scalar_lea.hbm %s8118_s5, %s4541_s14 }
  0x1a   : > { %s222_s9 = scalar_lea.vmem %s8113_s0, %s4540_s6  ;;  %s5465_s22 = sshll.u32 %s5528_s23, 4  ;;  %s5466_s22 = int_to_ptr.vmem [resolvable:$false] %s5465_s22 }
  0x1b   : > { %v224_v0 = vld [vmem:[%s222_s9] sm:$0xff]  ;;  %s4410_s9 = sshll.u32 %s215_s8, 4  ;;  %s5467_s25 = scalar_lea.vmem %s5466_s22, 512 }
  0x1c   : > { %v225_v1 = vunpack.c.l.bf16 %v224_v0  ;;  %v226_v2 = vunpack.c.h.bf16 %v224_v0  ;;  %s217_s12 = scalar_lea.vmem [#allocation4], %s4410_s9 }
  0x1d   : > { %s4347_s13 = sshll.u32 %s217_s12, 4  ;;  %s8068_s13 = int_to_ptr.vmem [resolvable:$true] %s4347_s13 }
  0x1e   : > { %v5043_v3 = vpack.i.bf16 %v226_v2, %v225_v1  ;;  %p5468_p0 = scmp.lt.s32.totalorder %s8068_s13, %s5466_s22 }
  0x20   : > { %5044 = vxpose.xlu0.b32.start.end [1/1] (short) %v5043_v3, 128 }
  0xa0   : > { %v5612_v4 = vpop.trf.xlu0 }
  0xa1   : > { %v5632_v13 = vunpack.i.l.bf16 %v5612_v4 }
  0xa3   : > { %v361_v18 = vmul.f32 %v5632_v13, %v5632_v13  ;;  %v292_v22 = vsel %vm8132_vm0, %v5632_v13, 0.0 }
  0xa4   : > { %v5614_v5 = vpop.trf.xlu0 }
  0xa5   : > { %v5627_v11 = vunpack.i.l.bf16 %v5614_v5  ;;  %v393_v28 = vsel %vm8132_vm0, %v361_v18, 0.0 }
  0xa7   : > { %v362_v15 = vmul.f32 %v5627_v11, %v5627_v11  ;;  %v293_v20 = vsel %vm8132_vm0, %v5627_v11, 0.0 }
  0xa8   : > { %v5616_v6 = vpop.trf.xlu0  ;;  %v294_v29 = vadd.f32 %v293_v20, %v292_v22 }
  0xa9   : > { %v5635_v14 = vunpack.i.l.bf16 %v5616_v6  ;;  %v394_v23 = vsel %vm8132_vm0, %v362_v15, 0.0 }
  0xaa   : > { %v395_v34 = vadd.f32 %v394_v23, %v393_v28 }
  0xab   : > { %v363_v21 = vmul.f32 %v5635_v14, %v5635_v14  ;;  %v295_v24 = vsel %vm8132_vm0, %v5635_v14, 0.0 }
  0xac   : > { %v5618_v7 = vpop.trf.xlu0  ;;  %v296_v35 = vadd.f32 %v295_v24, %v294_v29 }
  0xad   : > { %v5640_v16 = vunpack.i.l.bf16 %v5618_v7  ;;  %v396_v31 = vsel %vm8132_vm0, %v363_v21, 0.0 }
  0xae   : > { %v397_v41 = vadd.f32 %v396_v31, %v395_v34 }
  0xaf   : > { %v364_v25 = vmul.f32 %v5640_v16, %v5640_v16  ;;  %v297_v32 = vsel %vm8132_vm0, %v5640_v16, 0.0 }
  0xb0   : > { %v5620_v8 = vpop.trf.xlu0  ;;  %v298_v42 = vadd.f32 %v297_v32, %v296_v35 }
  0xb1   : > { %v5647_v19 = vunpack.i.l.bf16 %v5620_v8  ;;  %v398_v36 = vsel %vm8132_vm0, %v364_v25, 0.0 }
  0xb2   : > { %v399_v47 = vadd.f32 %v398_v36, %v397_v41 }
  0xb3   : > { %v365_v30 = vmul.f32 %v5647_v19, %v5647_v19  ;;  %v299_v37 = vsel %vm8132_vm0, %v5647_v19, 0.0 }
  0xb4   : > { %v5622_v9 = vpop.trf.xlu0  ;;  %v300_v48 = vadd.f32 %v299_v37, %v298_v42 }
  0xb5   : > { %v5661_v26 = vunpack.i.l.bf16 %v5622_v9  ;;  %v400_v43 = vsel %vm8132_vm0, %v365_v30, 0.0 }
  0xb6   : > { %v401_v54 = vadd.f32 %v400_v43, %v399_v47 }
  0xb7   : > { %v366_v38 = vmul.f32 %v5661_v26, %v5661_v26  ;;  %v301_v44 = vsel %vm8132_vm0, %v5661_v26, 0.0 }
  0xb8   : > { %v5624_v10 = vpop.trf.xlu0  ;;  %v302_v55 = vadd.f32 %v301_v44, %v300_v48 }
  0xb9   : > { %v5672_v33 = vunpack.i.l.bf16 %v5624_v10  ;;  %v402_v49 = vsel %vm8132_vm0, %v366_v38, 0.0 }
  0xba   : > { %v403_v60 = vadd.f32 %v402_v49, %v401_v54 }
  0xbb   : > { %v367_v45 = vmul.f32 %v5672_v33, %v5672_v33  ;;  %v303_v50 = vsel %vm8132_vm0, %v5672_v33, 0.0 }
  0xbc   : > { %v5629_v12 = vpop.trf.xlu0  ;;  %v304_v61 = vadd.f32 %v303_v50, %v302_v55 }
  0xbd   : > { %v5680_v39 = vunpack.i.l.bf16 %v5629_v12  ;;  %v404_v57 = vsel %vm8132_vm0, %v367_v45, 0.0 }
  0xbe   : > { %v405_v3 = vadd.f32 %v404_v57, %v403_v60  ;;  %v5757_v57 = vunpack.i.h.bf16 %v5612_v4 }
  0xbf   : > { %v368_v51 = vmul.f32 %v5680_v39, %v5680_v39  ;;  %v305_v58 = vsel %vm8132_vm0, %v5680_v39, 0.0 }
  0xc0   : > { %v5642_v17 = vpop.trf.xlu0  ;;  %v306_v15 = vadd.f32 %v305_v58, %v304_v61 }
  0xc1   : > { %v5690_v46 = vunpack.i.l.bf16 %v5642_v17  ;;  %v406_v62 = vsel %vm8132_vm0, %v368_v51, 0.0 }
  0xc2   : > { %v407_v23 = vadd.f32 %v406_v62, %v405_v3 }
  0xc3   : > { %v369_v59 = vmul.f32 %v5690_v46, %v5690_v46  ;;  %v307_v63 = vsel %vm8132_vm0, %v5690_v46, 0.0 }
  0xc4   : > { %v5663_v27 = vpop.trf.xlu0  ;;  %v308_v24 = vadd.f32 %v307_v63, %v306_v15 }
  0xc5   : > { %v5698_v52 = vunpack.i.l.bf16 %v5663_v27  ;;  %v408_v20 = vsel %vm8132_vm0, %v369_v59, 0.0 }
  0xc6   : > { %v409_v31 = vadd.f32 %v408_v20, %v407_v23  ;;  %v377_v20 = vmul.f32 %v5757_v57, %v5757_v57 }
  0xc7   : > { %v370_v0 = vmul.f32 %v5698_v52, %v5698_v52  ;;  %v309_v21 = vsel %vm8132_vm0, %v5698_v52, 0.0 }
  0xc8   : > { %v5682_v40 = vpop.trf.xlu0  ;;  %v310_v32 = vadd.f32 %v309_v21, %v308_v24  ;;  %v5776_v21 = vunpack.i.h.bf16 %v5616_v6 }
  0xc9   : > { %v5703_v56 = vunpack.i.l.bf16 %v5682_v40  ;;  %v410_v25 = vsel %vm8132_vm0, %v370_v0, 0.0  ;;  %v5767_v0 = vunpack.i.h.bf16 %v5614_v5 }
  0xca   : > { %v411_v38 = vadd.f32 %v410_v25, %v409_v31  ;;  %v5787_v31 = vunpack.i.h.bf16 %v5618_v7 }
  0xcb   : > { %v371_v18 = vmul.f32 %v5703_v56, %v5703_v56  ;;  %v311_v28 = vsel %vm8132_vm0, %v5703_v56, 0.0 }
  0xcc   : > { %v5700_v53 = vpop.trf.xlu0  ;;  %v312_v41 = vadd.f32 %v311_v28, %v310_v32  ;;  %v323_v28 = vsel %vm8132_vm0, %v5757_v57, 0.0 }
  0xcd   : > { %v5716_v1 = vunpack.i.l.bf16 %v5700_v53  ;;  %v412_v34 = vsel %vm8132_vm0, %v371_v18, 0.0 }
  0xce   : > { %v413_v47 = vadd.f32 %v412_v34, %v411_v38  ;;  %v379_v38 = vmul.f32 %v5776_v21, %v5776_v21 }
  0xcf   : > { %v372_v29 = vmul.f32 %v5716_v1, %v5716_v1  ;;  %v313_v35 = vsel %vm8132_vm0, %v5716_v1, 0.0 }
  0xd0   : > { %v5718_v2 = vpop.trf.xlu0  ;;  %v314_v48 = vadd.f32 %v313_v35, %v312_v41  ;;  %v424_v35 = vsel %vm8132_vm0, %v377_v20, 0.0  ;;  %v5796_v41 = vunpack.i.h.bf16 %v5620_v8  ;;  %v329_v8 = vsel %vm8132_vm0, %v5787_v31, 0.0 }
  0xd1   : > { %v5726_v22 = vunpack.i.l.bf16 %v5718_v2  ;;  %v414_v42 = vsel %vm8132_vm0, %v372_v29, 0.0  ;;  %v378_v29 = vmul.f32 %v5767_v0, %v5767_v0 }
  0xd2   : > { %v415_v54 = vadd.f32 %v414_v42, %v413_v47  ;;  %v380_v47 = vmul.f32 %v5787_v31, %v5787_v31 }
  0xd3   : > { %v373_v36 = vmul.f32 %v5726_v22, %v5726_v22  ;;  %v315_v43 = vsel %vm8132_vm0, %v5726_v22, 0.0  ;;  %v426_v7 = vsel %vm8132_vm0, %v378_v29, 0.0 }
  0xd4   : > { %v5733_v30 = vpop.trf.xlu0  ;;  %v316_v55 = vadd.f32 %v315_v43, %v314_v48  ;;  %v5804_v48 = vunpack.i.h.bf16 %v5622_v9  ;;  %v331_v9 = vsel %vm8132_vm0, %v5796_v41, 0.0 }
  0xd5   : > { %v5741_v37 = vunpack.i.l.bf16 %v5733_v30  ;;  %v416_v49 = vsel %vm8132_vm0, %v373_v36, 0.0  ;;  %v325_v36 = vsel %vm8132_vm0, %v5767_v0, 0.0 }
  0xd6   : > { %v417_v62 = vadd.f32 %v416_v49, %v415_v54  ;;  %v428_v54 = vsel %vm8132_vm0, %v379_v38, 0.0  ;;  %v5844_v38 = vunpack.i.h.bf16 %v5682_v40 }
  0xd7   : > { %v374_v44 = vmul.f32 %v5741_v37, %v5741_v37  ;;  %v317_v50 = vsel %vm8132_vm0, %v5741_v37, 0.0 }
  0xd8   : > { %v5748_v45 = vpop.trf.xlu0  ;;  %v318_v63 = vadd.f32 %v317_v50, %v316_v55  ;;  %v381_v55 = vmul.f32 %v5796_v41, %v5796_v41 }
  0xd9   : > { %v5754_v51 = vunpack.i.l.bf16 %v5748_v45  ;;  %v418_v58 = vsel %vm8132_vm0, %v374_v44, 0.0  ;;  %v327_v44 = vsel %vm8132_vm0, %v5776_v21, 0.0 }
  0xda   : > { %v419_v15 = vadd.f32 %v418_v58, %v417_v62  ;;  %v5812_v58 = vunpack.i.h.bf16 %v5624_v10  ;;  %v430_v62 = vsel %vm8132_vm0, %v380_v47, 0.0  ;;  %v432_v20 = vsel %vm8132_vm0, %v381_v55, 0.0 }
  0xdb   : > { %v319_v59 = vsel %vm8132_vm0, %v5754_v51, 0.0  ;;  %v375_v60 = vmul.f32 %v5754_v51, %v5754_v51  ;;  %v333_v10 = vsel %vm8132_vm0, %v5804_v48, 0.0  ;;  %v5852_v47 = vunpack.i.h.bf16 %v5700_v53 }
  0xdc   : > { %v5764_v61 = vpop.trf.xlu0  ;;  %v320_v18 = vadd.f32 %v319_v59, %v318_v63  ;;  %v382_v63 = vmul.f32 %v5804_v48, %v5804_v48  ;;  %v5860_v55 = vunpack.i.h.bf16 %v5718_v2  ;;  %v343_v53 = vsel %vm8132_vm0, %v5844_v38, 0.0 }
  0xdd   : > { %v420_v3 = vsel %vm8132_vm0, %v375_v60, 0.0  ;;  %v5771_v4 = vunpack.i.l.bf16 %v5764_v61  ;;  %v345_v2 = vsel %vm8132_vm0, %v5852_v47, 0.0 }
  0xde   : > { %v421_v24 = vadd.f32 %v420_v3, %v419_v15  ;;  %v5820_v3 = vunpack.i.h.bf16 %v5629_v12  ;;  %v335_v12 = vsel %vm8132_vm0, %v5812_v58, 0.0 }
  0xdf   : > { %v321_v23 = vsel %vm8132_vm0, %v5771_v4, 0.0  ;;  %v376_v5 = vmul.f32 %v5771_v4, %v5771_v4 }
  0xe0   : > { %v322_v25 = vadd.f32 %v321_v23, %v320_v18  ;;  %v383_v23 = vmul.f32 %v5812_v58, %v5812_v58  ;;  %v384_v29 = vmul.f32 %v5820_v3, %v5820_v3 }
  0xe1   : > { %v422_v6 = vsel %vm8132_vm0, %v376_v5, 0.0  ;;  %v5828_v5 = vunpack.i.h.bf16 %v5642_v17  ;;  %v337_v17 = vsel %vm8132_vm0, %v5820_v3, 0.0 }
  0xe2   : > { %v324_v32 = vadd.f32 %v323_v28, %v322_v25  ;;  %v423_v34 = vadd.f32 %v422_v6, %v421_v24  ;;  %v434_v28 = vsel %vm8132_vm0, %v382_v63, 0.0  ;;  %v5836_v6 = vunpack.i.h.bf16 %v5663_v27 }
  0xe3   : > { %v339_v27 = vsel %vm8132_vm0, %v5828_v5, 0.0  ;;  %v5868_v63 = vunpack.i.h.bf16 %v5733_v30  ;;  %v347_v30 = vsel %vm8132_vm0, %v5860_v55, 0.0 }
  0xe4   : > { %v326_v42 = vadd.f32 %v325_v36, %v324_v32  ;;  %v425_v43 = vadd.f32 %v424_v35, %v423_v34  ;;  %v436_v35 = vsel %vm8132_vm0, %v383_v23, 0.0  ;;  %v385_v36 = vmul.f32 %v5828_v5, %v5828_v5 }
  0xe5   : > { %v341_v40 = vsel %vm8132_vm0, %v5836_v6, 0.0  ;;  %v5876_v23 = vunpack.i.h.bf16 %v5748_v45  ;;  %v349_v45 = vsel %vm8132_vm0, %v5868_v63, 0.0 }
  0xe6   : > { %v328_v49 = vadd.f32 %v327_v44, %v326_v42  ;;  %v427_v50 = vadd.f32 %v426_v7, %v425_v43  ;;  %v438_v7 = vsel %vm8132_vm0, %v384_v29, 0.0  ;;  %v386_v44 = vmul.f32 %v5836_v6, %v5836_v6 }
  0xe7   : > { %v5884_v29 = vunpack.i.h.bf16 %v5764_v61 }
  0xe8   : > { %v330_v59 = vadd.f32 %v329_v8, %v328_v49  ;;  %v429_v60 = vadd.f32 %v428_v54, %v427_v50  ;;  %v440_v54 = vsel %vm8132_vm0, %v385_v36, 0.0  ;;  %v387_v8 = vmul.f32 %v5844_v38, %v5844_v38 }
  0xe9   : > { %v392_v61 = vmul.f32 %v5884_v29, %v5884_v29 }
  0xea   : > { %v332_v15 = vadd.f32 %v331_v9, %v330_v59  ;;  %v431_v18 = vadd.f32 %v430_v62, %v429_v60  ;;  %v442_v62 = vsel %vm8132_vm0, %v386_v44, 0.0  ;;  %v388_v9 = vmul.f32 %v5852_v47, %v5852_v47 }
  0xec   : > { %v334_v24 = vadd.f32 %v333_v10, %v332_v15  ;;  %v433_v25 = vadd.f32 %v432_v20, %v431_v18  ;;  %v444_v20 = vsel %vm8132_vm0, %v387_v8, 0.0  ;;  %v389_v10 = vmul.f32 %v5860_v55, %v5860_v55 }
  0xed   : > { %v454_v8 = vsel %vm8132_vm0, %v392_v61, 0.0 }
  0xee   : > { %v336_v32 = vadd.f32 %v335_v12, %v334_v24  ;;  %v435_v34 = vadd.f32 %v434_v28, %v433_v25  ;;  %v446_v28 = vsel %vm8132_vm0, %v388_v9, 0.0  ;;  %v390_v12 = vmul.f32 %v5868_v63, %v5868_v63 }
  0xf0   : > { %v338_v42 = vadd.f32 %v337_v17, %v336_v32  ;;  %v437_v43 = vadd.f32 %v436_v35, %v435_v34  ;;  %v448_v35 = vsel %vm8132_vm0, %v389_v10, 0.0  ;;  %v391_v17 = vmul.f32 %v5876_v23, %v5876_v23 }
  0xf2   : > { %v340_v49 = vadd.f32 %v339_v27, %v338_v42  ;;  %v439_v50 = vadd.f32 %v438_v7, %v437_v43  ;;  %v450_v43 = vsel %vm8132_vm0, %v390_v12, 0.0  ;;  %v351_v7 = vsel %vm8132_vm0, %v5876_v23, 0.0 }
  0xf4   : > { %v342_v59 = vadd.f32 %v341_v40, %v340_v49  ;;  %v441_v60 = vadd.f32 %v440_v54, %v439_v50  ;;  %v452_v49 = vsel %vm8132_vm0, %v391_v17, 0.0  ;;  %v353_v50 = vsel %vm8132_vm0, %v5884_v29, 0.0 }
  0xf5   : > { %v533_v17 = vlaneseq }
  0xf6   : > { %v344_v15 = vadd.f32 %v343_v53, %v342_v59  ;;  %v443_v18 = vadd.f32 %v442_v62, %v441_v60 }
  0xf8   : > { %v346_v24 = vadd.f32 %v345_v2, %v344_v15  ;;  %v445_v25 = vadd.f32 %v444_v20, %v443_v18 }
  0xfa   : > { %v348_v32 = vadd.f32 %v347_v30, %v346_v24  ;;  %v447_v34 = vadd.f32 %v446_v28, %v445_v25 }
  0xfc   : > { %v350_v36 = vadd.f32 %v349_v45, %v348_v32  ;;  %v449_v42 = vadd.f32 %v448_v35, %v447_v34 }
  0xfe   : > { %v352_v27 = vadd.f32 %v351_v7, %v350_v36  ;;  %v451_v44 = vadd.f32 %v450_v43, %v449_v42  ;;  %v5906_v42 = vshrl.u32 %v533_v17, 7 }
 0x100   : > { %v354_v54 = vadd.f32 %v353_v50, %v352_v27  ;;  %v453_v40 = vadd.f32 %v452_v49, %v451_v44  ;;  %v563_v43 = vadd.s32 232, %v5906_v42 }
 0x102   : > { %v355_v59 = vrot.slane %v354_v54, 4  ;;  %v455_v60 = vadd.f32 %v454_v8, %v453_v40  ;;  %v773_v7 = vand.u32 15, %v563_v43 }
 0x104   : > { %v356_v62 = vadd.f32 %v355_v59, %v354_v54  ;;  %v456_v53 = vrot.slane %v455_v60, 4  ;;  %vm5964_vm2 = vcmp.lt.s32.totalorder %v773_v7, 15 }
 0x106   : > { %v357_v9 = vrot.slane %v356_v62, 2  ;;  %v457_v15 = vadd.f32 %v456_v53, %v455_v60 }
 0x108   : > { %v358_v18 = vadd.f32 %v357_v9, %v356_v62  ;;  %v458_v20 = vrot.slane %v457_v15, 2 }
 0x10a   : > { %v359_v2 = vrot.slane %v358_v18, 1  ;;  %v459_v10 = vadd.f32 %v458_v20, %v457_v15 }
 0x10c   : > { %v360_v24 = vadd.f32 %v359_v2, %v358_v18  ;;  %v460_v25 = vrot.slane %v459_v10, 1  ;;  %v8180_v18 = vmov 0 }
 0x10d   : > { %v8181_v18 = vsel %vm5964_vm2, 4294967295, %v8180_v18 }
 0x10e   : > { %v461_v28 = vadd.f32 %v460_v25, %v459_v10  ;;  %v5900_v30 = vmul.f32 0.00390625, %v360_v24  ;;  %8182 = vst [vmem:[#allocation7_spill] sm:$0xff] %v8181_v18  ;;  %v8196_v18 = vmov 0 }
 0x110   : > { %v463_v12 = vmul.f32 0.00390625, %v461_v28  ;;  %v464_v32 = vmul.f32 %v5900_v30, %v5900_v30  ;;  %v498_v34 = vsub.f32 %v5884_v29, %v5900_v30  ;;  %v467_v61 = vsub.f32 %v5632_v13, %v5900_v30 }
 0x111   : > { %v468_v27 = vsub.f32 %v5627_v11, %v5900_v30  ;;  %v469_v44 = vsub.f32 %v5635_v14, %v5900_v30  ;;  %v470_v49 = vsub.f32 %v5640_v16, %v5900_v30  ;;  %v471_v54 = vsub.f32 %v5647_v19, %v5900_v30 }
 0x112   : > { %v465_v35 = vsub.f32 %v463_v12, %v464_v32  ;;  %v472_v40 = vsub.f32 %v5661_v26, %v5900_v30  ;;  %v495_v13 = vsub.f32 %v5860_v55, %v5900_v30  ;;  %v497_v11 = vsub.f32 %v5876_v23, %v5900_v30 }
 0x113   : > { %v496_v14 = vsub.f32 %v5868_v63, %v5900_v30  ;;  %v482_v53 = vsub.f32 %v5771_v4, %v5900_v30  ;;  %v473_v9 = vsub.f32 %v5672_v33, %v5900_v30  ;;  %v474_v20 = vsub.f32 %v5680_v39, %v5900_v30 }
 0x114   : > { %v466_v45 = vmax.f32 %v465_v35, 0.0  ;;  %v479_v2 = vsub.f32 %v5726_v22, %v5900_v30  ;;  %v475_v10 = vsub.f32 %v5690_v46, %v5900_v30  ;;  %v480_v24 = vsub.f32 %v5741_v37, %v5900_v30 }
 0x115   : > { %v481_v25 = vsub.f32 %v5754_v51, %v5900_v30 }
 0x116   : > { %v499_v36 = vadd.f32 1e-05, %v466_v45  ;;  %v476_v45 = vsub.f32 %v5698_v52, %v5900_v30 }
 0x118   : > { %5457 = vrsqrt.f32 %v499_v36 }
 0x122   : > { %v5917_v50 = vpop.eup %5457 }
 0x123   : > { %v5930_v8 = vmul.f32 %v5917_v50, %v469_v44  ;;  %v5933_v16 = vmul.f32 %v5917_v50, %v470_v49  ;;  %v5936_v19 = vmul.f32 %v5917_v50, %v467_v61  ;;  %v5939_v26 = vmul.f32 %v5917_v50, %v497_v11 }
 0x124   : > { %v5942_v55 = vmul.f32 %v5917_v50, %v468_v27  ;;  %v5945_v23 = vmul.f32 %v5917_v50, %v495_v13  ;;  %v5950_v59 = vmul.f32 %v5917_v50, %v471_v54  ;;  %v5953_v60 = vmul.f32 %v5917_v50, %v472_v40 }
 0x125   : > { %v5130_v63 = vpack.i.bf16 %v5933_v16, %v5930_v8  ;;  %v5956_v62 = vmul.f32 %v5917_v50, %v496_v14  ;;  %v1299_v39 = vrot.slane %v5939_v26, 1  ;;  %v5986_v28 = vmul.f32 %v5917_v50, %v473_v9 }
 0x126   : > { %v5125_v15 = vpack.i.bf16 %v5942_v55, %v5936_v19  ;;  %v1295_v4 = vrot.slane %v5945_v23, 1  ;;  %v5135_v22 = vpack.i.bf16 %v5953_v60, %v5950_v59  ;;  %v5989_v12 = vmul.f32 %v5917_v50, %v474_v20 }
 0x127   : > { %5131 = vrot.lane.b32.xlu1 %v5130_v63, %s5525_s10  ;;  %v1297_v33 = vrot.slane %v5956_v62, 1  ;;  %v5992_v46 = vmul.f32 %v5917_v50, %v479_v2  ;;  %v5195_v37 = vpack.i.bf16 %v5956_v62, %v5945_v23  ;;  %v6000_v32 = vmul.f32 %v5917_v50, %v480_v24 }
 0x128   : > { %5126 = vrot.lane.b32.xlu0 %v5125_v15, %s5525_s10  ;;  %v6003_v35 = vmul.f32 %v5917_v50, %v481_v25  ;;  %v6014_v43 = vmul.f32 %v5917_v50, %v482_v53  ;;  %v5140_v52 = vpack.i.bf16 %v5989_v12, %v5986_v28  ;;  %v6022_v61 = vmul.f32 %v5917_v50, %v475_v10 }
 0x129   : > { %v1300_v51 = vsel %vm8134_vm1, %v1297_v33, %v1299_v39  ;;  %v1298_v17 = vsel %vm8134_vm1, %v1295_v4, %v1297_v33  ;;  %v5155_v7 = vpack.i.bf16 %v6000_v32, %v5992_v46  ;;  %v6025_v27 = vmul.f32 %v5917_v50, %v476_v45 }
 0x12a   : > { %v1429_v36 = vsel %vm5964_vm2, %v1300_v51, 0.0  ;;  %v5160_v44 = vpack.i.bf16 %v6014_v43, %v6003_v35  ;;  %v477_v54 = vsub.f32 %v5703_v56, %v5900_v30  ;;  %v478_v40 = vsub.f32 %v5716_v1, %v5900_v30 }
 0x12b   : > { %5136 = vrot.lane.b32.xlu1 %v5135_v22, %s5525_s10  ;;  %v5275_v49 = vpack.i.bf16 %v1429_v36, %v1298_v17  ;;  %v5145_v13 = vpack.i.bf16 %v6025_v27, %v6022_v61  ;;  %v547_v63 = vadd.s32 104, %v5906_v42  ;;  %v549_v56 = vadd.s32 120, %v5906_v42 }
 0x12c   : > { %5196 = vrot.lane.b32.xlu0 %v5195_v37, %s5525_s10  ;;  %v6038_v11 = vmul.f32 %v5917_v50, %v477_v54  ;;  %v6041_v14 = vmul.f32 %v5917_v50, %v478_v40  ;;  %v561_v1 = vadd.s32 216, %v5906_v42  ;;  %v6048_v53 = vadd.s32 8, %v5906_v42 }
 0x12d   : > { %v6051_v9 = vadd.s32 24, %v5906_v42  ;;  %v6054_v15 = vadd.s32 40, %v5906_v42  ;;  %v483_v20 = vsub.f32 %v5757_v57, %v5900_v30  ;;  %v6061_v33 = vadd.s32 56, %v5906_v42 }
 0x12e   : > { %v5150_v2 = vpack.i.bf16 %v6041_v14, %v6038_v11  ;;  %v661_v10 = vand.u32 15, %v547_v63  ;;  %v675_v24 = vand.u32 15, %v549_v56  ;;  %v565_v25 = vadd.s32 248, %v5906_v42 }
 0x12f   : > { %5141 = vrot.lane.b32.xlu1 %v5140_v52, %s5525_s10  ;;  %v6066_v22 = vmul.f32 %v5917_v50, %v483_v20  ;;  %v8119_v37 = vrot.slane %v5992_v46, 1  ;;  %v759_v51 = vand.u32 15, %v561_v1  ;;  %v1265_v17 = vrot.slane %v6000_v32, 1 }
 0x130   : > { %5276 = vrot.lane.b32.xlu0 %v5275_v49, %s5526_s11  ;;  %v6075_v49 = vadd.s32 72, %v5906_v42  ;;  %vm6077_vm3 = vcmp.lt.s32.totalorder %v661_v10, 15  ;;  %v8183_v54 = vmov 0  ;;  %vm6085_vm4 = vcmp.lt.s32.totalorder %v675_v24, 15 }
 0x131   : > { %v8184_v54 = vsel %vm6077_vm3, 4294967295, %v8183_v54  ;;  %v1266_v40 = vsel %vm8134_vm1, %v8119_v37, %v1265_v17  ;;  %v8186_v63 = vmov 0  ;;  %v787_v56 = vand.u32 15, %v565_v25 }
 0x132   : > { %8185 = vst [vmem:[#allocation8_spill] sm:$0xff] %v8184_v54  ;;  %v8187_v63 = vsel %vm6085_vm4, 4294967295, %v8186_v63  ;;  %v484_v1 = vsub.f32 %v5767_v0, %v5900_v30  ;;  %v1269_v20 = vrot.slane %v6014_v43, 1  ;;  %vm6094_vm5 = vcmp.lt.s32.totalorder %v759_v51, 15 }
 0x133   : > { %5146 = vrot.lane.b32.xlu1 %v5145_v13, %s5525_s10  ;;  %v1267_v13 = vrot.slane %v6003_v35, 1  ;;  %8188 = vst [vmem:[#allocation9_spill] sm:$0xff] %v8187_v63  ;;  %v8189_v10 = vmov 0  ;;  %v485_v24 = vsub.f32 %v5776_v21, %v5900_v30  ;;  %v493_v25 = vsub.f32 %v5844_v38, %v5900_v30 }
 0x134   : > { %v8190_v10 = vsel %vm6094_vm5, 4294967295, %v8189_v10  ;;  %v494_v0 = vsub.f32 %v5852_v47, %v5900_v30  ;;  %v6106_v37 = vmul.f32 %v5917_v50, %v484_v1  ;;  %v486_v1 = vsub.f32 %v5787_v31, %v5900_v30 }
 0x135   : > { %8191 = vst [vmem:[#allocation10_spill] sm:$0xff] %v8190_v10  ;;  %v1270_v52 = vsel %vm8134_vm1, %v1267_v13, %v1269_v20  ;;  %v6115_v36 = vmul.f32 %v5917_v50, %v493_v25  ;;  %v6140_v31 = vmul.f32 %v5917_v50, %v485_v24  ;;  %vm6167_vm7 = vcmp.lt.s32.totalorder %v787_v56, 15 }
 0x136   : > { %v6118_v38 = vmul.f32 %v5917_v50, %v494_v0  ;;  %v490_v0 = vsub.f32 %v5820_v3, %v5900_v30  ;;  %v1050_v3 = vrot.slane %v5930_v8, 7  ;;  %v1068_v54 = vrot.slane %v6041_v14, 7 }
 0x137   : > { %5151 = vrot.lane.b32.xlu1 %v5150_v2, %s5525_s10  ;;  %v8121_v2 = vrot.slane %v6066_v22, 1  ;;  %v1072_v63 = vrot.slane %v6000_v32, 7  ;;  %v1076_v32 = vrot.slane %v6014_v43, 7 }
 0x138   : > { %v1293_v24 = vrot.slane %v6118_v38, 1 }
 0x139   : > { %v1272_v21 = vsel %vm8134_vm1, %v1269_v20, %v8121_v2  ;;  %v488_v20 = vsub.f32 %v5804_v48, %v5900_v30  ;;  %v6145_v48 = vmul.f32 %v5917_v50, %v486_v1  ;;  %v8192_v1 = vmov 0 }
 0x13a   : > { %v8193_v1 = vsel %vm6167_vm7, 4294967295, %v8192_v1  ;;  %v1296_v56 = vsel %vm8134_vm1, %v1293_v24, %v1295_v4 }
 0x13b   : > { %5156 = vrot.lane.b32.xlu1 %v5155_v7, %s5525_s10  ;;  %v1268_v7 = vsel %vm8134_vm1, %v1265_v17, %v1267_v13  ;;  %v1415_v17 = vsel %vm6085_vm4, %v1272_v21, 0.0  ;;  %v487_v13 = vsub.f32 %v5796_v41, %v5900_v30  ;;  %v5165_v41 = vpack.i.bf16 %v6106_v37, %v6066_v22  ;;  %8194 = vst [vmem:[#allocation11_spill] sm:$0xff] %v8193_v1 }
 0x13c   : > { %v1413_v51 = vsel %vm6077_vm3, %v1268_v7, 0.0  ;;  %v6131_v25 = vpack.i.bf16 %v1415_v17, %v1270_v52  ;;  %v491_v7 = vsub.f32 %v5828_v5, %v5900_v30  ;;  %v1048_v52 = vrot.slane %v5942_v55, 7 }
 0x13d   : > { %v6120_v47 = vpack.i.bf16 %v1413_v51, %v1266_v40  ;;  %v489_v40 = vsub.f32 %v5812_v58, %v5900_v30  ;;  %v6151_v58 = vmul.f32 %v5917_v50, %v488_v20  ;;  %v8120_v5 = vrot.slane %v6115_v36, 1 }
 0x13e   : > { %v492_v51 = vsub.f32 %v5836_v6, %v5900_v30  ;;  %v1052_v21 = vrot.slane %v5933_v16, 7  ;;  %v6165_v17 = vmul.f32 %v5917_v50, %v498_v34  ;;  %v6175_v20 = vmul.f32 %v5917_v50, %v490_v0 }
 0x13f   : > { %5161 = vrot.lane.b32.xlu1 %v5160_v44, %s5525_s10  ;;  %v6148_v44 = vmul.f32 %v5917_v50, %v487_v13  ;;  %v6172_v13 = vmul.f32 %v5917_v50, %v489_v40  ;;  %v6178_v6 = vmul.f32 %v5917_v50, %v491_v7  ;;  %v1294_v29 = vsel %vm8134_vm1, %v8120_v5, %v1293_v24 }
 0x140   : > { %v5170_v30 = vpack.i.bf16 %v6145_v48, %v6140_v31  ;;  %v6193_v0 = vmul.f32 %v5917_v50, %v492_v51  ;;  %v1427_v7 = vsel %vm6094_vm5, %v1296_v56, 0.0  ;;  %v6199_v5 = vsel %vm8131_vm6, %v1048_v52, %v1050_v3 }
 0x141   : > { %v5175_v34 = vpack.i.bf16 %v6151_v58, %v6148_v44  ;;  %v6203_v45 = vpack.i.bf16 %v1427_v7, %v1294_v29  ;;  %v6206_v4 = vsel %vm8131_vm6, %v1050_v3, %v1052_v21  ;;  %v8123_v50 = vrot.slane %v5936_v19, 7 }
 0x142   : > { %v1054_v56 = vrot.slane %v5950_v59, 7  ;;  %v1056_v40 = vrot.slane %v5953_v60, 7  ;;  %v1102_v7 = vrot.slane %v5945_v23, 7  ;;  %v1241_v23 = vrot.slane %v5942_v55, 1 }
 0x143   : > { %5166 = vrot.lane.b32.xlu1 %v5165_v41, %s5525_s10  ;;  %v1301_v41 = vrot.slane %v6165_v17, 1  ;;  %v6222_v3 = vsel %vm8131_vm6, %v8123_v50, %v1048_v52  ;;  %v8199_v52 = vrot.slane %v6118_v38, 7  ;;  %v1062_v50 = vrot.slane %v6022_v61, 7 }
 0x144   : > { %v6229_v2 = vsel %vm8131_vm6, %v1052_v21, %v1054_v56  ;;  %v6232_v57 = vsel %vm8131_vm6, %v1054_v56, %v1056_v40  ;;  %v8127_v21 = vrot.slane %v5956_v62, 7  ;;  %v1058_v56 = vrot.slane %v5986_v28, 7 }
 0x145   : > { %v1302_v24 = vsel %vm8134_vm1, %v1299_v39, %v1301_v41  ;;  %v1335_v51 = vsel %vm8134_vm1, %v1301_v41, 0.0  ;;  %v1240_v39 = vrot.slane %v5936_v19, 1  ;;  %v1064_v1 = vrot.slane %v6025_v27, 7 }
 0x146   : > { %v1431_v29 = vsel %vm6167_vm7, %v1335_v51, 0.0  ;;  %v8195_v51 = vand.u32 15, %v6048_v53  ;;  %v1243_v53 = vrot.slane %v5930_v8, 1  ;;  %v6257_v55 = vsel %vm8131_vm6, %v1102_v7, %v8127_v21 }
 0x147   : > { %5171 = vrot.lane.b32.xlu1 %v5170_v30, %s5525_s10  ;;  %v5180_v30 = vpack.i.bf16 %v6175_v20, %v6172_v13  ;;  %v6226_v41 = vpack.i.bf16 %v1431_v29, %v1302_v24  ;;  %v6245_v24 = vsel %vm8131_vm6, %v8199_v52, %v1102_v7  ;;  %v1245_v29 = vrot.slane %v5933_v16, 1 }
 0x148   : > { %vm6237_vm8 = vcmp.lt.s32.totalorder %v8195_v51, 15  ;;  %v1060_v51 = vrot.slane %v5989_v12, 7  ;;  %v6260_v52 = vsel %vm8131_vm6, %v1056_v40, %v1058_v56  ;;  %v1066_v16 = vrot.slane %v6038_v11, 7 }
 0x149   : > { %v8197_v18 = vsel %vm6237_vm8, 4294967295, %v8196_v18  ;;  %v8201_v7 = vand.u32 15, %v6051_v9  ;;  %v6281_v10 = vsel %vm8131_vm6, %v1062_v50, %v1064_v1 }
 0x14a   : > { %8198 = vst [vmem:[#allocation12_spill] sm:$0xff] %v8197_v18  ;;  %v6266_v8 = vsel %vm8131_vm6, %v1058_v56, %v1060_v51  ;;  %v6278_v21 = vsel %vm8131_vm6, %v1060_v51, %v1062_v50  ;;  %8205 = vst [vmem:[#allocation15_spill] sm:$0xff] %v6281_v10  ;;  %v1070_v56 = vrot.slane %v5992_v46, 7  ;;  %v6291_v9 = vsel %vm8131_vm6, %v1066_v16, %v1068_v54 }
 0x14b   : > { %5176 = vrot.lane.b32.xlu1 %v5175_v34, %s5525_s10  ;;  %v5185_v34 = vpack.i.bf16 %v6193_v0, %v6178_v6  ;;  %8200 = vst [vmem:[#allocation13_spill] sm:$0xff] %v6266_v8  ;;  %vm6273_vm9 = vcmp.lt.s32.totalorder %v8201_v7, 15  ;;  %8204 = vst [vmem:[#allocation14_spill] sm:$0xff] %v6278_v21  ;;  %v5190_v8 = vpack.i.bf16 %v6118_v38, %v6115_v36  ;;  %v1074_v7 = vrot.slane %v6003_v35, 7 }
 0x14c   : > { %8206 = vst [vmem:[#allocation16_spill] sm:$0xff] %v6291_v9  ;;  %v1242_v51 = vsel %vm8134_vm1, %v1240_v39, %v1241_v23  ;;  %v6296_v50 = vsel %vm8131_vm6, %v1068_v54, %v1070_v56  ;;  %v6299_v10 = vsel %vm8131_vm6, %v1070_v56, %v1072_v63  ;;  %v1249_v21 = vrot.slane %v5953_v60, 1 }
 0x14d   : > { %8207 = vst [vmem:[#allocation17_spill] sm:$0xff] %v6299_v10  ;;  %v1080_v9 = vrot.slane %v6106_v37, 7  ;;  %v1244_v35 = vsel %vm8134_vm1, %v1241_v23, %v1243_v53  ;;  %v8209_v54 = vand.u32 15, %v6054_v15  ;;  %v6317_v43 = vsel %vm8131_vm6, %v1074_v7, %v1076_v32 }
 0x14e   : > { %8212 = vst [vmem:[#allocation19_spill] sm:$0xff] %v6317_v43  ;;  %v1082_v60 = vrot.slane %v6140_v31, 7  ;;  %v1086_v23 = vrot.slane %v6148_v44, 7  ;;  %v1088_v15 = vrot.slane %v6151_v58, 7  ;;  %v1092_v10 = vrot.slane %v6175_v20, 7 }
 0x14f   : > { %5181 = vrot.lane.b32.xlu1 %v5180_v30, %s5525_s10  ;;  %v6288_v30 = vsel %vm8131_vm6, %v1064_v1, %v1066_v16  ;;  %v6304_v1 = vsel %vm8131_vm6, %v1072_v63, %v1074_v7  ;;  %v1078_v16 = vrot.slane %v6066_v22, 7  ;;  %vm6312_vm10 = vcmp.lt.s32.totalorder %v8209_v54, 15 }
 0x150   : > { %8208 = vst [vmem:[#allocation18_spill] sm:$0xff] %v6304_v1  ;;  %v1084_v63 = vrot.slane %v6145_v48, 7  ;;  %v8215_v54 = vrot.slane %v5950_v59, 1  ;;  %v6333_v7 = vsel %vm8131_vm6, %v1080_v9, %v1082_v60  ;;  %v1096_v18 = vrot.slane %v6193_v0, 7 }
 0x151   : > { %v6322_v56 = vsel %vm8131_vm6, %v1076_v32, %v1078_v16  ;;  %v1090_v32 = vrot.slane %v6172_v13, 7 }
 0x152   : > { %8213 = vst [vmem:[#allocation20_spill] sm:$0xff] %v6322_v56  ;;  %v1248_v1 = vsel %vm8134_vm1, %v1245_v29, %v8215_v54  ;;  %v6336_v43 = vsel %vm8131_vm6, %v1082_v60, %v1084_v63  ;;  %v6345_v56 = vsel %vm8131_vm6, %v1086_v23, %v1088_v15  ;;  %v1094_v54 = vrot.slane %v6178_v6, 7 }
 0x153   : > { %5186 = vrot.lane.b32.xlu1 %v5185_v34, %s5525_s10  ;;  %v6325_v34 = vsel %vm8131_vm6, %v1078_v16, %v1080_v9  ;;  %v1401_v16 = vsel %vm6237_vm8, %v1244_v35, 0.0  ;;  %8217 = vst [vmem:[#allocation23_spill] sm:$0xff] %v6345_v56  ;;  %v1251_v9 = vrot.slane %v5986_v28, 1  ;;  %v6351_v60 = vsel %vm8131_vm6, %v1088_v15, %v1090_v32 }
 0x154   : > { %8214 = vst [vmem:[#allocation21_spill] sm:$0xff] %v6325_v34  ;;  %v6342_v34 = vsel %vm8131_vm6, %v1084_v63, %v1086_v23  ;;  %8218 = vst [vmem:[#allocation24_spill] sm:$0xff] %v6351_v60  ;;  %v1246_v35 = vsel %vm8134_vm1, %v1243_v53, %v1245_v29  ;;  %v6357_v63 = vsel %vm8131_vm6, %v1090_v32, %v1092_v10  ;;  %v1098_v23 = vrot.slane %v6115_v36, 7 }
 0x155   : > { %8216 = vst [vmem:[#allocation22_spill] sm:$0xff] %v6342_v34  ;;  %v1106_v56 = vrot.slane %v5939_v26, 7  ;;  %v5200_v34 = vpack.i.bf16 %v1401_v16, %v1242_v51  ;;  %v6365_v28 = vsel %vm8131_vm6, %v1094_v54, %v1096_v18  ;;  %v1108_v15 = vrot.slane %v6165_v17, 7 }
 0x156   : > { %v1403_v60 = vsel %vm6273_vm9, %v1248_v1, 0.0  ;;  %v6371_v53 = vsel %vm8131_vm6, %v1096_v18, %v1098_v23  ;;  %v8219_v29 = vrot.slane %v6118_v38, 7  ;;  %v8220_v51 = vrot.slane %v5956_v62, 7  ;;  %v5445_v18 = vld [vmem:[%s8114_s1 + $0xc] sm:$0xff]  }
 0x157   : > { %5191 = vrot.lane.b32.xlu1 %v5190_v8, %s5525_s10  ;;  %v6362_v8 = vsel %vm8131_vm6, %v1092_v10, %v1094_v54  ;;  %v1252_v16 = vsel %vm8134_vm1, %v1249_v21, %v1251_v9  ;;  %v1253_v54 = vrot.slane %v5989_v12, 1  ;;  %v1255_v1 = vrot.slane %v6022_v61, 1  ;;  %4650 = vmatprep.subr.bf16.mxu0 %v5445_v18 }
 0x158   : > { %v6376_v32 = vsel %vm8131_vm6, %v1098_v23, %v8219_v29  ;;  %v6381_v10 = vsel %vm8131_vm6, %v8220_v51, %v1106_v56  ;;  %v6391_v38 = vsel %vm8131_vm6, %v1106_v56, %v1108_v15  ;;  %v5205_v23 = vpack.i.bf16 %v1403_v60, %v1246_v35  ;;  %4651 = vmatpush3.bf16.msra.mxu0 %v5445_v18  ;;  %v5446_v60 = vld [vmem:[%s8114_s1 + $0x14] ss:$0 sps:$4 sm:$0xff]  }
 0x159   : > { %v633_v62 = vand.u32 15, %v6075_v49  ;;  %v8221_v29 = vrot.slane %v5950_v59, 1  ;;  %v1405_v12 = vsel %vm6312_vm10, %v1252_v16, 0.0  ;;  %v8222_v61 = vand.u32 15, %v6061_v33  ;;  %4994 = vmatprep.subr.msk.bf16.mxu0 %vm8130_vm12, %v5446_v60 }
 0x15a   : > { %v545_v56 = vadd.s32 88, %v5906_v42  ;;  %v1256_v49 = vsel %vm8134_vm1, %v1253_v54, %v1255_v1  ;;  %v1257_v59 = vrot.slane %v6025_v27, 1  ;;  %v1839_v35 = vsel %vm8130_vm12, %v5446_v60, 0 }
 0x15b   : > { %5201 = vrot.lane.b32.xlu1 %v5200_v34, %s5526_s11  ;;  %v1250_v34 = vsel %vm8134_vm1, %v8221_v29, %v1249_v21  ;;  %vm6401_vm11 = vcmp.lt.s32.totalorder %v8222_v61, 15  ;;  %v1259_v21 = vrot.slane %v6038_v11, 1  ;;  %v1254_v15 = vsel %vm8134_vm1, %v1251_v9, %v1253_v54  ;;  %v6428_v29 = vld [vmem:[%s8114_s1] sm:$0xff]  }
 0x15c   : > { %v5210_v33 = vpack.i.bf16 %v1405_v12, %v1250_v34  ;;  %v1407_v16 = vsel %vm6401_vm11, %v1256_v49, 0.0  ;;  %4653 = vmatpush3.bf16.msra.mxu0 %v1839_v35  ;;  %vm6419_vm13 = vcmp.lt.s32.totalorder %v633_v62, 15  ;;  %v647_v18 = vand.u32 15, %v545_v56 }
 0x15d   : > { %v1260_v11 = vsel %vm8134_vm1, %v1257_v59, %v1259_v21  ;;  %v5215_v9 = vpack.i.bf16 %v1407_v16, %v1254_v15  ;;  %4686 = vmatprep.subr.bf16.mxu0 %v6428_v29  ;;  %v1258_v54 = vsel %vm8134_vm1, %v1255_v1, %v1257_v59  ;;  %v551_v1 = vadd.s32 136, %v5906_v42 }
 0x15e   : > { %v1409_v62 = vsel %vm6419_vm13, %v1260_v11, 0.0  ;;  %vm6435_vm14 = vcmp.lt.s32.totalorder %v647_v18, 15  ;;  %v1275_v35 = vrot.slane %v6140_v31, 1  ;;  %v8230_v15 = vmov 0 }
 0x15f   : > { %5206 = vrot.lane.b32.xlu1 %v5205_v23, %s5526_s11  ;;  %v1261_v23 = vrot.slane %v6041_v14, 1  ;;  %v8229_v14 = vrot.slane %v5992_v46, 1  ;;  %v5220_v61 = vpack.i.bf16 %v1409_v62, %v1258_v54  ;;  %v689_v60 = vand.u32 15, %v551_v1 }
 0x160   : > { %v1273_v46 = vrot.slane %v6106_v37, 1  ;;  %v1277_v11 = vrot.slane %v6145_v48, 1  ;;  %v1279_v18 = vrot.slane %v6148_v44, 1  ;;  %v8232_v37 = vrot.slane %v6066_v22, 1 }
 0x161   : > { %v1264_v12 = vsel %vm8134_vm1, %v1261_v23, %v8229_v14  ;;  %v1262_v56 = vsel %vm8134_vm1, %v1259_v21, %v1261_v23  ;;  %vm6451_vm15 = vcmp.lt.s32.totalorder %v689_v60, 15  ;;  %v555_v23 = vadd.s32 168, %v5906_v42 }
 0x162   : > { %v1411_v49 = vsel %vm6435_vm14, %v1264_v12, 0.0  ;;  %v8231_v15 = vsel %vm6451_vm15, 4294967295, %v8230_v15  ;;  %v1276_v16 = vsel %vm8134_vm1, %v1273_v46, %v1275_v35  ;;  %v1274_v31 = vsel %vm8134_vm1, %v8232_v37, %v1273_v46 }
 0x163   : > { %5211 = vrot.lane.b32.xlu1 %v5210_v33, %s5526_s11  ;;  %v5225_v59 = vpack.i.bf16 %v1411_v49, %v1262_v56  ;;  %v553_v33 = vadd.s32 152, %v5906_v42  ;;  %v8233_v54 = vmov 0  ;;  %v1280_v48 = vsel %vm8134_vm1, %v1277_v11, %v1279_v18 }
 0x164   : > { %v717_v44 = vand.u32 15, %v555_v23  ;;  %v1281_v62 = vrot.slane %v6151_v58, 1  ;;  %v1283_v22 = vrot.slane %v6172_v13, 1  ;;  %v1278_v12 = vsel %vm8134_vm1, %v1275_v35, %v1277_v11 }
 0x165   : > { %v703_v21 = vand.u32 15, %v553_v33  ;;  %v559_v49 = vadd.s32 200, %v5906_v42  ;;  %v1285_v58 = vrot.slane %v6175_v20, 1  ;;  %v1287_v13 = vrot.slane %v6178_v6, 1 }
 0x166   : > { %vm6481_vm6 = vcmp.lt.s32.totalorder %v717_v44, 15  ;;  %v1284_v1 = vsel %vm8134_vm1, %v1281_v62, %v1283_v22  ;;  %v1282_v60 = vsel %vm8134_vm1, %v1279_v18, %v1281_v62  ;;  %v8237_v46 = vmov 0 }
 0x167   : > { %5216 = vrot.lane.b32.xlu1 %v5215_v9, %s5526_s11  ;;  %v1417_v9 = vsel %vm6451_vm15, %v1276_v16, 0.0  ;;  %vm6466_vm12 = vcmp.lt.s32.totalorder %v703_v21, 15  ;;  %v1421_v33 = vsel %vm6481_vm6, %v1284_v1, 0.0  ;;  %v1288_v35 = vsel %vm8134_vm1, %v1285_v58, %v1287_v13 }
 0x168   : > { %v8234_v54 = vsel %vm6466_vm12, 4294967295, %v8233_v54  ;;  %v5240_v14 = vpack.i.bf16 %v1417_v9, %v1274_v31  ;;  %v745_v21 = vand.u32 15, %v559_v49  ;;  %v1289_v16 = vrot.slane %v6193_v0, 1 }
 0x169   : > { %v5250_v20 = vpack.i.bf16 %v1421_v33, %v1282_v60  ;;  %v1286_v6 = vsel %vm8134_vm1, %v1283_v22, %v1285_v58  ;;  %v8239_v18 = vmov 0  ;;  %v8242_v23 = vrot.slane %v6115_v36, 1 }
 0x16a   : > { %vm6502_vm2 = vcmp.lt.s32.totalorder %v745_v21, 15  ;;  %v1290_v9 = vsel %vm8134_vm1, %v1287_v13, %v1289_v16  ;;  %v8243_v36 = vpack.i.bf16 %v6165_v17, %v5939_v26  ;;  %v5527_v44 = vmov 0  }
 0x16b   : > { %5221 = vrot.lane.b32.xlu1 %v5220_v61, %s5526_s11  ;;  %v1419_v61 = vsel %vm6466_vm12, %v1280_v48, 0.0  ;;  %v8240_v18 = vsel %vm6502_vm2, 4294967295, %v8239_v18  ;;  %v1292_v37 = vsel %vm8134_vm1, %v1289_v16, %v8242_v23  ;;  %vm8137_vm1 = vcmask 195584  }
 0x16c   : > { %8241 = vst [vmem:[#allocation25_spill] sm:$0xff] %v8240_v18  ;;  %v1425_v0 = vsel %vm6502_vm2, %v1292_v37, 0.0  ;;  %v562_v48 = vadd.s32 224, %v5906_v42  ;;  %1738 = vst.msk [vmem:[#allocation2] sm:$0xff] %vm8137_vm1, %v5527_v44  ;;  %vm8140_vm2 = vcmask 130048   ;;  %v536_v37 = vadd.s32 16, %v5906_v42 }
 0x16d   : > { %1739 = vst.msk [vmem:[#allocation2 + $0x88] sm:$0xff] %vm8137_vm1, %v5527_v44  ;;  %3419 = vst.msk [vmem:[#allocation3] sm:$0xff] %vm8137_vm1, %v5527_v44 }
 0x16e   : > { %3420 = vst.msk [vmem:[#allocation3 + $0x88] sm:$0xff] %vm8137_vm1, %v5527_v44  ;;  %v766_v22 = vand.u32 15, %v562_v48  ;;  %vm8247_vm1 = vcmask 64512   ;;  %v8250_v48 = vmov 0 }
 0x16f   : > { %5226 = vrot.lane.b32.xlu1 %v5225_v59, %s5526_s11  ;;  %v5245_v59 = vpack.i.bf16 %v1419_v61, %v1278_v12  ;;  %vm8248_vm5 = vmmov %vm8247_vm1 }
 0x170   : > { %vm6529_vm7 = vcmp.gt.s32.totalorder %v766_v22, 0 }
 0x171   : > { %v1235_v49 = vsel %vm6529_vm7, %v6245_v24, 0.0 }
 0x173   : > { %5231 = vrot.lane.b32.xlu1 %v6120_v47, %s5526_s11  ;;  %v557_v47 = vadd.s32 184, %v5906_v42 }
 0x175   : > { %v731_v56 = vand.u32 15, %v557_v47  ;;  %v5260_v47 = vpack.i.bf16 %v1425_v0, %v1290_v9  ;;  %v570_v9 = vand.u32 15, %v5906_v42  ;;  %v584_v0 = vand.u32 15, %v536_v37 }
 0x177   : > { %5236 = vrot.lane.b32.xlu1 %v6131_v25, %s5526_s11  ;;  %v8235_v25 = vmov 0  ;;  %vm6492_vm0 = vcmp.lt.s32.totalorder %v731_v56, 15 }
 0x178   : > { %v8236_v25 = vsel %vm6481_vm6, 4294967295, %v8235_v25  ;;  %v8238_v46 = vsel %vm6492_vm0, 4294967295, %v8237_v46  ;;  %v1423_v11 = vsel %vm6492_vm0, %v1288_v35, 0.0  ;;  %vm8249_vm6 = vcmask 195584  }
 0x179   : > { %v5255_v31 = vpack.i.bf16 %v1423_v11, %v1286_v6 }
 0x17b   : > { %5241 = vrot.lane.b32.xlu1 %v5240_v14, %s5526_s11 }
 0x17f   : > { %5246 = vrot.lane.b32.xlu1 %v5245_v59, %s5526_s11 }
 0x183   : > { %5251 = vrot.lane.b32.xlu1 %v5250_v20, %s5526_s11 }
 0x187   : > { %5256 = vrot.lane.b32.xlu1 %v5255_v31, %s5526_s11 }
 0x18b   : > { %5261 = vrot.lane.b32.xlu1 %v5260_v47, %s5526_s11 }
 0x18f   : > { %5266 = vrot.lane.b32.xlu1 %v6203_v45, %s5526_s11 }
 0x193   : > { %5271 = vrot.lane.b32.xlu1 %v8243_v36, %s5525_s10  ;;  %v538_v36 = vadd.s32 32, %v5906_v42 }
 0x197   : > { %5281 = vrot.lane.b32.xlu1 %v6226_v41, %s5526_s11  ;;  %v8244_v41 = vmov 0 }
 0x198   : > { %v8245_v41 = vsel %vm6529_vm7, 4294967295, %v8244_v41 }
 0x199   : > { %v5132_v45 = vpop.permute.xlu1 %5131  ;;  %8246 = vst [vmem:[#allocation26_spill] sm:$0xff] %v8245_v41 }
 0x19a   : > { %v5127_v62 = vpop.permute.xlu0 %5126 }
 0x19b   : > { %v5129_v44 = vunpack.i.h.bf16 %v5127_v62  ;;  %v5128_v22 = vunpack.i.l.bf16 %v5127_v62 }
 0x19d   : > { %v6527_v26 = vpop.permute.xlu1 %5136 }
 0x19e   : > { %v5197_v17 = vpop.permute.xlu0 %5196 }
 0x19f   : > { %v5199_v14 = vunpack.i.h.bf16 %v5197_v17  ;;  %v5198_v12 = vunpack.i.l.bf16 %v5197_v17  ;;  %v8253_v17 = vrot.slane %v5936_v19, 7 }
 0x1a1   : > { %v6533_v61 = vpop.permute.xlu1 %5141  ;;  %v1685_v13 = vsel %vm8247_vm1, %v6257_v55, %v5199_v14  ;;  %v1684_v59 = vsel %vm8248_vm5, %v1235_v49, %v5198_v12  ;;  %vm6567_vm1 = vcmp.gt.s32.totalorder %v570_v9, 0  ;;  %vm8254_vm5 = vcmask 1040384  }
 0x1a2   : > { %v5277_v56 = vpop.permute.xlu0 %5276  ;;  %v8251_v48 = vsel %vm6567_vm1, 4294967295, %v8250_v48  ;;  %v1142_v14 = vsel %vm8254_vm5, 0.0, %v8253_v17  ;;  %v8255_v12 = vmov 0  ;;  %vm8260_vm5 = vcmask 130048  }
 0x1a3   : > { %v5279_v1 = vunpack.i.h.bf16 %v5277_v56  ;;  %v5278_v58 = vunpack.i.l.bf16 %v5277_v56  ;;  %8252 = vst [vmem:[#allocation27_spill] sm:$0xff] %v8251_v48  ;;  %v540_v56 = vadd.s32 48, %v5906_v42  ;;  %vm8261_vm0 = vmmov %vm8260_vm5 }
 0x1a5   : > { %v1717_v60 = vsel %vm8140_vm2, %v1684_v59, %v5278_v58  ;;  %v1718_v33 = vsel %vm8140_vm2, %v1685_v13, %v5279_v1  ;;  %v6543_v35 = vpop.permute.xlu1 %5146  ;;  %v1207_v1 = vsel %vm6567_vm1, %v1142_v14, 0.0  ;;  %v598_v58 = vand.u32 15, %v538_v36 }
 0x1a6   : > { %v1735_v21 = vpack.c.bf16 %v1718_v33, %v1717_v60  ;;  %v5134_v60 = vunpack.i.h.bf16 %v5132_v45  ;;  %v5133_v33 = vunpack.i.l.bf16 %v5132_v45  ;;  %vm8258_vm2 = vcmask 64512  }
 0x1a7   : > { %v1656_v62 = vsel %vm8258_vm2, %v1207_v1, %v5128_v22  ;;  %vm8259_vm7 = vmmov %vm8258_vm2  ;;  %v612_v9 = vand.u32 15, %v540_v56  ;;  %vm6590_vm1 = vcmp.gt.s32.totalorder %v598_v58, 0  ;;  %v8262_v45 = vmov 0 }
 0x1a8   : > { %1754 = vst.msk [vmem:[#allocation2 + $0x78] sm:$0xff] %vm8249_vm6, %v1735_v21  ;;  %vm6574_vm6 = vcmp.gt.s32.totalorder %v584_v0, 0  ;;  %v1657_v19 = vsel %vm8259_vm7, %v6222_v3, %v5129_v44  ;;  %v542_v0 = vadd.s32 64, %v5906_v42  ;;  %v8263_v45 = vsel %vm6590_vm1, 4294967295, %v8262_v45  ;;  %vm8265_vm7 = vmmov %vm8258_vm2 }
 0x1a9   : > { %v6546_v16 = vpop.permute.xlu1 %5151  ;;  %v8256_v12 = vsel %vm6574_vm6, 4294967295, %v8255_v12  ;;  %v1209_v36 = vsel %vm6574_vm6, %v6199_v5, 0.0  ;;  %8264 = vst [vmem:[#allocation29_spill] sm:$0xff] %v8263_v45  ;;  %v1659_v44 = vsel %vm8265_vm7, %v6206_v4, %v5134_v60  ;;  %v5139_v56 = vunpack.i.h.bf16 %v6527_v26  ;;  %vm8267_vm6 = vmmov %vm8260_vm5 }
 0x1aa   : > { %8257 = vst [vmem:[#allocation28_spill] sm:$0xff] %v8256_v12  ;;  %v1658_v3 = vsel %vm8258_vm2, %v1209_v36, %v5133_v33  ;;  %v626_v58 = vand.u32 15, %v542_v0  ;;  %v1211_v33 = vsel %vm6590_vm1, %v6229_v2, 0.0  ;;  %vm6606_vm2 = vcmp.gt.s32.totalorder %v612_v9, 0  ;;  %vm8273_vm1 = vmmov %vm8260_vm5 }
 0x1ab   : > { %v8268_v4 = vmov 0 }
 0x1ac   : > { %v8269_v4 = vsel %vm6606_vm2, 4294967295, %v8268_v4 }
 0x1ad   : > { %v6548_v20 = vpop.permute.xlu1 %5156  ;;  %8270 = vst [vmem:[#allocation30_spill] sm:$0xff] %v8269_v4 }
 0x1b1   : > { %v6550_v24 = vpop.permute.xlu1 %5161 }
 0x1b5   : > { %v6552_v6 = vpop.permute.xlu1 %5166 }
 0x1b9   : > { %v6554_v55 = vpop.permute.xlu1 %5171 }
 0x1bd   : > { %v6556_v11 = vpop.permute.xlu1 %5176 }
 0x1c1   : > { %v6558_v23 = vpop.permute.xlu1 %5181 }
 0x1c5   : > { %v6561_v31 = vpop.permute.xlu1 %5186 }
 0x1c9   : > { %v6564_v47 = vpop.permute.xlu1 %5191 }
 0x1cd   : > { %v5202_v49 = vpop.permute.xlu1 %5201 }
 0x1ce   : > { %v5204_v13 = vunpack.i.h.bf16 %v5202_v49  ;;  %v5203_v59 = vunpack.i.l.bf16 %v5202_v49  ;;  %v5138_v49 = vunpack.i.l.bf16 %v6527_v26 }
 0x1d0   : > { %v1689_v21 = vsel %vm8260_vm5, %v1656_v62, %v5203_v59  ;;  %v1690_v37 = vsel %vm8261_vm0, %v1657_v19, %v5204_v13  ;;  %vm8266_vm0 = vcmask 195584   ;;  %v544_v13 = vadd.s32 80, %v5906_v42 }
 0x1d1   : > { %v1721_v17 = vpack.c.bf16 %v1690_v37, %v1689_v21  ;;  %v5207_v41 = vpop.permute.xlu1 %5206  ;;  %v1661_v62 = vsel %vm8265_vm7, %v6232_v57, %v5139_v56  ;;  %v5144_v21 = vunpack.i.h.bf16 %v6533_v61  ;;  %v5143_v37 = vunpack.i.l.bf16 %v6533_v61  ;;  %v8277_v56 = vld [vmem:[#allocation13_spill] sm:$0xff] }
 0x1d2   : > { %v5209_v22 = vunpack.i.h.bf16 %v5207_v41  ;;  %v5208_v14 = vunpack.i.l.bf16 %v5207_v41  ;;  %v640_v9 = vand.u32 15, %v544_v13  ;;  %v1213_v57 = vsel %vm6606_vm2, %v6260_v52, 0.0 }
 0x1d3   : > { %1740 = vst.msk [vmem:[#allocation2 + $0x8] sm:$0xff] %vm8266_vm0, %v1721_v17  ;;  %vm8271_vm0 = vmmov %vm8265_vm7  ;;  %v546_v17 = vadd.s32 96, %v5906_v42  ;;  %vm6622_vm7 = vcmp.gt.s32.totalorder %v626_v58, 0  ;;  %v5148_v13 = vunpack.i.l.bf16 %v6543_v35  ;;  %vm8280_vm2 = vcmask 130048  }
 0x1d4   : > { %v1692_v1 = vsel %vm8260_vm5, %v1659_v44, %v5209_v22  ;;  %v1691_v5 = vsel %vm8267_vm6, %v1658_v3, %v5208_v14  ;;  %v1660_v19 = vsel %vm8271_vm0, %v1211_v33, %v5138_v49  ;;  %vm8272_vm6 = vcmask 195584   ;;  %vm8281_vm15 = vmmov %vm8280_vm2 }
 0x1d5   : > { %v1722_v59 = vpack.c.bf16 %v1692_v1, %v1691_v5  ;;  %v5212_v41 = vpop.permute.xlu1 %5211  ;;  %v8274_v14 = vmov 0  ;;  %v1663_v49 = vsel %vm8271_vm0, %v8277_v56, %v5144_v21  ;;  %v5149_v5 = vunpack.i.h.bf16 %v6543_v35  ;;  %v5448_v35 = vld [vmem:[%s8114_s1 + $0x8] ss:$0 sps:$4 sm:$0xff]  }
 0x1d6   : > { %v5214_v26 = vunpack.i.h.bf16 %v5212_v41  ;;  %v5213_v60 = vunpack.i.l.bf16 %v5212_v41  ;;  %v8275_v14 = vsel %vm6622_vm7, 4294967295, %v8274_v14  ;;  %vm6638_vm12 = vcmp.gt.s32.totalorder %v640_v9, 0 }
 0x1d7   : > { %1741 = vst.msk [vmem:[#allocation2 + $0x10] sm:$0xff] %vm8272_vm6, %v1722_v59  ;;  %8276 = vst [vmem:[#allocation31_spill] sm:$0xff] %v8275_v14  ;;  %v8282_v59 = vmov 0  ;;  %v654_v41 = vand.u32 15, %v546_v17  ;;  %v550_v56 = vadd.s32 128, %v5906_v42 }
 0x1d8   : > { %v1694_v0 = vsel %vm8260_vm5, %v1661_v62, %v5214_v26  ;;  %v1693_v2 = vsel %vm8273_vm1, %v1660_v19, %v5213_v60  ;;  %vm8278_vm1 = vmmov %vm8271_vm0  ;;  %v8283_v59 = vsel %vm6638_vm12, 4294967295, %v8282_v59  ;;  %v8285_v60 = vld [vmem:[#allocation14_spill] sm:$0xff]  ;;  %v548_v19 = vadd.s32 112, %v5906_v42 }
 0x1d9   : > { %v1723_v36 = vpack.c.bf16 %v1694_v0, %v1693_v2  ;;  %v5217_v22 = vpop.permute.xlu1 %5216  ;;  %v1662_v1 = vsel %vm8278_vm1, %v1213_v57, %v5143_v37  ;;  %vm8279_vm5 = vmmov %vm8272_vm6  ;;  %8284 = vst [vmem:[#allocation13_spill] sm:$0xff] %v8283_v59  ;;  %v1215_v62 = vsel %vm6622_vm7, %v8285_v60, 0.0  ;;  %v8286_v2 = vld [vmem:[#allocation15_spill] sm:$0xff]  ;;  %vm6662_vm7 = vcmp.gt.s32.totalorder %v654_v41, 0 }
 0x1da   : > { %v5219_v61 = vunpack.i.h.bf16 %v5217_v22  ;;  %v5218_v3 = vunpack.i.l.bf16 %v5217_v22  ;;  %v6626_v44 = vld [vmem:[#allocation2 + $0x8] sm:$0xff]  ;;  %v5153_v22 = vunpack.i.l.bf16 %v6546_v16 }
 0x1db   : > { %1742 = vst.msk [vmem:[#allocation2 + $0x18] sm:$0xff] %vm8272_vm6, %v1723_v36  ;;  %4654 = vmatprep.mubr.msk.bf16.mxu0 %vm8279_vm5, %v6626_v44  ;;  %v5154_v36 = vunpack.i.h.bf16 %v6546_v16  ;;  %vm8291_vm6 = vcmask 130048  }
 0x1dc   : > { %v1696_v52 = vsel %vm8280_vm2, %v1663_v49, %v5219_v61  ;;  %v1695_v58 = vsel %vm8281_vm15, %v1662_v1, %v5218_v3  ;;  %vm8287_vm15 = vmmov %vm8271_vm0  ;;  %v8293_v3 = vmov 0 }
 0x1dd   : > { %v1724_v33 = vpack.c.bf16 %v1696_v52, %v1695_v58  ;;  %v5222_v26 = vpop.permute.xlu1 %5221  ;;  %v1665_v9 = vsel %vm8287_vm15, %v8286_v2, %v5149_v5  ;;  %vm8288_vm2 = vmmov %vm8271_vm0  ;;  %v8294_v3 = vsel %vm6662_vm7, 4294967295, %v8293_v3  ;;  %vm8296_vm15 = vcmask 1043456   ;;  %v6672_v5 = vld [vmem:[%s8114_s1 + $0x18] sm:$0xff]  }
 0x1de   : > { %v5224_v21 = vunpack.i.h.bf16 %v5222_v26  ;;  %v5223_v37 = vunpack.i.l.bf16 %v5222_v26  ;;  %v6649_v0 = vld [vmem:[#allocation2 + $0x10] sm:$0xff]  ;;  %v1664_v17 = vsel %vm8288_vm2, %v1215_v62, %v5148_v13  ;;  %vm8289_vm0 = vmmov %vm8279_vm5  ;;  %8295 = vst [vmem:[#allocation14_spill] sm:$0xff] %v8294_v3  ;;  %v668_v13 = vand.u32 15, %v548_v19 }
 0x1df   : > { %1743 = vst.msk [vmem:[#allocation2 + $0x20] sm:$0xff] %vm8289_vm0, %v1724_v33  ;;  %vm8290_vm1 = vmmov %vm8289_vm0  ;;  %v8298_v33 = vld [vmem:[#allocation16_spill] sm:$0xff]  ;;  %vm8299_vm0 = vcmask 64512   ;;  %v5158_v62 = vunpack.i.l.bf16 %v6548_v20 }
 0x1e0   : > { %4655 = vmatmul.mubr.msk.bf16.vlgmr.msra.gmra.mrb[0].mxu0 %vm8290_vm1, %v6649_v0  ;;  %v1698_v57 = vsel %vm8291_vm6, %v1665_v9, %v5224_v21  ;;  %vm8292_vm5 = vmmov %vm8291_vm6  ;;  %v1667_v26 = vsel %vm8299_vm0, %v8298_v33, %v5154_v36  ;;  %vm8301_vm6 = vcmask 195584   ;;  %v682_v21 = vand.u32 15, %v550_v56 }
 0x1e1   : > { %v1697_v61 = vsel %vm8292_vm5, %v1664_v17, %v5223_v37  ;;  %4687 = vmatpush3.bf16.msra.mxu0 %v6428_v29  ;;  %v5227_v1 = vpop.permute.xlu1 %5226  ;;  %vm8297_vm2 = vmmov %vm8296_vm15  ;;  %v1217_v29 = vsel %vm6638_vm12, %v6288_v30, 0.0  ;;  %v552_v37 = vadd.s32 144, %v5906_v42  ;;  %v8305_v17 = vmov 0 }
 0x1e2   : > { %v1725_v49 = vpack.c.bf16 %v1698_v57, %v1697_v61  ;;  %4995 = vmatprep.subr.msk.bf16.mxu0 %vm8296_vm15, %v5448_v35  ;;  %v2015_v16 = vsel %vm8297_vm2, %v5448_v35, 0  ;;  %v5229_v52 = vunpack.i.h.bf16 %v5227_v1  ;;  %v5228_v58 = vunpack.i.l.bf16 %v5227_v1  ;;  %v6677_v41 = vld [vmem:[#allocation2 + $0x18] sm:$0xff]  ;;  %vm8300_vm1 = vmmov %vm8299_vm0  ;;  %v8308_v61 = vld [vmem:[#allocation17_spill] sm:$0xff] }
 0x1e3   : > { %v1666_v60 = vsel %vm8300_vm1, %v1217_v29, %v5153_v22  ;;  %v5159_v35 = vunpack.i.h.bf16 %v6548_v20  ;;  %vm8302_vm5 = vmmov %vm8301_vm6  ;;  %vm8303_vm15 = vcmask 130048   ;;  %v1219_v20 = vsel %vm6662_vm7, %v6296_v50, 0.0 }
 0x1e4   : > { %1744 = vst.msk [vmem:[#allocation2 + $0x28] sm:$0xff] %vm8301_vm6, %v1725_v49  ;;  %4658 = vmatprep.mubr.msk.bf16.mxu0 %vm8302_vm5, %v6677_v41  ;;  %v1700_v30 = vsel %vm8303_vm15, %v1667_v26, %v5229_v52  ;;  %vm8304_vm2 = vmmov %vm8303_vm15  ;;  %vm6694_vm0 = vcmp.gt.s32.totalorder %v668_v13, 0  ;;  %v5164_v1 = vunpack.i.h.bf16 %v6550_v24  ;;  %v696_v13 = vand.u32 15, %v552_v37  ;;  %v8312_v26 = vld [vmem:[#allocation18_spill] sm:$0xff] }
 0x1e5   : > { %v1699_v19 = vsel %vm8304_vm2, %v1666_v60, %v5228_v58  ;;  %4689 = vmatpush3.bf16.msra.mxu0 %v2015_v16  ;;  %v5232_v9 = vpop.permute.xlu1 %5231  ;;  %v8306_v17 = vsel %vm6694_vm0, 4294967295, %v8305_v17  ;;  %v1669_v56 = vsel %vm8300_vm1, %v8308_v61, %v5159_v35  ;;  %vm8309_vm6 = vmmov %vm8300_vm1  ;;  %v5163_v16 = vunpack.i.l.bf16 %v6550_v24 }
 0x1e6   : > { %v1726_v2 = vpack.c.bf16 %v1700_v30, %v1699_v19  ;;  %4722 = vmatprep.subr.bf16.mxu0 %v6672_v5  ;;  %8307 = vst [vmem:[#allocation15_spill] sm:$0xff] %v8306_v17  ;;  %v5234_v36 = vunpack.i.h.bf16 %v5232_v9  ;;  %v5233_v22 = vunpack.i.l.bf16 %v5232_v9  ;;  %v6698_v57 = vld [vmem:[#allocation2 + $0x20] sm:$0xff]  ;;  %v1668_v49 = vsel %vm8309_vm6, %v1219_v20, %v5158_v62  ;;  %vm8310_vm15 = vmmov %vm8302_vm5 }
 0x1e7   : > { %vm8311_vm7 = vmmov %vm8304_vm2  ;;  %v554_v52 = vadd.s32 160, %v5906_v42  ;;  %v1221_v60 = vsel %vm6694_vm0, %v8312_v26, 0.0  ;;  %vm6714_vm1 = vcmp.gt.s32.totalorder %v682_v21, 0  ;;  %v8313_v24 = vmov 0  ;;  %v8316_v19 = vld [vmem:[#allocation19_spill] sm:$0xff] }
 0x1e8   : > { %1745 = vst.msk [vmem:[#allocation2 + $0x30] sm:$0xff] %vm8302_vm5, %v1726_v2  ;;  %4659 = vmatmul.mubr.msk.bf16.gmra.mrb[4].mxu0 %vm8310_vm15, %v6698_v57  ;;  %v1702_v50 = vsel %vm8304_vm2, %v1669_v56, %v5234_v36  ;;  %v1701_v29 = vsel %vm8311_vm7, %v1668_v49, %v5233_v22  ;;  %v8314_v24 = vsel %vm6714_vm1, 4294967295, %v8313_v24  ;;  %v1671_v2 = vsel %vm8309_vm6, %v8316_v19, %v5164_v1  ;;  %vm8317_vm7 = vmmov %vm8309_vm6  ;;  %v8320_v1 = vld [vmem:[#allocation20_spill] sm:$0xff] }
 0x1e9   : > { %v1727_v58 = vpack.c.bf16 %v1702_v50, %v1701_v29  ;;  %v5237_v33 = vpop.permute.xlu1 %5236  ;;  %8315 = vst [vmem:[#allocation16_spill] sm:$0xff] %v8314_v24  ;;  %v1670_v37 = vsel %vm8317_vm7, %v1221_v60, %v5163_v16  ;;  %v5169_v9 = vunpack.i.h.bf16 %v6552_v6  ;;  %v5168_v20 = vunpack.i.l.bf16 %v6552_v6  ;;  %vm8318_vm15 = vmmov %vm8302_vm5 }
 0x1ea   : > { %v5239_v35 = vunpack.i.h.bf16 %v5237_v33  ;;  %v5238_v62 = vunpack.i.l.bf16 %v5237_v33  ;;  %vm8319_vm0 = vmmov %vm8304_vm2  ;;  %v710_v22 = vand.u32 15, %v554_v52  ;;  %v556_v61 = vadd.s32 176, %v5906_v42  ;;  %v8324_v33 = vld [vmem:[#allocation21_spill] sm:$0xff] }
 0x1eb   : > { %v6718_v30 = vld [vmem:[#allocation2 + $0x28] sm:$0xff]  ;;  %1746 = vst.msk [vmem:[#allocation2 + $0x38] sm:$0xff] %vm8302_vm5, %v1727_v58  ;;  %v1223_v16 = vsel %vm6714_vm1, %v8320_v1, 0.0  ;;  %vm6734_vm6 = vcmp.gt.s32.totalorder %v696_v13, 0  ;;  %v8321_v6 = vmov 0  ;;  %v1673_v26 = vsel %vm8317_vm7, %v8324_v33, %v5169_v9  ;;  %vm8327_vm1 = vmmov %vm8304_vm2 }
 0x1ec   : > { %4662 = vmatprep.mubr.msk.bf16.mxu0 %vm8318_vm15, %v6718_v30  ;;  %v1704_v21 = vsel %vm8304_vm2, %v1671_v2, %v5239_v35  ;;  %v1703_v36 = vsel %vm8319_vm0, %v1670_v37, %v5238_v62  ;;  %v8322_v6 = vsel %vm6734_vm6, 4294967295, %v8321_v6  ;;  %vm8325_vm0 = vmmov %vm8317_vm7  ;;  %v5174_v60 = vunpack.i.h.bf16 %v6554_v55 }
 0x1ed   : > { %v1728_v56 = vpack.c.bf16 %v1704_v21, %v1703_v36  ;;  %v5242_v49 = vpop.permute.xlu1 %5241  ;;  %8323 = vst [vmem:[#allocation17_spill] sm:$0xff] %v8322_v6  ;;  %v1672_v52 = vsel %vm8325_vm0, %v1223_v16, %v5168_v20  ;;  %v5173_v35 = vunpack.i.l.bf16 %v6554_v55  ;;  %vm8326_vm15 = vmmov %vm8302_vm5  ;;  %v724_v19 = vand.u32 15, %v556_v61 }
 0x1ee   : > { %v5244_v50 = vunpack.i.h.bf16 %v5242_v49  ;;  %v5243_v29 = vunpack.i.l.bf16 %v5242_v49  ;;  %v558_v2 = vadd.s32 192, %v5906_v42  ;;  %v1225_v20 = vsel %vm6734_vm6, %v6333_v7, 0.0  ;;  %vm8333_vm6 = vmmov %vm8304_vm2 }
 0x1ef   : > { %v6738_v58 = vld [vmem:[#allocation2 + $0x30] sm:$0xff]  ;;  %1747 = vst.msk [vmem:[#allocation2 + $0x40] sm:$0xff] %vm8302_vm5, %v1728_v56  ;;  %vm6754_vm7 = vcmp.gt.s32.totalorder %v710_v22, 0  ;;  %v8328_v55 = vmov 0  ;;  %v1675_v49 = vsel %vm8325_vm0, %v6336_v43, %v5174_v60  ;;  %v5179_v1 = vunpack.i.h.bf16 %v6556_v11 }
 0x1f0   : > { %4663 = vmatmul.mubr.msk.bf16.gmra.mrb[8].mxu0 %vm8326_vm15, %v6738_v58  ;;  %v1706_v13 = vsel %vm8304_vm2, %v1673_v26, %v5244_v50  ;;  %v1705_v62 = vsel %vm8327_vm1, %v1672_v52, %v5243_v29  ;;  %v8329_v55 = vsel %vm6754_vm7, 4294967295, %v8328_v55  ;;  %vm8331_vm1 = vmmov %vm8325_vm0  ;;  %v5178_v16 = vunpack.i.l.bf16 %v6556_v11  ;;  %v8337_v26 = vld [vmem:[#allocation22_spill] sm:$0xff] }
 0x1f1   : > { %v1729_v37 = vpack.c.bf16 %v1706_v13, %v1705_v62  ;;  %v5247_v9 = vpop.permute.xlu1 %5246  ;;  %8330 = vst [vmem:[#allocation18_spill] sm:$0xff] %v8329_v55  ;;  %v1674_v61 = vsel %vm8331_vm1, %v1225_v20, %v5173_v35  ;;  %vm8332_vm15 = vmmov %vm8302_vm5  ;;  %vm6770_vm12 = vcmp.gt.s32.totalorder %v724_v19, 0  ;;  %v8334_v50 = vmov 0  ;;  %v8338_v62 = vld [vmem:[#allocation23_spill] sm:$0xff] }
 0x1f2   : > { %v5249_v21 = vunpack.i.h.bf16 %v5247_v9  ;;  %v5248_v36 = vunpack.i.l.bf16 %v5247_v9  ;;  %v6758_v56 = vld [vmem:[#allocation2 + $0x38] sm:$0xff]  ;;  %v8335_v50 = vsel %vm6770_vm12, 4294967295, %v8334_v50  ;;  %v738_v43 = vand.u32 15, %v558_v2  ;;  %vm8340_vm1 = vmmov %vm8302_vm5 }
 0x1f3   : > { %1748 = vst.msk [vmem:[#allocation2 + $0x48] sm:$0xff] %vm8302_vm5, %v1729_v37  ;;  %4666 = vmatprep.mubr.msk.bf16.mxu0 %vm8332_vm15, %v6758_v56  ;;  %8336 = vst [vmem:[#allocation19_spill] sm:$0xff] %v8335_v50  ;;  %v1227_v11 = vsel %vm6754_vm7, %v8337_v26, 0.0  ;;  %v560_v52 = vadd.s32 208, %v5906_v42  ;;  %v1677_v37 = vsel %vm8325_vm0, %v8338_v62, %v5179_v1  ;;  %v5184_v9 = vunpack.i.h.bf16 %v6558_v23  ;;  %v8346_v1 = vld [vmem:[#allocation24_spill] sm:$0xff] }
 0x1f4   : > { %v1708_v7 = vsel %vm8304_vm2, %v1675_v49, %v5249_v21  ;;  %v1707_v22 = vsel %vm8333_vm6, %v1674_v61, %v5248_v36  ;;  %vm8339_vm6 = vmmov %vm8325_vm0  ;;  %v5183_v2 = vunpack.i.l.bf16 %v6558_v23  ;;  %vm6790_vm7 = vcmp.gt.s32.totalorder %v738_v43, 0 }
 0x1f5   : > { %v1730_v29 = vpack.c.bf16 %v1708_v7, %v1707_v22  ;;  %v5252_v33 = vpop.permute.xlu1 %5251  ;;  %v1676_v19 = vsel %vm8339_vm6, %v1227_v11, %v5178_v16  ;;  %vm8341_vm5 = vmmov %vm8340_vm1  ;;  %v8343_v36 = vmov 0  ;;  %v1229_v16 = vsel %vm6770_vm12, %v8346_v1, 0.0 }
 0x1f6   : > { %v5254_v60 = vunpack.i.h.bf16 %v5252_v33  ;;  %v5253_v35 = vunpack.i.l.bf16 %v5252_v33  ;;  %v6778_v13 = vld [vmem:[#allocation2 + $0x40] sm:$0xff]  ;;  %vm8342_vm15 = vmmov %vm8304_vm2  ;;  %v8344_v36 = vsel %vm6790_vm7, 4294967295, %v8343_v36  ;;  %v752_v23 = vand.u32 15, %v560_v52 }
 0x1f7   : > { %1749 = vst.msk [vmem:[#allocation2 + $0x50] sm:$0xff] %vm8340_vm1, %v1730_v29  ;;  %8345 = vst [vmem:[#allocation20_spill] sm:$0xff] %v8344_v36  ;;  %v1679_v33 = vsel %vm8325_vm0, %v6357_v63, %v5184_v9  ;;  %v5189_v43 = vunpack.i.h.bf16 %v6561_v31  ;;  %v5188_v11 = vunpack.i.l.bf16 %v6561_v31  ;;  %v1231_v63 = vsel %vm6790_vm7, %v6362_v8, 0.0 }
 0x1f8   : > { %4667 = vmatmul.mubr.msk.bf16.gmra.mrb[12].mxu0 %vm8341_vm5, %v6778_v13  ;;  %v1710_v20 = vsel %vm8342_vm15, %v1677_v37, %v5254_v60  ;;  %v1709_v21 = vsel %vm8304_vm2, %v1676_v19, %v5253_v35  ;;  %vm8347_vm6 = vmmov %vm8325_vm0  ;;  %v564_v37 = vadd.s32 240, %v5906_v42  ;;  %vm6813_vm0 = vcmp.gt.s32.totalorder %v752_v23, 0 }
 0x1f9   : > { %v1731_v49 = vpack.c.bf16 %v1710_v20, %v1709_v21  ;;  %v5257_v61 = vpop.permute.xlu1 %5256  ;;  %v1678_v26 = vsel %vm8347_vm6, %v1229_v16, %v5183_v2  ;;  %vm8348_vm5 = vmmov %vm8340_vm1  ;;  %v8350_v19 = vmov 0  ;;  %v1681_v20 = vsel %vm8347_vm6, %v6365_v28, %v5189_v43 }
 0x1fa   : > { %v5259_v7 = vunpack.i.h.bf16 %v5257_v61  ;;  %v5258_v22 = vunpack.i.l.bf16 %v5257_v61  ;;  %v6797_v29 = vld [vmem:[#allocation2 + $0x48] sm:$0xff]  ;;  %vm8349_vm15 = vmmov %vm8304_vm2  ;;  %v8351_v19 = vsel %vm6813_vm0, 4294967295, %v8350_v19  ;;  %v5193_v42 = vunpack.i.l.bf16 %v6564_v47 }
 0x1fb   : > { %1750 = vst.msk [vmem:[#allocation2 + $0x58] sm:$0xff] %vm8340_vm1, %v1731_v49  ;;  %4670 = vmatprep.mubr.msk.bf16.mxu0 %vm8348_vm5, %v6797_v29  ;;  %8352 = vst [vmem:[#allocation21_spill] sm:$0xff] %v8351_v19  ;;  %v5194_v49 = vunpack.i.h.bf16 %v6564_v47  ;;  %v1233_v28 = vsel %vm6813_vm0, %v6371_v53, 0.0 }
 0x1fc   : > { %v1712_v52 = vsel %vm8349_vm15, %v1679_v33, %v5259_v7  ;;  %v1711_v60 = vsel %vm8304_vm2, %v1678_v26, %v5258_v22  ;;  %vm8353_vm1 = vmmov %vm8347_vm6  ;;  %v780_v26 = vand.u32 15, %v564_v37 }
 0x1fd   : > { %v1732_v35 = vpack.c.bf16 %v1712_v52, %v1711_v60  ;;  %v5262_v62 = vpop.permute.xlu1 %5261  ;;  %v1680_v21 = vsel %vm8353_vm1, %v1231_v63, %v5188_v11  ;;  %vm8354_vm15 = vmmov %vm8348_vm5  ;;  %v1682_v33 = vsel %vm8353_vm1, %v1233_v28, %v5193_v42 }
 0x1fe   : > { %v5264_v31 = vunpack.i.h.bf16 %v5262_v62  ;;  %v5263_v9 = vunpack.i.l.bf16 %v5262_v62  ;;  %v6817_v2 = vld [vmem:[#allocation2 + $0x50] sm:$0xff]  ;;  %vm8355_vm7 = vmmov %vm8304_vm2  ;;  %vm6843_vm12 = vcmp.gt.s32.totalorder %v780_v26, 0 }
 0x1ff   : > { %1751 = vst.msk [vmem:[#allocation2 + $0x60] sm:$0xff] %vm8348_vm5, %v1732_v35  ;;  %vm8356_vm6 = vmmov %vm8353_vm1  ;;  %v8360_v35 = vmov 0  ;;  %v1237_v37 = vsel %vm6843_vm12, %v6381_v10, 0.0  ;;  %v1771_v10 = vld [vmem:[#allocation2 + $0x78] sm:$0xff] }
 0x200   : > { %4671 = vmatmul.mubr.msk.bf16.gmra.mrb[16].mxu0 %vm8354_vm15, %v6817_v2  ;;  %v1714_v8 = vsel %vm8304_vm2, %v1681_v20, %v5264_v31  ;;  %v1713_v61 = vsel %vm8355_vm7, %v1680_v21, %v5263_v9  ;;  %v1683_v47 = vsel %vm8356_vm6, %v6376_v32, %v5194_v49  ;;  %vm8357_vm15 = vmmov %vm8348_vm5  ;;  %v8361_v35 = vsel %vm6843_vm12, 4294967295, %v8360_v35 }
 0x201   : > { %v1733_v1 = vpack.c.bf16 %v1714_v8, %v1713_v61  ;;  %v5267_v16 = vpop.permute.xlu1 %5266  ;;  %vm8358_vm7 = vmmov %vm8304_vm2  ;;  %8362 = vst [vmem:[#allocation22_spill] sm:$0xff] %v8361_v35 }
 0x202   : > { %v5269_v23 = vunpack.i.h.bf16 %v5267_v16  ;;  %v5268_v7 = vunpack.i.l.bf16 %v5267_v16  ;;  %v6832_v22 = vld [vmem:[#allocation2 + $0x58] sm:$0xff]  ;;  %vm8359_vm0 = vmmov %vm8348_vm5  ;;  %v1756_v16 = vld [vmem:[#allocation2] sm:$0xff] }
 0x203   : > { %1752 = vst.msk [vmem:[#allocation2 + $0x68] sm:$0xff] %vm8348_vm5, %v1733_v1  ;;  %4674 = vmatprep.mubr.msk.bf16.mxu0 %vm8357_vm15, %v6832_v22  ;;  %vm8363_vm6 = vmmov %vm8359_vm0 }
 0x204   : > { %v1716_v43 = vsel %vm8358_vm7, %v1683_v47, %v5269_v23  ;;  %v1715_v11 = vsel %vm8304_vm2, %v1682_v33, %v5268_v7  ;;  %vm8365_vm15 = vmmov %vm8304_vm2 }
 0x205   : > { %v1734_v53 = vpack.c.bf16 %v1716_v43, %v1715_v11  ;;  %v5272_v52 = vpop.permute.xlu1 %5271  ;;  %vm8366_vm7 = vmmov %vm8304_vm2 }
 0x206   : > { %v1768_v60 = vld [vmem:[#allocation2 + $0x60] sm:$0xff]  ;;  %v5274_v32 = vunpack.i.h.bf16 %v5272_v52  ;;  %v5273_v62 = vunpack.i.l.bf16 %v5272_v52  ;;  %vm8367_vm2 = vmmov %vm8348_vm5 }
 0x207   : > { %1753 = vst.msk [vmem:[#allocation2 + $0x70] sm:$0xff] %vm8359_vm0, %v1734_v53  ;;  %vm8364_vm0 = vmmov %vm8353_vm1 }
 0x208   : > { %4675 = vmatmul.mubr.msk.bf16.gmra.mrb[20].mxu0 %vm8363_vm6, %v1768_v60  ;;  %v1687_v21 = vsel %vm8353_vm1, %v6391_v38, %v5274_v32  ;;  %v1686_v49 = vsel %vm8364_vm0, %v1237_v37, %v5273_v62  ;;  %vm8368_vm6 = vmmov %vm8367_vm2  ;;  %v5450_v38 = vld [vmem:[%s8114_s1 + $0x20] ss:$0 sps:$4 sm:$0xff]  }
 0x209   : > { %v5282_v63 = vpop.permute.xlu1 %5281  ;;  %vm8369_vm12 = vmmov %vm8367_vm2 }
 0x20a   : > { %v5284_v31 = vunpack.i.h.bf16 %v5282_v63  ;;  %v5283_v9 = vunpack.i.l.bf16 %v5282_v63  ;;  %v1769_v20 = vld [vmem:[#allocation2 + $0x68] sm:$0xff]  ;;  %vm8370_vm1 = vmmov %vm8367_vm2 }
 0x20b   : > { %4678 = vmatprep.mubr.msk.bf16.mxu0 %vm8348_vm5, %v1769_v20  ;;  %vm8371_vm0 = vmmov %vm8370_vm1 }
 0x20c   : > { %v1719_v42 = vsel %vm8365_vm15, %v1686_v49, %v5283_v9  ;;  %v1720_v8 = vsel %vm8366_vm7, %v1687_v21, %v5284_v31  ;;  %vm8372_vm5 = vmmov %vm8371_vm0  ;;  %vm8374_vm7 = vcmask 1043456  }
 0x20d   : > { %v1736_v61 = vpack.c.bf16 %v1720_v8, %v1719_v42  ;;  %vm8373_vm15 = vmmov %vm8371_vm0 }
 0x20e   : > { %v1770_v1 = vld [vmem:[#allocation2 + $0x70] sm:$0xff]  ;;  %vm8386_vm3 = vmmov %vm8371_vm0 }
 0x20f   : > { %1755 = vst.msk [vmem:[#allocation2 + $0x80] sm:$0xff] %vm8367_vm2, %v1736_v61  ;;  %vm8376_vm2 = vmmov %vm8371_vm0 }
 0x210   : > { %4679 = vmatmul.mubr.msk.bf16.gmra.mrb[24].mxu0 %vm8368_vm6, %v1770_v1  ;;  %vm8377_vm6 = vmmov %vm8371_vm0 }
 0x211   : > { %4682 = vmatprep.mubr.msk.bf16.mxu0 %vm8369_vm12, %v1771_v10  ;;  %vm8375_vm12 = vmmov %vm8374_vm7 }
 0x212   : > { %v2256_v23 = vsel %vm8375_vm12, %v5450_v38, 0  ;;  %vm8382_vm12 = vmmov %vm8371_vm0 }
 0x216   : > { %v1775_v28 = vld [vmem:[#allocation2 + $0x80] sm:$0xff] }
 0x218   : > { %4683 = vmatmul.mubr.msk.bf16.gmra.mrb[28].mxu0 %vm8370_vm1, %v1775_v28  ;;  %vm8378_vm1 = vmmov %vm8371_vm0 }
 0x219   : > { %4690 = vmatprep.mubr.msk.bf16.mxu0 %vm8371_vm0, %v1756_v16 }
 0x220   : > { %4691 = vmatmul.mubr.msk.bf16.vlgmr.msra.gmra.mrb[0].mxu0 %vm8372_vm5, %v6626_v44  ;;  %vm8379_vm5 = vmmov %vm8371_vm0  ;;  %v2193_v44 = vld [vmem:[#allocation2 + $0x88] sm:$0xff] }
 0x221   : > { %4723 = vmatpush3.bf16.msra.mxu0 %v6672_v5  ;;  %4694 = vmatprep.mubr.msk.bf16.mxu0 %vm8373_vm15, %v6649_v0  ;;  %vm8380_vm15 = vmmov %vm8371_vm0 }
 0x222   : > { %4996 = vmatprep.subr.msk.bf16.mxu0 %vm8374_vm7, %v5450_v38  ;;  %vm8381_vm7 = vmmov %vm8371_vm0 }
 0x225   : > { %4725 = vmatpush3.bf16.msra.mxu0 %v2256_v23 }
 0x228   : > { %4695 = vmatmul.mubr.msk.bf16.gmra.mrb[4].mxu0 %vm8376_vm2, %v6677_v41  ;;  %vm8383_vm2 = vmmov %vm8371_vm0 }
 0x229   : > { %4698 = vmatprep.mubr.msk.bf16.mxu0 %vm8377_vm6, %v6698_v57  ;;  %vm8384_vm6 = vmmov %vm8371_vm0 }
 0x230   : > { %4699 = vmatmul.mubr.msk.bf16.gmra.mrb[8].mxu0 %vm8378_vm1, %v6718_v30  ;;  %vm8385_vm1 = vmmov %vm8371_vm0 }
 0x231   : > { %4702 = vmatprep.mubr.msk.bf16.mxu0 %vm8371_vm0, %v6738_v58 }
 0x238   : > { %4703 = vmatmul.mubr.msk.bf16.gmra.mrb[12].mxu0 %vm8379_vm5, %v6758_v56  ;;  %vm8387_vm5 = vmmov %vm8371_vm0 }
 0x239   : > { %4706 = vmatprep.mubr.msk.bf16.mxu0 %vm8380_vm15, %v6778_v13  ;;  %vm8388_vm15 = vmmov %vm8371_vm0 }
 0x240   : > { %4707 = vmatmul.mubr.msk.bf16.gmra.mrb[16].mxu0 %vm8381_vm7, %v6797_v29  ;;  %vm8389_vm7 = vmmov %vm8371_vm0 }
 0x241   : > { %4710 = vmatprep.mubr.msk.bf16.mxu0 %vm8382_vm12, %v6817_v2  ;;  %vm8390_vm12 = vmmov %vm8371_vm0 }
 0x248   : > { %4711 = vmatmul.mubr.msk.bf16.gmra.mrb[20].mxu0 %vm8383_vm2, %v6832_v22  ;;  %vm8391_vm2 = vmmov %vm8371_vm0 }
 0x249   : > { %4714 = vmatprep.mubr.msk.bf16.mxu0 %vm8384_vm6, %v1768_v60  ;;  %vm8392_vm6 = vmmov %vm8371_vm0 }
 0x250   : > { %4715 = vmatmul.mubr.msk.bf16.gmra.mrb[24].mxu0 %vm8385_vm1, %v1769_v20  ;;  %vm8394_vm1 = vmmov %vm8371_vm0 }
 0x251   : > { %4718 = vmatprep.mubr.msk.bf16.mxu0 %vm8371_vm0, %v1770_v1 }
 0x258   : > { %4719 = vmatmul.mubr.msk.bf16.gmra.mrb[28].mxu0 %vm8386_vm3, %v1771_v10  ;;  %vm8393_vm3 = vmmov %vm8371_vm0 }
 0x259   : > { %4726 = vmatprep.mubr.msk.bf16.mxu0 %vm8387_vm5, %v6649_v0  ;;  %vm8395_vm5 = vmmov %vm8371_vm0  ;;  %v6923_v0 = vld [vmem:[%s8115_s2] ss:$0 sm:$0xff] }
 0x260   : > { %4727 = vmatmul.mubr.msk.bf16.vlgmr.msra.gmra.mrb[0].mxu0 %vm8388_vm15, %v6677_v41  ;;  %vm8396_vm15 = vmmov %vm8371_vm0 }
 0x261   : > { %4730 = vmatprep.mubr.msk.bf16.mxu0 %vm8389_vm7, %v6698_v57  ;;  %vm8397_vm7 = vmmov %vm8371_vm0 }
 0x268   : > { %4731 = vmatmul.mubr.msk.bf16.gmra.mrb[4].mxu0 %vm8390_vm12, %v6718_v30  ;;  %vm8398_vm12 = vmmov %vm8371_vm0 }
 0x269   : > { %4734 = vmatprep.mubr.msk.bf16.mxu0 %vm8391_vm2, %v6738_v58  ;;  %vm8399_vm2 = vmmov %vm8371_vm0 }
 0x270   : > { %4735 = vmatmul.mubr.msk.bf16.gmra.mrb[8].mxu0 %vm8392_vm6, %v6758_v56  ;;  %vm8400_vm6 = vmmov %vm8371_vm0 }
 0x271   : > { %4738 = vmatprep.mubr.msk.bf16.mxu0 %vm8393_vm3, %v6778_v13  ;;  %vm8401_vm3 = vmmov %vm8371_vm0 }
 0x278   : > { %4739 = vmatmul.mubr.msk.bf16.gmra.mrb[12].mxu0 %vm8394_vm1, %v6797_v29 }
 0x279   : > { %4742 = vmatprep.mubr.msk.bf16.mxu0 %vm8371_vm0, %v6817_v2 }
 0x280   : > { %4743 = vmatmul.mubr.msk.bf16.gmra.mrb[16].mxu0 %vm8395_vm5, %v6832_v22 }
 0x281   : > { %4746 = vmatprep.mubr.msk.bf16.mxu0 %vm8396_vm15, %v1768_v60 }
 0x288   : > { %4747 = vmatmul.mubr.msk.bf16.gmra.mrb[20].mxu0 %vm8397_vm7, %v1769_v20  ;;  %vm8402_vm7 = vcmask 64512  }
 0x289   : > { %4750 = vmatprep.mubr.msk.bf16.mxu0 %vm8398_vm12, %v1770_v1  ;;  %vm8403_vm12 = vmmov %vm8402_vm7 }
 0x290   : > { %4751 = vmatmul.mubr.msk.bf16.gmra.mrb[24].mxu0 %vm8399_vm2, %v1771_v10  ;;  %vm8404_vm2 = vmmov %vm8402_vm7 }
 0x291   : > { %4754 = vmatprep.mubr.msk.bf16.mxu0 %vm8400_vm6, %v1775_v28  ;;  %vm8405_vm6 = vmmov %vm8404_vm2 }
 0x298   : > { %4755 = vmatmul.mubr.msk.bf16.gmra.mrb[28].mxu0 %vm8401_vm3, %v2193_v44 }
 0x333   : > { %v4728_v5 = vpop.f32.mrb[0].mxu0 }
 0x334   : > { %v2460_v41 = vadd.f32 %v4728_v5, %v6923_v0  ;;  %v2292_v57 = vpop.f32.mrb[1].mxu0 }
 0x335   : > { %v2458_v30 = vadd.f32 %v6923_v0, %v2292_v57  ;;  %v4729_v58 = vpop.f32.mrb[2].mxu0 }
 0x336   : > { %vm2492_vm1 = vcmp.gt.f32.partialorder %v2460_v41, 0.0  ;;  %v2524_v56 = vmul.f32 0.2, %v2460_v41  ;;  %v2461_v13 = vadd.f32 %v4729_v58, %v6923_v0  ;;  %v2295_v29 = vpop.f32.mrb[3].mxu0 }
 0x337   : > { %vm2490_vm0 = vcmp.gt.f32.partialorder %v2458_v30, 0.0  ;;  %v2522_v2 = vmul.f32 0.2, %v2458_v30  ;;  %v2459_v7 = vadd.f32 %v6923_v0, %v2295_v29 }
 0x338   : > { %v6929_v22 = vsel %vm2492_vm1, %v2460_v41, %v2524_v56  ;;  %vm2493_vm5 = vcmp.gt.f32.partialorder %v2461_v13, 0.0  ;;  %v2525_v47 = vmul.f32 0.2, %v2461_v13  ;;  %vm8406_vm1 = vmmov %vm8404_vm2 }
 0x339   : > { %v6931_v33 = vsel %vm2490_vm0, %v2458_v30, %v2522_v2  ;;  %vm2491_vm15 = vcmp.gt.f32.partialorder %v2459_v7, 0.0  ;;  %v2523_v11 = vmul.f32 0.2, %v2459_v7  ;;  %v2589_v53 = vsel %vm8402_vm7, %v6929_v22, 0.0 }
 0x33a   : > { %v2655_v26 = vmul.f32 %v6931_v33, %v6931_v33  ;;  %v6935_v43 = vsel %vm2493_vm5, %v2461_v13, %v2525_v47  ;;  %v2657_v52 = vmul.f32 %v6929_v22, %v6929_v22  ;;  %v2586_v32 = vsel %vm8403_vm12, %v6931_v33, 0.0  ;;  %vm8407_vm5 = vmmov %vm8406_vm1 }
 0x33b   : > { %v4732_v60 = vpop.f32.mrb[4].mxu0  ;;  %v2658_v62 = vmul.f32 %v6935_v43, %v6935_v43  ;;  %v6945_v63 = vsel %vm2491_vm15, %v2459_v7, %v2523_v11  ;;  %vm8408_vm15 = vmmov %vm8406_vm1 }
 0x33c   : > { %v2464_v37 = vadd.f32 %v4732_v60, %v6923_v0  ;;  %v2308_v31 = vpop.f32.mrb[5].mxu0  ;;  %v2687_v9 = vsel %vm8404_vm2, %v2655_v26, 0.0  ;;  %v2587_v20 = vsel %vm8405_vm6, %v6945_v63, 0.0  ;;  %v2656_v21 = vmul.f32 %v6945_v63, %v6945_v63  ;;  %vm8409_vm12 = vmmov %vm8406_vm1 }
 0x33d   : > { %v2462_v49 = vadd.f32 %v6923_v0, %v2308_v31  ;;  %v4733_v42 = vpop.f32.mrb[6].mxu0  ;;  %v2588_v8 = vadd.f32 %v2587_v20, %v2586_v32  ;;  %v2690_v23 = vsel %vm8407_vm5, %v2657_v52, 0.0  ;;  %v2591_v57 = vsel %vm8408_vm15, %v6935_v43, 0.0  ;;  %vm8410_vm2 = vmmov %vm8406_vm1 }
 0x33e   : > { %vm2496_vm3 = vcmp.gt.f32.partialorder %v2464_v37, 0.0  ;;  %v2528_v61 = vmul.f32 0.2, %v2464_v37  ;;  %v2465_v1 = vadd.f32 %v4733_v42, %v6923_v0  ;;  %v2311_v10 = vpop.f32.mrb[7].mxu0  ;;  %v2688_v16 = vsel %vm8406_vm1, %v2656_v21, 0.0 }
 0x33f   : > { %vm2494_vm0 = vcmp.gt.f32.partialorder %v2462_v49, 0.0  ;;  %v2526_v28 = vmul.f32 0.2, %v2462_v49  ;;  %v2463_v38 = vadd.f32 %v6923_v0, %v2311_v10  ;;  %v2590_v44 = vadd.f32 %v2589_v53, %v2588_v8 }
 0x340   : > { %v2689_v5 = vadd.f32 %v2688_v16, %v2687_v9  ;;  %v6958_v41 = vsel %vm2496_vm3, %v2464_v37, %v2528_v61  ;;  %vm2497_vm7 = vcmp.gt.f32.partialorder %v2465_v1, 0.0  ;;  %v2529_v58 = vmul.f32 0.2, %v2465_v1  ;;  %vm8411_vm3 = vmmov %vm8406_vm1 }
 0x341   : > { %v6962_v30 = vsel %vm2494_vm0, %v2462_v49, %v2526_v28  ;;  %v2592_v13 = vadd.f32 %v2591_v57, %v2590_v44  ;;  %v2692_v7 = vsel %vm8410_vm2, %v2658_v62, 0.0  ;;  %v2661_v47 = vmul.f32 %v6958_v41, %v6958_v41  ;;  %vm8412_vm0 = vmmov %vm8406_vm1 }
 0x342   : > { %v2691_v56 = vadd.f32 %v2690_v23, %v2689_v5  ;;  %v2593_v29 = vsel %vm8409_vm12, %v6962_v30, 0.0  ;;  %v2659_v2 = vmul.f32 %v6962_v30, %v6962_v30  ;;  %vm2495_vm6 = vcmp.gt.f32.partialorder %v2463_v38, 0.0  ;;  %vm8413_vm5 = vmmov %vm8412_vm0 }
 0x343   : > { %v2527_v26 = vmul.f32 0.2, %v2463_v38  ;;  %v4736_v11 = vpop.f32.mrb[8].mxu0  ;;  %v2597_v53 = vsel %vm8411_vm3, %v6958_v41, 0.0  ;;  %v2594_v52 = vadd.f32 %v2593_v29, %v2592_v13  ;;  %v6975_v31 = vsel %vm2497_vm7, %v2465_v1, %v2529_v58  ;;  %vm8414_vm7 = vmmov %vm8412_vm0 }
 0x344   : > { %v2693_v60 = vadd.f32 %v2692_v7, %v2691_v56  ;;  %v2694_v32 = vsel %vm8406_vm1, %v2659_v2, 0.0  ;;  %v2324_v37 = vpop.f32.mrb[9].mxu0  ;;  %v2468_v62 = vadd.f32 %v4736_v11, %v6923_v0  ;;  %v2698_v1 = vsel %vm8413_vm5, %v2661_v47, 0.0  ;;  %vm8415_vm2 = vmmov %vm8412_vm0 }
 0x345   : > { %v6977_v9 = vsel %vm2495_vm6, %v2463_v38, %v2527_v26  ;;  %v2466_v20 = vadd.f32 %v6923_v0, %v2324_v37  ;;  %v4737_v21 = vpop.f32.mrb[10].mxu0  ;;  %v2662_v38 = vmul.f32 %v6975_v31, %v6975_v31  ;;  %v2599_v5 = vsel %vm8415_vm2, %v6975_v31, 0.0  ;;  %vm8416_vm3 = vmmov %vm8412_vm0 }
 0x346   : > { %v2695_v49 = vadd.f32 %v2694_v32, %v2693_v60  ;;  %v2595_v42 = vsel %vm8412_vm0, %v6977_v9, 0.0  ;;  %v2660_v8 = vmul.f32 %v6977_v9, %v6977_v9  ;;  %v2469_v61 = vadd.f32 %v4737_v21, %v6923_v0  ;;  %v2327_v10 = vpop.f32.mrb[11].mxu0  ;;  %vm8417_vm1 = vmmov %vm8412_vm0 }
 0x347   : > { %v2596_v16 = vadd.f32 %v2595_v42, %v2594_v52  ;;  %vm2500_vm15 = vcmp.gt.f32.partialorder %v2468_v62, 0.0  ;;  %v2532_v28 = vmul.f32 0.2, %v2468_v62  ;;  %vm2498_vm12 = vcmp.gt.f32.partialorder %v2466_v20, 0.0  ;;  %vm8418_vm5 = vmmov %vm8417_vm1 }
 0x348   : > { %v2696_v23 = vsel %vm8414_vm7, %v2660_v8, 0.0  ;;  %v2530_v44 = vmul.f32 0.2, %v2466_v20  ;;  %vm2501_vm6 = vcmp.gt.f32.partialorder %v2469_v61, 0.0  ;;  %v2533_v29 = vmul.f32 0.2, %v2469_v61  ;;  %vm8420_vm7 = vmmov %vm8417_vm1 }
 0x349   : > { %v2598_v57 = vadd.f32 %v2597_v53, %v2596_v16  ;;  %v2697_v58 = vadd.f32 %v2696_v23, %v2695_v49  ;;  %v6992_v56 = vsel %vm2500_vm15, %v2468_v62, %v2532_v28  ;;  %v2467_v2 = vadd.f32 %v6923_v0, %v2327_v10  ;;  %vm8419_vm15 = vmmov %vm8417_vm1 }
 0x34a   : > { %v6994_v13 = vsel %vm2498_vm12, %v2466_v20, %v2530_v44  ;;  %v2700_v53 = vsel %vm8417_vm1, %v2662_v38, 0.0  ;;  %v2665_v60 = vmul.f32 %v6992_v56, %v6992_v56  ;;  %v2605_v62 = vsel %vm8418_vm5, %v6992_v56, 0.0  ;;  %vm8421_vm12 = vmmov %vm8417_vm1 }
 0x34b   : > { %v2699_v7 = vadd.f32 %v2698_v1, %v2697_v58  ;;  %v2600_v47 = vadd.f32 %v2599_v5, %v2598_v57  ;;  %v2601_v26 = vsel %vm8416_vm3, %v6994_v13, 0.0  ;;  %v2663_v11 = vmul.f32 %v6994_v13, %v6994_v13  ;;  %v4740_v52 = vpop.f32.mrb[12].mxu0  ;;  %vm8423_vm5 = vmmov %vm8417_vm1 }
 0x34c   : > { %vm2499_vm0 = vcmp.gt.f32.partialorder %v2467_v2, 0.0  ;;  %v2531_v32 = vmul.f32 0.2, %v2467_v2  ;;  %v2340_v37 = vpop.f32.mrb[13].mxu0  ;;  %v7008_v8 = vsel %vm2501_vm6, %v2469_v61, %v2533_v29  ;;  %v2472_v1 = vadd.f32 %v4740_v52, %v6923_v0  ;;  %vm8422_vm6 = vmmov %vm8417_vm1 }
 0x34d   : > { %v2602_v20 = vadd.f32 %v2601_v26, %v2600_v47  ;;  %v2701_v21 = vadd.f32 %v2700_v53, %v2699_v7  ;;  %v2702_v49 = vsel %vm8419_vm15, %v2663_v11, 0.0  ;;  %v4741_v42 = vpop.f32.mrb[14].mxu0  ;;  %v2470_v16 = vadd.f32 %v6923_v0, %v2340_v37  ;;  %vm8424_vm15 = vmmov %vm8417_vm1 }
 0x34e   : > { %v7010_v10 = vsel %vm2499_vm0, %v2467_v2, %v2531_v32  ;;  %v2343_v28 = vpop.f32.mrb[15].mxu0  ;;  %v2473_v5 = vadd.f32 %v4741_v42, %v6923_v0  ;;  %v2706_v57 = vsel %vm8421_vm12, %v2665_v60, 0.0  ;;  %vm2504_vm2 = vcmp.gt.f32.partialorder %v2472_v1, 0.0  ;;  %vm8425_vm12 = vmmov %vm8417_vm1 }
 0x34f   : > { %v2703_v38 = vadd.f32 %v2702_v49, %v2701_v21  ;;  %v2603_v23 = vsel %vm8420_vm7, %v7010_v10, 0.0  ;;  %v2664_v44 = vmul.f32 %v7010_v10, %v7010_v10  ;;  %v2536_v58 = vmul.f32 0.2, %v2472_v1 }
 0x350   : > { %v2604_v61 = vadd.f32 %v2603_v23, %v2602_v20  ;;  %v2666_v29 = vmul.f32 %v7008_v8, %v7008_v8  ;;  %vm2502_vm3 = vcmp.gt.f32.partialorder %v2470_v16, 0.0  ;;  %v2534_v7 = vmul.f32 0.2, %v2470_v16 }
 0x351   : > { %v2704_v2 = vsel %vm8422_vm6, %v2664_v44, 0.0  ;;  %v2607_v47 = vsel %vm8417_vm1, %v7008_v8, 0.0  ;;  %v7025_v52 = vsel %vm2504_vm2, %v2472_v1, %v2536_v58  ;;  %vm2505_vm0 = vcmp.gt.f32.partialorder %v2473_v5, 0.0  ;;  %vm8426_vm2 = vmmov %vm8417_vm1 }
 0x352   : > { %v2606_v26 = vadd.f32 %v2605_v62, %v2604_v61  ;;  %v2705_v11 = vadd.f32 %v2704_v2, %v2703_v38  ;;  %v7027_v53 = vsel %vm2502_vm3, %v2470_v16, %v2534_v7  ;;  %v2537_v60 = vmul.f32 0.2, %v2473_v5  ;;  %vm8427_vm6 = vmmov %vm8417_vm1 }
 0x353   : > { %v2471_v32 = vadd.f32 %v6923_v0, %v2343_v28  ;;  %v4744_v37 = vpop.f32.mrb[16].mxu0  ;;  %v2609_v49 = vsel %vm8423_vm5, %v7027_v53, 0.0  ;;  %v2667_v42 = vmul.f32 %v7027_v53, %v7027_v53  ;;  %v2708_v62 = vsel %vm8424_vm15, %v2666_v29, 0.0  ;;  %vm8428_vm3 = vmmov %vm8417_vm1 }
 0x354   : > { %v2707_v20 = vadd.f32 %v2706_v57, %v2705_v11  ;;  %v2608_v21 = vadd.f32 %v2607_v47, %v2606_v26  ;;  %v2356_v23 = vpop.f32.mrb[17].mxu0  ;;  %v2669_v1 = vmul.f32 %v7025_v52, %v7025_v52  ;;  %v2613_v28 = vsel %vm8425_vm12, %v7025_v52, 0.0 }
 0x355   : > { %vm2503_vm7 = vcmp.gt.f32.partialorder %v2471_v32, 0.0  ;;  %v2535_v16 = vmul.f32 0.2, %v2471_v32  ;;  %v4745_v38 = vpop.f32.mrb[18].mxu0  ;;  %v2710_v61 = vsel %vm8426_vm2, %v2667_v42, 0.0  ;;  %v7041_v2 = vsel %vm2505_vm0, %v2473_v5, %v2537_v60  ;;  %vm8429_vm0 = vmmov %vm8426_vm2 }
 0x356   : > { %v2610_v44 = vadd.f32 %v2609_v49, %v2608_v21  ;;  %v2709_v57 = vadd.f32 %v2708_v62, %v2707_v20  ;;  %v2359_v58 = vpop.f32.mrb[19].mxu0  ;;  %v2476_v29 = vadd.f32 %v4744_v37, %v6923_v0  ;;  %v2474_v47 = vadd.f32 %v6923_v0, %v2356_v23  ;;  %vm8430_vm15 = vmmov %vm8429_vm0 }
 0x357   : > { %v7043_v7 = vsel %vm2503_vm7, %v2471_v32, %v2535_v16  ;;  %v2477_v20 = vadd.f32 %v4745_v38, %v6923_v0  ;;  %v2714_v49 = vsel %vm8428_vm3, %v2669_v1, 0.0  ;;  %v2670_v60 = vmul.f32 %v7041_v2, %v7041_v2  ;;  %vm8431_vm12 = vmmov %vm8429_vm0 }
 0x358   : > { %v2711_v26 = vadd.f32 %v2710_v61, %v2709_v57  ;;  %v2611_v11 = vsel %vm8427_vm6, %v7043_v7, 0.0  ;;  %v2668_v21 = vmul.f32 %v7043_v7, %v7043_v7  ;;  %vm2508_vm1 = vcmp.gt.f32.partialorder %v2476_v29, 0.0  ;;  %vm8432_vm2 = vmmov %vm8429_vm0 }
 0x359   : > { %v2612_v42 = vadd.f32 %v2611_v11, %v2610_v44  ;;  %v2540_v5 = vmul.f32 0.2, %v2476_v29  ;;  %vm2506_vm5 = vcmp.gt.f32.partialorder %v2474_v47, 0.0  ;;  %v2538_v37 = vmul.f32 0.2, %v2474_v47  ;;  %vm8433_vm3 = vmmov %vm8429_vm0 }
 0x35a   : > { %v2712_v32 = vsel %vm8429_vm0, %v2668_v21, 0.0  ;;  %v2615_v23 = vsel %vm8430_vm15, %v7041_v2, 0.0  ;;  %vm2509_vm7 = vcmp.gt.f32.partialorder %v2477_v20, 0.0  ;;  %v2541_v1 = vmul.f32 0.2, %v2477_v20 }
 0x35b   : > { %v2614_v62 = vadd.f32 %v2613_v28, %v2612_v42  ;;  %v2713_v16 = vadd.f32 %v2712_v32, %v2711_v26  ;;  %v7058_v57 = vsel %vm2508_vm1, %v2476_v29, %v2540_v5  ;;  %v4748_v38 = vpop.f32.mrb[20].mxu0  ;;  %v7060_v61 = vsel %vm2506_vm5, %v2474_v47, %v2538_v37  ;;  %vm8434_vm1 = vmmov %vm8429_vm0 }
 0x35c   : > { %v2475_v44 = vadd.f32 %v6923_v0, %v2359_v58  ;;  %v2372_v11 = vpop.f32.mrb[21].mxu0  ;;  %v2617_v21 = vsel %vm8431_vm12, %v7060_v61, 0.0  ;;  %v2671_v19 = vmul.f32 %v7060_v61, %v7060_v61  ;;  %v2716_v29 = vsel %vm8432_vm2, %v2670_v60, 0.0  ;;  %vm8435_vm5 = vmmov %vm8429_vm0 }
 0x35d   : > { %v2715_v35 = vadd.f32 %v2714_v49, %v2713_v16  ;;  %v2616_v36 = vadd.f32 %v2615_v23, %v2614_v62  ;;  %v4749_v28 = vpop.f32.mrb[22].mxu0  ;;  %v2673_v47 = vmul.f32 %v7058_v57, %v7058_v57  ;;  %v2621_v58 = vsel %vm8433_vm3, %v7058_v57, 0.0  ;;  %vm8437_vm2 = vmmov %vm8429_vm0 }
 0x35e   : > { %vm2507_vm6 = vcmp.gt.f32.partialorder %v2475_v44, 0.0  ;;  %v2539_v26 = vmul.f32 0.2, %v2475_v44  ;;  %v2375_v42 = vpop.f32.mrb[23].mxu0  ;;  %v2718_v32 = vsel %vm8434_vm1, %v2671_v19, 0.0  ;;  %v7074_v37 = vsel %vm2509_vm7, %v2477_v20, %v2541_v1  ;;  %vm8436_vm7 = vmmov %vm8429_vm0 }
 0x35f   : > { %v2618_v49 = vadd.f32 %v2617_v21, %v2616_v36  ;;  %v2717_v5 = vadd.f32 %v2716_v29, %v2715_v35  ;;  %v2480_v60 = vadd.f32 %v4748_v38, %v6923_v0  ;;  %v2478_v62 = vadd.f32 %v6923_v0, %v2372_v11  ;;  %vm8438_vm3 = vmmov %vm8429_vm0 }
 0x360   : > { %v7076_v23 = vsel %vm2507_vm6, %v2475_v44, %v2539_v26  ;;  %v2481_v36 = vadd.f32 %v4749_v28, %v6923_v0  ;;  %v2722_v19 = vsel %vm8435_vm5, %v2673_v47, 0.0  ;;  %v2674_v1 = vmul.f32 %v7074_v37, %v7074_v37  ;;  %vm8439_vm1 = vmmov %vm8429_vm0 }
 0x361   : > { %v2719_v16 = vadd.f32 %v2718_v32, %v2717_v5  ;;  %v2619_v55 = vsel %vm8429_vm0, %v7076_v23, 0.0  ;;  %v2672_v50 = vmul.f32 %v7076_v23, %v7076_v23  ;;  %vm2512_vm15 = vcmp.gt.f32.partialorder %v2480_v60, 0.0  ;;  %vm8440_vm5 = vmmov %vm8439_vm1 }
 0x362   : > { %v2620_v35 = vadd.f32 %v2619_v55, %v2618_v49  ;;  %v2544_v20 = vmul.f32 0.2, %v2480_v60  ;;  %vm2510_vm12 = vcmp.gt.f32.partialorder %v2478_v62, 0.0  ;;  %v2542_v44 = vmul.f32 0.2, %v2478_v62 }
 0x363   : > { %v2720_v38 = vsel %vm8436_vm7, %v2672_v50, 0.0  ;;  %v4752_v11 = vpop.f32.mrb[24].mxu0  ;;  %v2623_v21 = vsel %vm8437_vm2, %v7074_v37, 0.0  ;;  %vm2513_vm6 = vcmp.gt.f32.partialorder %v2481_v36, 0.0  ;;  %v2545_v55 = vmul.f32 0.2, %v2481_v36  ;;  %vm8442_vm7 = vmmov %vm8439_vm1 }
 0x364   : > { %v2622_v29 = vadd.f32 %v2621_v58, %v2620_v35  ;;  %v2721_v26 = vadd.f32 %v2720_v38, %v2719_v16  ;;  %v7091_v5 = vsel %vm2512_vm15, %v2480_v60, %v2544_v20  ;;  %v2388_v28 = vpop.f32.mrb[25].mxu0  ;;  %v7093_v47 = vsel %vm2510_vm12, %v2478_v62, %v2542_v44  ;;  %vm8441_vm15 = vmmov %vm8439_vm1 }
 0x365   : > { %v2479_v49 = vadd.f32 %v6923_v0, %v2375_v42  ;;  %v4753_v32 = vpop.f32.mrb[26].mxu0  ;;  %v2625_v6 = vsel %vm8438_vm3, %v7093_v47, 0.0  ;;  %v2675_v3 = vmul.f32 %v7093_v47, %v7093_v47  ;;  %v2724_v60 = vsel %vm8439_vm1, %v2674_v1, 0.0  ;;  %vm8443_vm12 = vmmov %vm8439_vm1 }
 0x366   : > { %v2723_v24 = vadd.f32 %v2722_v19, %v2721_v26  ;;  %v2624_v50 = vadd.f32 %v2623_v21, %v2622_v29  ;;  %v2391_v58 = vpop.f32.mrb[27].mxu0  ;;  %v2677_v62 = vmul.f32 %v7091_v5, %v7091_v5  ;;  %v2629_v42 = vsel %vm8440_vm5, %v7091_v5, 0.0  ;;  %vm8445_vm5 = vmmov %vm8439_vm1 }
 0x367   : > { %vm2511_vm0 = vcmp.gt.f32.partialorder %v2479_v49, 0.0  ;;  %v2543_v16 = vmul.f32 0.2, %v2479_v49  ;;  %v2726_v20 = vsel %vm8441_vm15, %v2675_v3, 0.0  ;;  %v7107_v38 = vsel %vm2513_vm6, %v2481_v36, %v2545_v55  ;;  %vm8444_vm6 = vmmov %vm8439_vm1 }
 0x368   : > { %v2626_v35 = vadd.f32 %v2625_v6, %v2624_v50  ;;  %v2725_v19 = vadd.f32 %v2724_v60, %v2723_v24  ;;  %v2484_v21 = vadd.f32 %v4752_v11, %v6923_v0  ;;  %v2482_v1 = vadd.f32 %v6923_v0, %v2388_v28  ;;  %vm8446_vm15 = vmmov %vm8439_vm1 }
 0x369   : > { %v7109_v44 = vsel %vm2511_vm0, %v2479_v49, %v2543_v16  ;;  %v2485_v24 = vadd.f32 %v4753_v32, %v6923_v0  ;;  %v2730_v3 = vsel %vm8443_vm12, %v2677_v62, 0.0  ;;  %v2678_v11 = vmul.f32 %v7107_v38, %v7107_v38  ;;  %vm8447_vm12 = vmmov %vm8439_vm1 }
 0x36a   : > { %v2727_v29 = vadd.f32 %v2726_v20, %v2725_v19  ;;  %v2627_v26 = vsel %vm8442_vm7, %v7109_v44, 0.0  ;;  %v2676_v17 = vmul.f32 %v7109_v44, %v7109_v44  ;;  %vm2516_vm2 = vcmp.gt.f32.partialorder %v2484_v21, 0.0 }
 0x36b   : > { %v2628_v6 = vadd.f32 %v2627_v26, %v2626_v35  ;;  %v2548_v36 = vmul.f32 0.2, %v2484_v21  ;;  %v4756_v55 = vpop.f32.mrb[28].mxu0  ;;  %vm2514_vm3 = vcmp.gt.f32.partialorder %v2482_v1, 0.0  ;;  %v2546_v49 = vmul.f32 0.2, %v2482_v1 }
 0x36c   : > { %v2728_v28 = vsel %vm8444_vm6, %v2676_v17, 0.0  ;;  %v2404_v50 = vpop.f32.mrb[29].mxu0  ;;  %v2549_v20 = vmul.f32 0.2, %v2485_v24  ;;  %v2631_v62 = vsel %vm8439_vm1, %v7107_v38, 0.0  ;;  %vm2517_vm0 = vcmp.gt.f32.partialorder %v2485_v24, 0.0  ;;  %vm8449_vm6 = vmmov %vm8439_vm1 }
 0x36d   : > { %v2630_v60 = vadd.f32 %v2629_v42, %v2628_v6  ;;  %v2729_v16 = vadd.f32 %v2728_v28, %v2727_v29  ;;  %v7122_v19 = vsel %vm2516_vm2, %v2484_v21, %v2548_v36  ;;  %v4757_v32 = vpop.f32.mrb[30].mxu0  ;;  %v7126_v35 = vsel %vm2514_vm3, %v2482_v1, %v2546_v49  ;;  %vm8448_vm2 = vmmov %vm8439_vm1 }
 0x36e   : > { %v2483_v26 = vadd.f32 %v6923_v0, %v2391_v58  ;;  %v2407_v14 = vpop.f32.mrb[31].mxu0  ;;  %v2633_v45 = vsel %vm8445_vm5, %v7126_v35, 0.0  ;;  %v2679_v42 = vmul.f32 %v7126_v35, %v7126_v35  ;;  %v2732_v21 = vsel %vm8446_vm15, %v2678_v11, 0.0  ;;  %vm8450_vm3 = vmmov %vm8439_vm1 }
 0x36f   : > { %v2731_v59 = vadd.f32 %v2730_v3, %v2729_v16  ;;  %v2632_v17 = vadd.f32 %v2631_v62, %v2630_v60  ;;  %v2681_v29 = vmul.f32 %v7122_v19, %v7122_v19  ;;  %v7137_v28 = vsel %vm2517_vm0, %v2485_v24, %v2549_v20  ;;  %vm8451_vm5 = vmmov %vm8439_vm1 }
 0x370   : > { %vm2515_vm7 = vcmp.gt.f32.partialorder %v2483_v26, 0.0  ;;  %v2547_v1 = vmul.f32 0.2, %v2483_v26  ;;  %v2734_v58 = vsel %vm8447_vm12, %v2679_v42, 0.0  ;;  %v2488_v49 = vadd.f32 %v4756_v55, %v6923_v0  ;;  %vm8452_vm12 = vmmov %vm8439_vm1 }
 0x371   : > { %v2634_v6 = vadd.f32 %v2633_v45, %v2632_v17  ;;  %v2733_v36 = vadd.f32 %v2732_v21, %v2731_v59  ;;  %v2486_v60 = vadd.f32 %v6923_v0, %v2404_v50  ;;  %v2489_v45 = vadd.f32 %v4757_v32, %v6923_v0 }
 0x372   : > { %v7139_v3 = vsel %vm2515_vm7, %v2483_v26, %v2547_v1  ;;  %v2637_v59 = vsel %vm8449_vm6, %v7122_v19, 0.0  ;;  %v2738_v24 = vsel %vm8450_vm3, %v2681_v29, 0.0  ;;  %v2682_v20 = vmul.f32 %v7137_v28, %v7137_v28  ;;  %vm8454_vm3 = vmmov %vm8439_vm1 }
 0x373   : > { %v2735_v16 = vadd.f32 %v2734_v58, %v2733_v36  ;;  %v2635_v11 = vsel %vm8448_vm2, %v7139_v3, 0.0  ;;  %v2680_v62 = vmul.f32 %v7139_v3, %v7139_v3  ;;  %v2552_v26 = vmul.f32 0.2, %v2488_v49  ;;  %vm8453_vm2 = vmmov %vm8439_vm1 }
 0x374   : > { %v2636_v55 = vadd.f32 %v2635_v11, %v2634_v6  ;;  %vm2518_vm0 = vcmp.gt.f32.partialorder %v2486_v60, 0.0  ;;  %v2550_v17 = vmul.f32 0.2, %v2486_v60  ;;  %v2639_v42 = vsel %vm8451_vm5, %v7137_v28, 0.0 }
 0x375   : > { %v2736_v50 = vsel %vm8439_vm1, %v2680_v62, 0.0  ;;  %vm2520_vm15 = vcmp.gt.f32.partialorder %v2488_v49, 0.0  ;;  %vm2521_vm7 = vcmp.gt.f32.partialorder %v2489_v45, 0.0  ;;  %v2553_v36 = vmul.f32 0.2, %v2489_v45 }
 0x376   : > { %v2638_v21 = vadd.f32 %v2637_v59, %v2636_v55  ;;  %v2737_v1 = vadd.f32 %v2736_v50, %v2735_v16  ;;  %v7156_v32 = vsel %vm2518_vm0, %v2486_v60, %v2550_v17  ;;  %v2487_v29 = vadd.f32 %v6923_v0, %v2407_v14  ;;  %vm8455_vm0 = vmmov %vm8439_vm1 }
 0x377   : > { %v2641_v6 = vsel %vm8452_vm12, %v7156_v32, 0.0  ;;  %v2683_v11 = vmul.f32 %v7156_v32, %v7156_v32  ;;  %v2740_v62 = vsel %vm8453_vm2, %v2682_v20, 0.0  ;;  %v7164_v48 = vsel %vm2520_vm15, %v2488_v49, %v2552_v26  ;;  %vm8456_vm5 = vmmov %vm8455_vm0 }
 0x378   : > { %v2739_v58 = vadd.f32 %v2738_v24, %v2737_v1  ;;  %v2640_v4 = vadd.f32 %v2639_v42, %v2638_v21  ;;  %vm2519_vm6 = vcmp.gt.f32.partialorder %v2487_v29, 0.0  ;;  %v2551_v16 = vmul.f32 0.2, %v2487_v29  ;;  %vm8457_vm15 = vmmov %vm8455_vm0 }
 0x379   : > { %v2742_v55 = vsel %vm8454_vm3, %v2683_v11, 0.0  ;;  %v7167_v50 = vsel %vm2521_vm7, %v2489_v45, %v2553_v36  ;;  %v2685_v0 = vmul.f32 %v7164_v48, %v7164_v48  ;;  %vm8458_vm7 = vmmov %vm8455_vm0  ;;  %vm8460_vm2 = vcmask 1046528  }
 0x37a   : > { %v2642_v60 = vadd.f32 %v2641_v6, %v2640_v4  ;;  %v2741_v59 = vadd.f32 %v2740_v62, %v2739_v58  ;;  %v7169_v14 = vsel %vm2519_vm6, %v2487_v29, %v2551_v16  ;;  %v2645_v4 = vsel %vm8455_vm0, %v7164_v48, 0.0  ;;  %vm8459_vm12 = vmmov %vm8455_vm0 }
 0x37b   : > { %v2643_v17 = vsel %vm8439_vm1, %v7169_v14, 0.0  ;;  %v2684_v49 = vmul.f32 %v7169_v14, %v7169_v14  ;;  %v2686_v45 = vmul.f32 %v7167_v50, %v7167_v50  ;;  %v2746_v1 = vsel %vm8457_vm15, %v2685_v0, 0.0  ;;  %vm8461_vm6 = vmmov %vm8460_vm2 }
 0x37c   : > { %v2743_v24 = vadd.f32 %v2742_v55, %v2741_v59  ;;  %v2644_v20 = vadd.f32 %v2643_v17, %v2642_v60  ;;  %v2647_v36 = vsel %vm8458_vm7, %v7167_v50, 0.0  ;;  %vm8462_vm3 = vmmov %vm8460_vm2  ;;  %vm8469_vm15 = vcmask 1043456  }
 0x37d   : > { %v2744_v26 = vsel %vm8456_vm5, %v2684_v49, 0.0  ;;  %v2748_v6 = vsel %vm8459_vm12, %v2686_v45, 0.0  ;;  %vm8463_vm1 = vmmov %vm8460_vm2 }
 0x37e   : > { %v2646_v42 = vadd.f32 %v2645_v4, %v2644_v20  ;;  %v2745_v21 = vadd.f32 %v2744_v26, %v2743_v24  ;;  %vm8467_vm0 = vmmov %vm8463_vm1 }
 0x37f   : > { %vm8468_vm5 = vmmov %vm8467_vm0 }
 0x380   : > { %v2648_v29 = vadd.f32 %v2647_v36, %v2646_v42  ;;  %v2747_v58 = vadd.f32 %v2746_v1, %v2745_v21  ;;  %vm8472_vm7 = vmmov %vm8467_vm0 }
 0x381   : > { %vm8473_vm12 = vmmov %vm8467_vm0 }
 0x382   : > { %v2649_v11 = vrot.slane %v2648_v29, 4  ;;  %v2749_v62 = vadd.f32 %v2748_v6, %v2747_v58 }
 0x384   : > { %v2650_v16 = vadd.f32 %v2649_v11, %v2648_v29  ;;  %v2750_v60 = vrot.slane %v2749_v62, 4 }
 0x386   : > { %v2651_v59 = vrot.slane %v2650_v16, 2  ;;  %v2751_v55 = vadd.f32 %v2750_v60, %v2749_v62 }
 0x388   : > { %v2652_v17 = vadd.f32 %v2651_v59, %v2650_v16  ;;  %v2752_v12 = vrot.slane %v2751_v55, 2 }
 0x38a   : > { %v2653_v49 = vrot.slane %v2652_v17, 1  ;;  %v2753_v20 = vadd.f32 %v2752_v12, %v2751_v55 }
 0x38c   : > { %v2654_v24 = vadd.f32 %v2653_v49, %v2652_v17  ;;  %v2754_v4 = vrot.slane %v2753_v20, 1 }
 0x38e   : > { %v2755_v0 = vadd.f32 %v2754_v4, %v2753_v20  ;;  %v7186_v26 = vmul.f32 0.00390625, %v2654_v24 }
 0x390   : > { %v2757_v18 = vmul.f32 0.00390625, %v2755_v0  ;;  %v2758_v42 = vmul.f32 %v7186_v26, %v7186_v26  ;;  %v2774_v36 = vsub.f32 %v7043_v7, %v7186_v26  ;;  %v2776_v12 = vsub.f32 %v7041_v2, %v7186_v26 }
 0x391   : > { %v2777_v29 = vsub.f32 %v7060_v61, %v7186_v26  ;;  %v2779_v6 = vsub.f32 %v7058_v57, %v7186_v26  ;;  %v2781_v62 = vsub.f32 %v7093_v47, %v7186_v26  ;;  %v2785_v59 = vsub.f32 %v7126_v35, %v7186_v26 }
 0x392   : > { %v2759_v21 = vsub.f32 %v2757_v18, %v2758_v42  ;;  %v2780_v18 = vsub.f32 %v7074_v37, %v7186_v26  ;;  %v2789_v49 = vsub.f32 %v7156_v32, %v7186_v26  ;;  %v2761_v35 = vsub.f32 %v6931_v33, %v7186_v26 }
 0x393   : > { %v2762_v4 = vsub.f32 %v6945_v63, %v7186_v26  ;;  %v2763_v0 = vsub.f32 %v6929_v22, %v7186_v26  ;;  %v2764_v42 = vsub.f32 %v6935_v43, %v7186_v26  ;;  %v2765_v32 = vsub.f32 %v6962_v30, %v7186_v26 }
 0x394   : > { %v2760_v1 = vmax.f32 %v2759_v21, 0.0  ;;  %v2766_v21 = vsub.f32 %v6977_v9, %v7186_v26  ;;  %v2769_v33 = vsub.f32 %v6994_v13, %v7186_v26  ;;  %v2768_v22 = vsub.f32 %v6975_v31, %v7186_v26 }
 0x395   : > { %v2770_v43 = vsub.f32 %v7010_v10, %v7186_v26  ;;  %v2771_v63 = vsub.f32 %v6992_v56, %v7186_v26  ;;  %v2773_v30 = vsub.f32 %v7027_v53, %v7186_v26 }
 0x396   : > { %v2793_v11 = vadd.f32 1e-05, %v2760_v1  ;;  %v2767_v1 = vsub.f32 %v6958_v41, %v7186_v26 }
 0x398   : > { %5459 = vrsqrt.f32 %v2793_v11 }
 0x3a2   : > { %v7242_v11 = vpop.eup %5459 }
 0x3a3   : > { %v7253_v9 = vmul.f32 %v7242_v11, %v2763_v0  ;;  %v7256_v41 = vmul.f32 %v7242_v11, %v2764_v42  ;;  %v7259_v13 = vmul.f32 %v7242_v11, %v2765_v32  ;;  %v7262_v31 = vmul.f32 %v7242_v11, %v2769_v33 }
 0x3a4   : > { %v7265_v10 = vmul.f32 %v7242_v11, %v2773_v30  ;;  %v7268_v56 = vmul.f32 %v7242_v11, %v2777_v29  ;;  %v7271_v53 = vmul.f32 %v7242_v11, %v2781_v62  ;;  %v7274_v0 = vmul.f32 %v7242_v11, %v2785_v59 }
 0x3a5   : > { %v5290_v42 = vpack.i.bf16 %v7256_v41, %v7253_v9  ;;  %v7279_v32 = vmul.f32 %v7242_v11, %v2789_v49  ;;  %v7282_v33 = vmul.f32 %v7242_v11, %v2761_v35  ;;  %v7285_v30 = vmul.f32 %v7242_v11, %v2762_v4  ;;  %v5451_v49 = vld [vmem:[%s8116_s3 + $0xc] sm:$0xff]  }
 0x3a6   : > { %v2990_v29 = vrot.slane %v7253_v9, 1  ;;  %v2992_v62 = vrot.slane %v7256_v41, 1  ;;  %v2994_v45 = vrot.slane %v7259_v13, 1  ;;  %v7291_v59 = vmul.f32 %v7242_v11, %v2767_v1  ;;  %4758 = vmatprep.subr.bf16.mxu1 %v5451_v49 }
 0x3a7   : > { %v2772_v35 = vsub.f32 %v7008_v8, %v7186_v26  ;;  %5291 = vrot.lane.b32.xlu1 %v5290_v42, %s5525_s10  ;;  %v5285_v4 = vpack.i.bf16 %v7285_v30, %v7282_v33  ;;  %v2987_v24 = vrot.slane %v7282_v33, 1  ;;  %v2988_v20 = vrot.slane %v7285_v30, 1  ;;  %4759 = vmatpush3.bf16.msra.mxu1 %v5451_v49 }
 0x3a8   : > { %v2993_v55 = vsel %vm8460_vm2, %v2990_v29, %v2992_v62  ;;  %v2995_v1 = vsel %vm8461_vm6, %v2992_v62, %v2994_v45  ;;  %v7306_v47 = vmul.f32 %v7242_v11, %v2768_v22  ;;  %v7309_v17 = vmul.f32 %v7242_v11, %v2766_v21  ;;  %vm8479_vm2 = vmmov %vm8467_vm0 }
 0x3a9   : > { %5286 = vrot.lane.b32.xlu0 %v5285_v4, %s5525_s10  ;;  %v3086_v8 = vsel %vm6273_vm9, %v2995_v1, 0.0  ;;  %v2989_v42 = vsel %vm8462_vm3, %v2987_v24, %v2988_v20  ;;  %v2991_v16 = vsel %vm8463_vm1, %v2988_v20, %v2990_v29  ;;  %v2998_v61 = vrot.slane %v7291_v59, 1  ;;  %vm8466_vm9 = vmmov %vm8463_vm1 }
 0x3aa   : > { %v2775_v22 = vsub.f32 %v7025_v52, %v7186_v26  ;;  %v5305_v62 = vpack.i.bf16 %v3086_v8, %v2993_v55  ;;  %v3084_v21 = vsel %vm6237_vm8, %v2991_v16, 0.0  ;;  %v5310_v4 = vpack.i.bf16 %v7306_v47, %v7291_v59  ;;  %vm8465_vm8 = vmmov %vm8463_vm1 }
 0x3ab   : > { %v5295_v58 = vpack.i.bf16 %v3084_v21, %v2989_v42  ;;  %v5300_v40 = vpack.i.bf16 %v7309_v17, %v7259_v13  ;;  %v3000_v24 = vrot.slane %v7306_v47, 1  ;;  %v3002_v20 = vrot.slane %v7262_v31, 1  ;;  %vm8480_vm6 = vmmov %vm8467_vm0 }
 0x3ac   : > { %5306 = vrot.lane.b32.xlu1 %v5305_v62, %s5526_s11  ;;  %v2996_v29 = vrot.slane %v7309_v17, 1  ;;  %v7330_v52 = vmul.f32 %v7242_v11, %v2771_v63  ;;  %v7333_v16 = vmul.f32 %v7242_v11, %v2772_v35  ;;  %v7336_v60 = vmul.f32 %v7242_v11, %v2770_v43  ;;  %v7348_v63 = vld [vmem:[%s8116_s3 + $0x14] ss:$0 sps:$4 sm:$0xff]   ;;  %vm8486_vm1 = vmmov %vm8467_vm0 }
 0x3ad   : > { %5296 = vrot.lane.b32.xlu0 %v5295_v58, %s5526_s11  ;;  %v3001_v55 = vsel %vm8465_vm8, %v2998_v61, %v3000_v24  ;;  %v3003_v49 = vsel %vm8466_vm9, %v3000_v24, %v3002_v20  ;;  %v3010_v1 = vrot.slane %v7265_v10, 1  ;;  %v7343_v8 = vmul.f32 %v7242_v11, %v2775_v22  ;;  %4997 = vmatprep.subr.msk.bf16.mxu1 %vm8469_vm15, %v7348_v63  ;;  %vm8487_vm8 = vmmov %vm8467_vm0 }
 0x3ae   : > { %v3090_v43 = vsel %vm6401_vm11, %v3003_v49, 0.0  ;;  %v2997_v35 = vsel %vm8467_vm0, %v2994_v45, %v2996_v29  ;;  %v2999_v58 = vsel %vm8468_vm5, %v2996_v29, %v2998_v61  ;;  %v5330_v42 = vpack.i.bf16 %v7333_v16, %v7330_v52  ;;  %vm8471_vm11 = vmmov %vm8467_vm0 }
 0x3af   : > { %v5325_v62 = vpack.i.bf16 %v3090_v43, %v3001_v55  ;;  %v3088_v22 = vsel %vm6312_vm10, %v2999_v58, 0.0  ;;  %v5320_v21 = vpack.i.bf16 %v7336_v60, %v7262_v31  ;;  %v3006_v45 = vrot.slane %v7330_v52, 1  ;;  %vm8470_vm10 = vmmov %vm8467_vm0 }
 0x3b0   : > { %5311 = vrot.lane.b32.xlu1 %v5310_v4, %s5525_s10  ;;  %v5315_v51 = vpack.i.bf16 %v3088_v22, %v2997_v35  ;;  %v3008_v61 = vrot.slane %v7333_v16, 1  ;;  %v3004_v24 = vrot.slane %v7336_v60, 1  ;;  %v7371_v39 = vmul.f32 %v7242_v11, %v2776_v12  ;;  %vm8488_vm9 = vmmov %vm8467_vm0 }
 0x3b1   : > { %5301 = vrot.lane.b32.xlu0 %v5300_v40, %s5525_s10  ;;  %v7377_v4 = vmul.f32 %v7242_v11, %v2774_v36  ;;  %v3014_v29 = vrot.slane %v7343_v8, 1  ;;  %v3018_v55 = vrot.slane %v7268_v56, 1  ;;  %v7401_v27 = vmul.f32 %v7242_v11, %v2779_v6  ;;  %vm8494_vm15 = vmmov %vm8486_vm1 }
 0x3b2   : > { %v3009_v49 = vsel %vm8470_vm10, %v3006_v45, %v3008_v61  ;;  %v3011_v40 = vsel %vm8471_vm11, %v3008_v61, %v3010_v1  ;;  %v3005_v43 = vsel %vm8472_vm7, %v3002_v20, %v3004_v24  ;;  %v3007_v2 = vsel %vm8473_vm12, %v3004_v24, %v3006_v45  ;;  %vm8495_vm10 = vmmov %vm8486_vm1 }
 0x3b3   : > { %v3094_v12 = vsel %vm6435_vm14, %v3011_v40, 0.0  ;;  %v3092_v7 = vsel %vm6419_vm13, %v3007_v2, 0.0  ;;  %v5350_v36 = vpack.i.bf16 %v7371_v39, %v7343_v8  ;;  %v5340_v22 = vpack.i.bf16 %v7377_v4, %v7265_v10  ;;  %vm8475_vm13 = vmmov %vm8467_vm0 }
 0x3b4   : > { %5326 = vrot.lane.b32.xlu1 %v5325_v62, %s5526_s11  ;;  %v5345_v35 = vpack.i.bf16 %v3094_v12, %v3009_v49  ;;  %v5335_v58 = vpack.i.bf16 %v3092_v7, %v3005_v43  ;;  %v3016_v20 = vrot.slane %v7371_v39, 1  ;;  %v3012_v34 = vrot.slane %v7377_v4, 1  ;;  %vm8476_vm14 = vmmov %vm8467_vm0  ;;  %v8481_v12 = vld [vmem:[#allocation8_spill] sm:$0xff] }
 0x3b5   : > { %5316 = vrot.lane.b32.xlu0 %v5315_v51, %s5526_s11  ;;  %v7407_v62 = vmul.f32 %v7242_v11, %v2780_v18  ;;  %v8474_v45 = vsub.f32 %v7076_v23, %v7186_v26  ;;  %v3026_v57 = vrot.slane %v7271_v53, 1  ;;  %v8477_v6 = vsub.f32 %v7091_v5, %v7186_v26  ;;  %vm8498_vm7 = vmmov %vm8486_vm1 }
 0x3b6   : > { %v3017_v51 = vsel %vm8475_vm13, %v3014_v29, %v3016_v20  ;;  %v3019_v24 = vsel %vm8476_vm14, %v3016_v20, %v3018_v55  ;;  %v3013_v23 = vsel %vm8479_vm2, %v3010_v1, %v3012_v34  ;;  %v3015_v40 = vsel %vm8480_vm6, %v3012_v34, %v3014_v29  ;;  %vm8499_vm12 = vmmov %vm8486_vm1 }
 0x3b7   : > { %v7413_v61 = vmul.f32 %v7242_v11, %v8474_v45  ;;  %v7422_v37 = vmul.f32 %v7242_v11, %v8477_v6  ;;  %v3098_v49 = vsel %vm6085_vm4, %v3019_v24, 0.0  ;;  %v5370_v43 = vpack.i.bf16 %v7407_v62, %v7401_v27  ;;  %vm8485_vm4 = vmmov %vm8467_vm0 }
 0x3b8   : > { %5331 = vrot.lane.b32.xlu1 %v5330_v42, %s5525_s10  ;;  %v5365_v2 = vpack.i.bf16 %v3098_v49, %v3017_v51  ;;  %vm8482_vm3 = vnez %v8481_v12  ;;  %v3022_v45 = vrot.slane %v7401_v27, 1  ;;  %v3024_v1 = vrot.slane %v7407_v62, 1  ;;  %vm8503_vm14 = vmmov %vm8486_vm1 }
 0x3b9   : > { %v3096_v7 = vsel %vm8482_vm3, %v3015_v40, 0.0  ;;  %v5360_v5 = vpack.i.bf16 %v7413_v61, %v7268_v56  ;;  %5321 = vrot.lane.b32.xlu0 %v5320_v21, %s5525_s10  ;;  %v3020_v29 = vrot.slane %v7413_v61, 1  ;;  %v8483_v34 = vsub.f32 %v7107_v38, %v7186_v26  ;;  %vm8504_vm2 = vmmov %vm8486_vm1 }
 0x3ba   : > { %v5355_v20 = vpack.i.bf16 %v3096_v7, %v3013_v23  ;;  %v8484_v51 = vsub.f32 %v7109_v44, %v7186_v26  ;;  %v3030_v21 = vrot.slane %v7422_v37, 1  ;;  %v3034_v6 = vrot.slane %v7274_v0, 1  ;;  %vm8505_vm6 = vmmov %vm8486_vm1 }
 0x3bb   : > { %v7443_v42 = vmul.f32 %v7242_v11, %v8483_v34  ;;  %v3025_v18 = vsel %vm8485_vm4, %v3022_v45, %v3024_v1  ;;  %v3027_v49 = vsel %vm8486_vm1, %v3024_v1, %v3026_v57  ;;  %v3021_v23 = vsel %vm8487_vm8, %v3018_v55, %v3020_v29  ;;  %vm8506_vm3 = vmmov %vm8486_vm1 }
 0x3bc   : > { %v7449_v24 = vmul.f32 %v7242_v11, %v8484_v51  ;;  %v3023_v38 = vsel %vm8488_vm9, %v3020_v29, %v3022_v45  ;;  %5346 = vrot.lane.b32.xlu1 %v5345_v35, %s5526_s11  ;;  %vm8489_vm0 = vnez %v8234_v54  ;;  %vm8490_vm5 = vnez %v8231_v15  ;;  %vm8511_vm8 = vmmov %vm8504_vm2 }
 0x3bd   : > { %v3102_v44 = vsel %vm8489_vm0, %v3027_v49, 0.0  ;;  %v3100_v40 = vsel %vm8490_vm5, %v3023_v38, 0.0  ;;  %v5390_v12 = vpack.i.bf16 %v7443_v42, %v7422_v37  ;;  %5336 = vrot.lane.b32.xlu0 %v5335_v58, %s5526_s11  ;;  %v3032_v35 = vrot.slane %v7443_v42, 1  ;;  %vm8512_vm9 = vmmov %vm8504_vm2 }
 0x3be   : > { %v7465_v7 = vpack.i.bf16 %v3102_v44, %v3025_v18  ;;  %v7467_v1 = vpack.i.bf16 %v3100_v40, %v3021_v23  ;;  %v5380_v55 = vpack.i.bf16 %v7449_v24, %v7271_v53  ;;  %v3028_v54 = vrot.slane %v7449_v24, 1  ;;  %vm8515_vm5 = vmmov %vm8504_vm2 }
 0x3bf   : > { %v8491_v15 = vsub.f32 %v7122_v19, %v7186_v26  ;;  %v8492_v58 = vsub.f32 %v7137_v28, %v7186_v26  ;;  %v8493_v34 = vsub.f32 %v7139_v3, %v7186_v26  ;;  %v3033_v18 = vsel %vm8494_vm15, %v3030_v21, %v3032_v35  ;;  %vm8516_vm15 = vmmov %vm8504_vm2 }
 0x3c0   : > { %v3035_v49 = vsel %vm8495_vm10, %v3032_v35, %v3034_v6  ;;  %v3042_v19 = vrot.slane %v7279_v32, 1  ;;  %v8496_v23 = vsub.f32 %v7164_v48, %v7186_v26  ;;  %5351 = vrot.lane.b32.xlu1 %v5350_v36, %s5525_s10  ;;  %vm8497_vm11 = vnez %v8238_v46 }
 0x3c1   : > { %v7477_v45 = vmul.f32 %v7242_v11, %v8491_v15  ;;  %v7483_v29 = vmul.f32 %v7242_v11, %v8492_v58  ;;  %v7489_v51 = vmul.f32 %v7242_v11, %v8493_v34  ;;  %v3106_v3 = vsel %vm8497_vm11, %v3035_v49, 0.0  ;;  %5341 = vrot.lane.b32.xlu0 %v5340_v22, %s5525_s10 }
 0x3c2   : > { %v7498_v28 = vmul.f32 %v7242_v11, %v8496_v23  ;;  %v3029_v38 = vsel %vm8498_vm7, %v3026_v57, %v3028_v54  ;;  %v3031_v44 = vsel %vm8499_vm12, %v3028_v54, %v3030_v21  ;;  %v2860_v35 = vrot.slane %v7285_v30, 7 }
 0x3c3   : > { %v5410_v40 = vpack.i.bf16 %v7483_v29, %v7477_v45  ;;  %v7509_v48 = vpack.i.bf16 %v3106_v3, %v3033_v18  ;;  %vm8500_vm13 = vnez %v8236_v25  ;;  %v5400_v46 = vpack.i.bf16 %v7489_v51, %v7274_v0  ;;  %v8507_v3 = vld [vmem:[#allocation10_spill] sm:$0xff] }
 0x3c4   : > { %v3104_v15 = vsel %vm8500_vm13, %v3031_v44, 0.0  ;;  %v3038_v57 = vrot.slane %v7477_v45, 1  ;;  %v3040_v21 = vrot.slane %v7483_v29, 1  ;;  %v3036_v54 = vrot.slane %v7489_v51, 1  ;;  %5366 = vrot.lane.b32.xlu1 %v5365_v2, %s5526_s11 }
 0x3c5   : > { %v7515_v36 = vpack.i.bf16 %v3104_v15, %v3029_v38  ;;  %v2868_v30 = vrot.slane %v7309_v17, 7  ;;  %v8501_v22 = vsub.f32 %v7167_v50, %v7186_v26  ;;  %v8502_v25 = vsub.f32 %v7169_v14, %v7186_v26  ;;  %5356 = vrot.lane.b32.xlu0 %v5355_v20, %s5526_s11  ;;  %v8509_v26 = vld [vmem:[#allocation25_spill] sm:$0xff] }
 0x3c6   : > { %v3046_v18 = vrot.slane %v7498_v28, 1  ;;  %v3041_v49 = vsel %vm8503_vm14, %v3038_v57, %v3040_v21  ;;  %v3043_v17 = vsel %vm8504_vm2, %v3040_v21, %v3042_v19  ;;  %v3037_v23 = vsel %vm8505_vm6, %v3034_v6, %v3036_v54 }
 0x3c7   : > { %v7525_v58 = vmul.f32 %v7242_v11, %v8501_v22  ;;  %v7531_v34 = vmul.f32 %v7242_v11, %v8502_v25  ;;  %v3039_v50 = vsel %vm8506_vm3, %v3036_v54, %v3038_v57  ;;  %vm8508_vm4 = vnez %v8507_v3 }
 0x3c8   : > { %v3110_v14 = vsel %vm8508_vm4, %v3043_v17, 0.0  ;;  %vm8510_vm1 = vnez %v8509_v26  ;;  %v2864_v2 = vrot.slane %v7256_v41, 7  ;;  %v2862_v21 = vrot.slane %v7253_v9, 7  ;;  %5371 = vrot.lane.b32.xlu1 %v5370_v43, %s5525_s10  ;;  %v8513_v9 = vld [vmem:[#allocation11_spill] sm:$0xff] }
 0x3c9   : > { %v3108_v11 = vsel %vm8510_vm1, %v3039_v50, 0.0  ;;  %v5430_v38 = vpack.i.bf16 %v7525_v58, %v7498_v28  ;;  %v7547_v44 = vpack.i.bf16 %v3110_v14, %v3041_v49  ;;  %v5420_v6 = vpack.i.bf16 %v7531_v34, %v7279_v32  ;;  %5361 = vrot.lane.b32.xlu0 %v5360_v5, %s5525_s10 }
 0x3ca   : > { %v7549_v15 = vpack.i.bf16 %v3108_v11, %v3037_v23  ;;  %v3048_v20 = vrot.slane %v7525_v58, 1  ;;  %v3044_v57 = vrot.slane %v7531_v34, 1  ;;  %v2859_v54 = vrot.slane %v7282_v33, 7  ;;  %v7598_v11 = vld [vmem:[%s8116_s3] sm:$0xff]  }
 0x3cb   : > { %v2870_v22 = vrot.slane %v7291_v59, 7  ;;  %v2872_v49 = vrot.slane %v7306_v47, 7  ;;  %v2866_v17 = vrot.slane %v7259_v13, 7  ;;  %vm8514_vm0 = vnez %v8513_v9  ;;  %v8518_v47 = vld [vmem:[#allocation7_spill] sm:$0xff] }
 0x3cc   : > { %v3049_v41 = vsel %vm8511_vm8, %v3046_v18, %v3048_v20  ;;  %v3082_v25 = vsel %vm8512_vm9, %v3048_v20, 0.0  ;;  %v3045_v23 = vsel %vm8515_vm5, %v3042_v19, %v3044_v57  ;;  %v3047_v43 = vsel %vm8516_vm15, %v3044_v57, %v3046_v18  ;;  %5386 = vrot.lane.b32.xlu1 %v7465_v7, %s5526_s11 }
 0x3cd   : > { %v3114_v59 = vsel %vm8514_vm0, %v3082_v25, 0.0  ;;  %vm8517_vm10 = vcmask 1040384   ;;  %vm8519_vm11 = vnez %v8518_v47  ;;  %v2876_v5 = vrot.slane %v7336_v60, 7  ;;  %5376 = vrot.lane.b32.xlu0 %v7467_v1, %s5526_s11 }
 0x3ce   : > { %v7575_v50 = vsel %vm8517_vm10, %v2860_v35, %v2862_v21  ;;  %v7577_v3 = vpack.i.bf16 %v3114_v59, %v3049_v41  ;;  %v3112_v13 = vsel %vm8519_vm11, %v3047_v43, 0.0  ;;  %vm8520_vm7 = vmmov %vm8517_vm10  ;;  %v2884_v20 = vrot.slane %v7377_v4, 7 }
 0x3cf   : > { %v7582_v14 = vsel %vm8520_vm7, %v2862_v21, %v2864_v2  ;;  %v7585_v26 = vpack.i.bf16 %v3112_v13, %v3045_v23  ;;  %vm8521_vm12 = vmmov %vm8520_vm7  ;;  %vm8526_vm3 = vcmask 1043456   ;;  %v2878_v41 = vrot.slane %v7330_v52, 7 }
 0x3d0   : > { %v7590_v19 = vsel %vm8521_vm12, %v2859_v54, %v2860_v35  ;;  %vm8522_vm13 = vmmov %vm8520_vm7  ;;  %v2892_v35 = vrot.slane %v7413_v61, 7  ;;  %v3519_v4 = vsel %vm8526_vm3, %v7348_v63, 0  ;;  %v2880_v7 = vrot.slane %v7333_v16, 7  ;;  %5391 = vrot.lane.b32.xlu1 %v5390_v12, %s5525_s10 }
 0x3d1   : > { %v7593_v18 = vsel %vm8522_vm13, %v2868_v30, %v2870_v22  ;;  %vm8523_vm14 = vmmov %vm8520_vm7  ;;  %4761 = vmatpush3.bf16.msra.mxu1 %v3519_v4  ;;  %v2888_v61 = vrot.slane %v7371_v39, 7  ;;  %v2882_v1 = vrot.slane %v7265_v10, 7  ;;  %v2894_v63 = vrot.slane %v7401_v27, 7  ;;  %5381 = vrot.lane.b32.xlu0 %v5380_v55, %s5525_s10 }
 0x3d2   : > { %v7604_v60 = vsel %vm8523_vm14, %v2870_v22, %v2872_v49  ;;  %vm8524_vm2 = vmmov %vm8520_vm7  ;;  %v2874_v22 = vrot.slane %v7262_v31, 7  ;;  %4794 = vmatprep.subr.bf16.mxu1 %v7598_v11  ;;  %v2896_v52 = vrot.slane %v7407_v62, 7  ;;  %v2900_v10 = vrot.slane %v7449_v24, 7 }
 0x3d3   : > { %v7607_v57 = vsel %vm8524_vm2, %v2864_v2, %v2866_v17  ;;  %vm8525_vm6 = vmmov %vm8524_vm2  ;;  %v2886_v2 = vrot.slane %v7343_v8, 7  ;;  %v2890_v55 = vrot.slane %v7268_v56, 7  ;;  %v2904_v9 = vrot.slane %v7443_v42, 7 }
 0x3d4   : > { %v7613_v21 = vsel %vm8525_vm6, %v2866_v17, %v2868_v30  ;;  %vm8527_vm4 = vmmov %vm8524_vm2  ;;  %v2902_v17 = vrot.slane %v7422_v37, 7  ;;  %5406 = vrot.lane.b32.xlu1 %v7509_v48, %s5526_s11  ;;  %v2898_v59 = vrot.slane %v7271_v53, 7  ;;  %v2910_v23 = vrot.slane %v7477_v45, 7 }
 0x3d5   : > { %v7623_v25 = vsel %vm8527_vm4, %v2876_v5, %v2878_v41  ;;  %vm8528_vm1 = vmmov %vm8524_vm2  ;;  %v2912_v43 = vrot.slane %v7483_v29, 7  ;;  %5396 = vrot.lane.b32.xlu0 %v7515_v36, %s5526_s11  ;;  %v2906_v42 = vrot.slane %v7274_v0, 7  ;;  %v2916_v13 = vrot.slane %v7531_v34, 7 }
 0x3d6   : > { %v7634_v31 = vsel %vm8528_vm1, %v2878_v41, %v2880_v7  ;;  %vm8529_vm8 = vmmov %vm8528_vm1  ;;  %v2918_v41 = vrot.slane %v7498_v28, 7 }
 0x3d7   : > { %v7637_v16 = vsel %vm8529_vm8, %v2872_v49, %v2874_v22  ;;  %vm8530_vm9 = vmmov %vm8528_vm1  ;;  %v2908_v49 = vrot.slane %v7489_v51, 7 }
 0x3d8   : > { %v7640_v8 = vsel %vm8530_vm9, %v2874_v22, %v2876_v5  ;;  %vm8531_vm0 = vmmov %vm8528_vm1  ;;  %5411 = vrot.lane.b32.xlu1 %v5410_v40, %s5525_s10  ;;  %v2914_v22 = vrot.slane %v7279_v32, 7  ;;  %v8551_v32 = vld [vmem:[#allocation28_spill] sm:$0xff] }
 0x3d9   : > { %v7648_v39 = vsel %vm8531_vm0, %v2884_v20, %v2886_v2  ;;  %vm8532_vm5 = vmmov %vm8531_vm0  ;;  %5401 = vrot.lane.b32.xlu0 %v5400_v46, %s5525_s10  ;;  %v7720_v45 = vsel %vm8531_vm0, %v2916_v13, %v2918_v41 }
 0x3da   : > { %v7651_v27 = vsel %vm8532_vm5, %v2886_v2, %v2888_v61  ;;  %vm8533_vm15 = vmmov %vm8531_vm0 }
 0x3db   : > { %v7654_v62 = vsel %vm8533_vm15, %v2880_v7, %v2882_v1  ;;  %vm8534_vm10 = vmmov %vm8531_vm0  ;;  %v2920_v7 = vrot.slane %v7525_v58, 7 }
 0x3dc   : > { %v7657_v12 = vsel %vm8534_vm10, %v2882_v1, %v2884_v20  ;;  %vm8535_vm11 = vmmov %vm8531_vm0  ;;  %5426 = vrot.lane.b32.xlu1 %v7547_v44, %s5526_s11 }
 0x3dd   : > { %v7660_v30 = vsel %vm8535_vm11, %v2892_v35, %v2894_v63  ;;  %vm8536_vm7 = vmmov %vm8531_vm0  ;;  %5416 = vrot.lane.b32.xlu0 %v7549_v15, %s5526_s11 }
 0x3de   : > { %v7664_v24 = vsel %vm8536_vm7, %v2894_v63, %v2896_v52  ;;  %vm8537_vm12 = vmmov %vm8531_vm0  ;;  %vm8552_vm7 = vnez %v8551_v32 }
 0x3df   : > { %v7677_v47 = vsel %vm8537_vm12, %v2888_v61, %v2890_v55  ;;  %vm8538_vm13 = vmmov %vm8531_vm0  ;;  %v2957_v34 = vsel %vm8552_vm7, %v7575_v50, 0.0 }
 0x3e0   : > { %v7680_v56 = vsel %vm8538_vm13, %v2890_v55, %v2892_v35  ;;  %vm8539_vm14 = vmmov %vm8531_vm0  ;;  %5431 = vrot.lane.b32.xlu1 %v5430_v38, %s5525_s10  ;;  %vm8555_vm13 = vcmask 64512  }
 0x3e1   : > { %v7683_v37 = vsel %vm8539_vm14, %v2900_v10, %v2902_v17  ;;  %vm8540_vm2 = vmmov %vm8531_vm0  ;;  %5421 = vrot.lane.b32.xlu0 %v5420_v6, %s5525_s10  ;;  %v8553_v6 = vld [vmem:[#allocation27_spill] sm:$0xff]  ;;  %s4333_s10 = scalar_lea.sflag [#allocation5], %s215_s8 }
 0x3e2   : > { %v7687_v53 = vsel %vm8540_vm2, %v2902_v17, %v2904_v9  ;;  %vm8541_vm6 = vmmov %vm8531_vm0  ;;  %vm8554_vm12 = vnez %v8553_v6 }
 0x3e3   : > { %v7690_v48 = vsel %vm8541_vm6, %v2896_v52, %v2898_v59  ;;  %vm8542_vm3 = vmmov %vm8531_vm0 }
 0x3e4   : > { %v7694_v36 = vsel %vm8542_vm3, %v2898_v59, %v2900_v10  ;;  %vm8543_vm4 = vmmov %vm8531_vm0  ;;  %5441 = vrot.lane.b32.xlu1 %v7577_v3, %s5526_s11  ;;  %vm8559_vm3 = vcmask 130048  }
 0x3e5   : > { %v7697_v5 = vsel %vm8543_vm4, %v2908_v49, %v2910_v23  ;;  %vm8544_vm1 = vmmov %vm8531_vm0  ;;  %5436 = vrot.lane.b32.xlu0 %v7585_v26, %s5526_s11  ;;  %s5461_s11 = scalar_lea.vmem %s8068_s13, 256 }
 0x3e6   : > { %v7700_v20 = vsel %vm8544_vm1, %v2910_v23, %v2912_v43  ;;  %vm8545_vm8 = vmmov %vm8531_vm0  ;;  %p5462_p11 = scmp.ne.s32.totalorder %s8068_s13, %s5461_s11  ;;  %p5469_p1 = scmp.lt.s32.totalorder %s5467_s25, %s5461_s11 }
 0x3e7   : > { %v7707_v35 = vsel %vm8545_vm8, %v2904_v9, %v2906_v42  ;;  %vm8546_vm9 = vmmov %vm8531_vm0 }
 0x3e8   : > { %v7710_v4 = vsel %vm8546_vm9, %v2906_v42, %v2908_v49  ;;  %vm8547_vm5 = vmmov %vm8531_vm0  ;;  %vm8563_vm9 = vcmask 195584   ;;  %p5463_p12 = pnand %p5462_p11, %p5597_p5  ;;  %p5470_p2 = por %p5469_p1, %p5468_p0 }
 0x3e9   : > { %v7723_v29 = vsel %vm8547_vm5, %v2918_v41, %v2920_v7  ;;  %vm8548_vm15 = vmmov %vm8531_vm0 }
 0x3ea   : > { %v7726_v40 = vsel %vm8548_vm15, %v2912_v43, %v2914_v22  ;;  %vm8549_vm10 = vmmov %vm8531_vm0  ;;  %p5464_p13 = pneg %p5463_p12 }
 0x3eb   : > { %v7729_v2 = vsel %vm8549_vm10, %v2914_v22, %v2916_v13  ;;  %vm8550_vm11 = vmmov %vm8531_vm0  ;;  %v8565_v22 = vld [vmem:[#allocation30_spill] sm:$0xff] }
 0x3ec   : > { %v2954_v28 = vsel %vm8550_vm11, 0.0, %v2859_v54  ;;  %vm8556_vm14 = vmmov %vm8555_vm13  ;;  %vm8566_vm5 = vnez %v8565_v22  ;;  %p5471_p3 = pnand %p5470_p2, %p5464_p13 }
 0x3ed   : > { %v2955_v3 = vsel %vm8554_vm12, %v2954_v28, 0.0  ;;  %vm8557_vm2 = vmmov %vm8555_vm13 }
 0x3ee   : > { %vm8558_vm6 = vmmov %vm8557_vm2 }
 0x3ef   : > { %vm8560_vm4 = vmmov %vm8559_vm3 }
 0x3f0   : > { %vm8561_vm1 = vmmov %vm8559_vm3 }
 0x3f1   : > { %vm8562_vm8 = vmmov %vm8561_vm1 }
 0x3f2   : > { %vm8564_vm0 = vmmov %vm8563_vm9 }
 0x3f3   : > { %vm8569_vm10 = vmmov %vm8557_vm2 }
 0x3f4   : > { %vm8570_vm11 = vmmov %vm8557_vm2 }
 0x3f5   : > { %vm8571_vm7 = vmmov %vm8557_vm2 }
 0x3f6   : > { %vm8572_vm12 = vmmov %vm8557_vm2 }
 0x419   : > { %v5292_v0 = vpop.permute.xlu1 %5291 }
 0x41a   : > { %v5294_v46 = vunpack.i.h.bf16 %v5292_v0  ;;  %v5293_v44 = vunpack.i.l.bf16 %v5292_v0  ;;  %v2961_v0 = vsel %vm8566_vm5, %v7593_v18, 0.0  ;;  %vm8585_vm5 = vcmask 1043456  }
 0x41b   : > { %v5287_v51 = vpop.permute.xlu0 %5286 }
 0x41c   : > { %v5289_v58 = vunpack.i.h.bf16 %v5287_v51  ;;  %v5288_v38 = vunpack.i.l.bf16 %v5287_v51  ;;  %v3341_v63 = vsel %vm8555_vm13, %v2957_v34, %v5293_v44  ;;  %v3342_v33 = vsel %vm8556_vm14, %v7582_v14, %v5294_v46  ;;  %v8567_v51 = vld [vmem:[#allocation29_spill] sm:$0xff]  ;;  %vm8573_vm13 = vmmov %vm8561_vm1 }
 0x41d   : > { %vm8568_vm15 = vnez %v8567_v51  ;;  %vm8574_vm14 = vmmov %vm8561_vm1 }
 0x41e   : > { %v5307_v15 = vpop.permute.xlu1 %5306  ;;  %v3339_v10 = vsel %vm8557_vm2, %v2955_v3, %v5288_v38  ;;  %v3340_v49 = vsel %vm8558_vm6, %v7590_v19, %v5289_v58  ;;  %v2959_v46 = vsel %vm8568_vm15, %v7607_v57, 0.0  ;;  %vm8575_vm2 = vmmov %vm8561_vm1 }
 0x41f   : > { %v5309_v61 = vunpack.i.h.bf16 %v5307_v15  ;;  %v5308_v26 = vunpack.i.l.bf16 %v5307_v15  ;;  %v5297_v1 = vpop.permute.xlu0 %5296  ;;  %vm8576_vm6 = vmmov %vm8561_vm1 }
 0x420   : > { %v5299_v52 = vunpack.i.h.bf16 %v5297_v1  ;;  %v5298_v54 = vunpack.i.l.bf16 %v5297_v1  ;;  %vm8586_vm15 = vmmov %vm8571_vm7 }
 0x421   : > { %v3373_v50 = vsel %vm8559_vm3, %v3341_v63, %v5308_v26  ;;  %v3374_v55 = vsel %vm8560_vm4, %v3342_v33, %v5309_v61  ;;  %vm8577_vm3 = vmmov %vm8564_vm0 }
 0x422   : > { %v3404_v17 = vpack.c.bf16 %v3374_v55, %v3373_v50  ;;  %v3371_v9 = vsel %vm8561_vm1, %v3339_v10, %v5298_v54  ;;  %v3372_v59 = vsel %vm8562_vm8, %v3340_v49, %v5299_v52  ;;  %v5312_v23 = vpop.permute.xlu1 %5311  ;;  %vm8578_vm4 = vmmov %vm8564_vm0 }
 0x423   : > { %v3403_v43 = vpack.c.bf16 %v3372_v59, %v3371_v9  ;;  %v5302_v42 = vpop.permute.xlu0 %5301  ;;  %v5314_v14 = vunpack.i.h.bf16 %v5312_v23  ;;  %v5313_v13 = vunpack.i.l.bf16 %v5312_v23  ;;  %vm8579_vm1 = vmmov %vm8564_vm0  ;;  %v8583_v23 = vld [vmem:[#allocation31_spill] sm:$0xff] }
 0x424   : > { %3422 = vst.msk [vmem:[#allocation3 + $0x10] sm:$0xff] %vm8563_vm9, %v3404_v17  ;;  %v5304_v41 = vunpack.i.h.bf16 %v5302_v42  ;;  %v5303_v19 = vunpack.i.l.bf16 %v5302_v42  ;;  %v8580_v17 = vld [vmem:[#allocation13_spill] sm:$0xff]  ;;  %vm8582_vm9 = vmmov %vm8564_vm0 }
 0x425   : > { %3421 = vst.msk [vmem:[#allocation3 + $0x8] sm:$0xff] %vm8564_vm0, %v3403_v43  ;;  %v3346_v38 = vsel %vm8569_vm10, %v7604_v60, %v5314_v14  ;;  %v3345_v15 = vsel %vm8570_vm11, %v2961_v0, %v5313_v13  ;;  %vm8581_vm8 = vnez %v8580_v17  ;;  %vm8584_vm0 = vnez %v8583_v23  ;;  %vm8587_vm10 = vmmov %vm8571_vm7 }
 0x426   : > { %v5327_v7 = vpop.permute.xlu1 %5326  ;;  %v3344_v6 = vsel %vm8571_vm7, %v7613_v21, %v5304_v41  ;;  %v3343_v3 = vsel %vm8572_vm12, %v2959_v46, %v5303_v19  ;;  %v5454_v21 = vld [vmem:[%s8116_s3 + $0x8] ss:$0 sps:$4 sm:$0xff]   ;;  %v2965_v9 = vsel %vm8581_vm8, %v7623_v25, 0.0  ;;  %v2963_v43 = vsel %vm8584_vm0, %v7637_v16, 0.0  ;;  %vm8588_vm11 = vmmov %vm8585_vm5  ;;  %v7811_v16 = vld [vmem:[%s8116_s3 + $0x18] sm:$0xff]  }
 0x427   : > { %v5329_v44 = vunpack.i.h.bf16 %v5327_v7  ;;  %v5328_v28 = vunpack.i.l.bf16 %v5327_v7  ;;  %v5317_v58 = vpop.permute.xlu0 %5316  ;;  %v3695_v41 = vsel %vm8585_vm5, %v5454_v21, 0  ;;  %vm8589_vm12 = vmmov %vm8571_vm7 }
 0x428   : > { %v5319_v32 = vunpack.i.h.bf16 %v5317_v58  ;;  %v5318_v34 = vunpack.i.l.bf16 %v5317_v58  ;;  %vm8595_vm8 = vmmov %vm8579_vm1 }
 0x429   : > { %v3377_v18 = vsel %vm8573_vm13, %v3345_v15, %v5328_v28  ;;  %v3378_v61 = vsel %vm8574_vm14, %v3346_v38, %v5329_v44  ;;  %vm8590_vm13 = vmmov %vm8575_vm2 }
 0x42a   : > { %v3406_v57 = vpack.c.bf16 %v3378_v61, %v3377_v18  ;;  %v3375_v26 = vsel %vm8575_vm2, %v3343_v3, %v5318_v34  ;;  %v3376_v1 = vsel %vm8576_vm6, %v3344_v6, %v5319_v32  ;;  %v5332_v63 = vpop.permute.xlu1 %5331  ;;  %vm8591_vm14 = vmmov %vm8575_vm2 }
 0x42b   : > { %v3405_v60 = vpack.c.bf16 %v3376_v1, %v3375_v26  ;;  %v5322_v33 = vpop.permute.xlu0 %5321  ;;  %v7783_v52 = vld [vmem:[#allocation3 + $0x10] sm:$0xff]  ;;  %v5334_v54 = vunpack.i.h.bf16 %v5332_v63  ;;  %v5333_v10 = vunpack.i.l.bf16 %v5332_v63  ;;  %vm8592_vm6 = vmmov %vm8575_vm2  ;;  %v8598_v1 = vld [vmem:[#allocation14_spill] sm:$0xff] }
 0x42c   : > { %3424 = vst.msk [vmem:[#allocation3 + $0x20] sm:$0xff] %vm8577_vm3, %v3406_v57  ;;  %v7789_v49 = vld [vmem:[#allocation3 + $0x8] sm:$0xff]  ;;  %v5324_v50 = vunpack.i.h.bf16 %v5322_v33  ;;  %v5323_v55 = vunpack.i.l.bf16 %v5322_v33  ;;  %vm8593_vm3 = vmmov %vm8579_vm1  ;;  %v8596_v57 = vld [vmem:[#allocation15_spill] sm:$0xff]  ;;  %vm8599_vm0 = vnez %v8598_v1 }
 0x42d   : > { %3423 = vst.msk [vmem:[#allocation3 + $0x18] sm:$0xff] %vm8578_vm4, %v3405_v60  ;;  %4762 = vmatprep.mubr.msk.bf16.mxu1 %vm8579_vm1, %v7789_v49  ;;  %v3350_v19 = vsel %vm8586_vm15, %v7634_v31, %v5334_v54  ;;  %v3349_v25 = vsel %vm8587_vm10, %v2965_v9, %v5333_v10  ;;  %vm8594_vm4 = vmmov %vm8579_vm1  ;;  %v2967_v63 = vsel %vm8599_vm0, %v7654_v62, 0.0 }
 0x42e   : > { %4763 = vmatmul.mubr.msk.bf16.vlgmr.msra.gmra.mrb[0].mxu1 %vm8582_vm9, %v7783_v52  ;;  %v5347_v59 = vpop.permute.xlu1 %5346  ;;  %v3347_v0 = vsel %vm8589_vm12, %v2963_v43, %v5323_v55  ;;  %vm8597_vm9 = vnez %v8596_v57  ;;  %vm8600_vm5 = vmmov %vm8571_vm7 }
 0x42f   : > { %4795 = vmatpush3.bf16.msra.mxu1 %v7598_v11  ;;  %v5349_v42 = vunpack.i.h.bf16 %v5347_v59  ;;  %v5348_v14 = vunpack.i.l.bf16 %v5347_v59  ;;  %v5337_v13 = vpop.permute.xlu0 %5336  ;;  %v3348_v11 = vsel %vm8571_vm7, %v7640_v8, %v5324_v50  ;;  %v2969_v26 = vsel %vm8597_vm9, %v7648_v39, 0.0  ;;  %vm8601_vm15 = vmmov %vm8600_vm5 }
 0x430   : > { %v5339_v7 = vunpack.i.h.bf16 %v5337_v13  ;;  %v5338_v22 = vunpack.i.l.bf16 %v5337_v13  ;;  %4998 = vmatprep.subr.msk.bf16.mxu1 %vm8588_vm11, %v5454_v21  ;;  %vm8602_vm10 = vmmov %vm8600_vm5 }
 0x431   : > { %v3381_v51 = vsel %vm8590_vm13, %v3349_v25, %v5348_v14  ;;  %v3382_v31 = vsel %vm8591_vm14, %v3350_v19, %v5349_v42  ;;  %vm8603_vm11 = vmmov %vm8600_vm5 }
 0x432   : > { %v3408_v46 = vpack.c.bf16 %v3382_v31, %v3381_v51  ;;  %v3379_v44 = vsel %vm8575_vm2, %v3347_v0, %v5338_v22  ;;  %v3380_v28 = vsel %vm8592_vm6, %v3348_v11, %v5339_v7  ;;  %v5352_v58 = vpop.permute.xlu1 %5351  ;;  %vm8604_vm7 = vmmov %vm8575_vm2  ;;  %v8612_v11 = vld [vmem:[#allocation17_spill] sm:$0xff]  ;;  %v8614_v51 = vld [vmem:[#allocation16_spill] sm:$0xff] }
 0x433   : > { %v3407_v38 = vpack.c.bf16 %v3380_v28, %v3379_v44  ;;  %v5342_v15 = vpop.permute.xlu0 %5341  ;;  %v7820_v32 = vld [vmem:[#allocation3 + $0x20] sm:$0xff]  ;;  %4797 = vmatpush3.bf16.msra.mxu1 %v3695_v41  ;;  %v5354_v8 = vunpack.i.h.bf16 %v5352_v58  ;;  %v5353_v34 = vunpack.i.l.bf16 %v5352_v58  ;;  %vm8605_vm12 = vmmov %vm8575_vm2 }
 0x434   : > { %3426 = vst.msk [vmem:[#allocation3 + $0x30] sm:$0xff] %vm8593_vm3, %v3408_v46  ;;  %v7823_v6 = vld [vmem:[#allocation3 + $0x18] sm:$0xff]  ;;  %4830 = vmatprep.subr.bf16.mxu1 %v7811_v16  ;;  %v5344_v3 = vunpack.i.h.bf16 %v5342_v15  ;;  %v5343_v18 = vunpack.i.l.bf16 %v5342_v15  ;;  %vm8606_vm13 = vmmov %vm8575_vm2 }
 0x435   : > { %3425 = vst.msk [vmem:[#allocation3 + $0x28] sm:$0xff] %vm8594_vm4, %v3407_v38  ;;  %4766 = vmatprep.mubr.msk.bf16.mxu1 %vm8579_vm1, %v7823_v6  ;;  %v3354_v54 = vsel %vm8600_vm5, %v7651_v27, %v5354_v8  ;;  %v3353_v10 = vsel %vm8601_vm15, %v2969_v26, %v5353_v34  ;;  %vm8607_vm14 = vmmov %vm8575_vm2 }
 0x436   : > { %4767 = vmatmul.mubr.msk.bf16.gmra.mrb[4].mxu1 %vm8595_vm8, %v7820_v32  ;;  %v5367_v61 = vpop.permute.xlu1 %5366  ;;  %v3352_v17 = vsel %vm8602_vm10, %v7657_v12, %v5344_v3  ;;  %v3351_v9 = vsel %vm8603_vm11, %v2967_v63, %v5343_v18  ;;  %vm8608_vm2 = vmmov %vm8579_vm1  ;;  %vm8615_vm8 = vnez %v8614_v51 }
 0x437   : > { %v5369_v60 = vunpack.i.h.bf16 %v5367_v61  ;;  %v5368_v33 = vunpack.i.l.bf16 %v5367_v61  ;;  %v5357_v21 = vpop.permute.xlu0 %5356  ;;  %vm8609_vm6 = vmmov %vm8579_vm1  ;;  %v2971_v31 = vsel %vm8615_vm8, %v7677_v47, 0.0 }
 0x438   : > { %v5359_v50 = vunpack.i.h.bf16 %v5357_v21  ;;  %v5358_v55 = vunpack.i.l.bf16 %v5357_v21  ;;  %vm8610_vm3 = vmmov %vm8579_vm1 }
 0x439   : > { %v3385_v39 = vsel %vm8604_vm7, %v3353_v10, %v5368_v33  ;;  %v3386_v59 = vsel %vm8605_vm12, %v3354_v54, %v5369_v60  ;;  %vm8611_vm4 = vmmov %vm8579_vm1  ;;  %vm8613_vm1 = vnez %v8612_v11 }
 0x43a   : > { %v3410_v62 = vpack.c.bf16 %v3386_v59, %v3385_v39  ;;  %v3383_v23 = vsel %vm8606_vm13, %v3351_v9, %v5358_v55  ;;  %v3384_v43 = vsel %vm8607_vm14, %v3352_v17, %v5359_v50  ;;  %v5372_v42 = vpop.permute.xlu1 %5371  ;;  %v2973_v0 = vsel %vm8613_vm1, %v7660_v30, 0.0  ;;  %vm8616_vm9 = vmmov %vm8600_vm5  ;;  %v8626_v50 = vld [vmem:[#allocation19_spill] sm:$0xff]  ;;  %v8628_v17 = vld [vmem:[#allocation18_spill] sm:$0xff] }
 0x43b   : > { %v3409_v27 = vpack.c.bf16 %v3384_v43, %v3383_v23  ;;  %v5362_v14 = vpop.permute.xlu0 %5361  ;;  %v7847_v13 = vld [vmem:[#allocation3 + $0x30] sm:$0xff]  ;;  %v5374_v41 = vunpack.i.h.bf16 %v5372_v42  ;;  %v5373_v12 = vunpack.i.l.bf16 %v5372_v42  ;;  %vm8617_vm0 = vmmov %vm8600_vm5 }
 0x43c   : > { %3428 = vst.msk [vmem:[#allocation3 + $0x40] sm:$0xff] %vm8608_vm2, %v3410_v62  ;;  %v7850_v19 = vld [vmem:[#allocation3 + $0x28] sm:$0xff]  ;;  %v5364_v25 = vunpack.i.h.bf16 %v5362_v14  ;;  %v5363_v7 = vunpack.i.l.bf16 %v5362_v14  ;;  %vm8618_vm5 = vmmov %vm8617_vm0 }
 0x43d   : > { %3427 = vst.msk [vmem:[#allocation3 + $0x38] sm:$0xff] %vm8609_vm6, %v3409_v27  ;;  %4770 = vmatprep.mubr.msk.bf16.mxu1 %vm8610_vm3, %v7850_v19  ;;  %v3358_v58 = vsel %vm8616_vm9, %v7664_v24, %v5374_v41  ;;  %v3357_v38 = vsel %vm8617_vm0, %v2973_v0, %v5373_v12  ;;  %vm8619_vm15 = vmmov %vm8617_vm0  ;;  %vm8627_vm3 = vnez %v8626_v50 }
 0x43e   : > { %4771 = vmatmul.mubr.msk.bf16.gmra.mrb[8].mxu1 %vm8611_vm4, %v7847_v13  ;;  %v5387_v22 = vpop.permute.xlu1 %5386  ;;  %v3356_v34 = vsel %vm8618_vm5, %v7680_v56, %v5364_v25  ;;  %v3355_v3 = vsel %vm8619_vm15, %v2971_v31, %v5363_v7  ;;  %vm8620_vm10 = vmmov %vm8604_vm7  ;;  %v2977_v55 = vsel %vm8627_vm3, %v7683_v37, 0.0  ;;  %vm8629_vm4 = vnez %v8628_v17 }
 0x43f   : > { %v5389_v46 = vunpack.i.h.bf16 %v5387_v22  ;;  %v5388_v44 = vunpack.i.l.bf16 %v5387_v22  ;;  %v5377_v28 = vpop.permute.xlu0 %5376  ;;  %vm8621_vm11 = vmmov %vm8604_vm7  ;;  %v2975_v9 = vsel %vm8629_vm4, %v7690_v48, 0.0 }
 0x440   : > { %v5379_v15 = vunpack.i.h.bf16 %v5377_v28  ;;  %v5378_v8 = vunpack.i.l.bf16 %v5377_v28  ;;  %vm8622_vm12 = vmmov %vm8604_vm7 }
 0x441   : > { %v3389_v30 = vsel %vm8620_vm10, %v3357_v38, %v5388_v44  ;;  %v3390_v18 = vsel %vm8621_vm11, %v3358_v58, %v5389_v46  ;;  %vm8623_vm13 = vmmov %vm8608_vm2  ;;  %v8641_v58 = vld [vmem:[#allocation21_spill] sm:$0xff] }
 0x442   : > { %v3412_v47 = vpack.c.bf16 %v3390_v18, %v3389_v30  ;;  %v3387_v61 = vsel %vm8604_vm7, %v3355_v3, %v5378_v8  ;;  %v3388_v57 = vsel %vm8622_vm12, %v3356_v34, %v5379_v15  ;;  %v5392_v26 = vpop.permute.xlu1 %5391  ;;  %vm8624_vm14 = vmmov %vm8608_vm2  ;;  %v8643_v15 = vld [vmem:[#allocation20_spill] sm:$0xff] }
 0x443   : > { %v3411_v24 = vpack.c.bf16 %v3388_v57, %v3387_v61  ;;  %v5382_v1 = vpop.permute.xlu0 %5381  ;;  %v7873_v63 = vld [vmem:[#allocation3 + $0x40] sm:$0xff]  ;;  %v5394_v60 = vunpack.i.h.bf16 %v5392_v26  ;;  %v5393_v56 = vunpack.i.l.bf16 %v5392_v26  ;;  %vm8625_vm6 = vmmov %vm8608_vm2 }
 0x444   : > { %3430 = vst.msk [vmem:[#allocation3 + $0x50] sm:$0xff] %vm8623_vm13, %v3412_v47  ;;  %v7876_v33 = vld [vmem:[#allocation3 + $0x38] sm:$0xff]  ;;  %v5384_v21 = vunpack.i.h.bf16 %v5382_v1  ;;  %v5383_v54 = vunpack.i.l.bf16 %v5382_v1  ;;  %vm8630_vm1 = vmmov %vm8617_vm0 }
 0x445   : > { %3429 = vst.msk [vmem:[#allocation3 + $0x48] sm:$0xff] %vm8624_vm14, %v3411_v24  ;;  %4774 = vmatprep.mubr.msk.bf16.mxu1 %vm8608_vm2, %v7876_v33  ;;  %v3362_v23 = vsel %vm8630_vm1, %v7687_v53, %v5394_v60  ;;  %vm8631_vm8 = vmmov %vm8617_vm0 }
 0x446   : > { %4775 = vmatmul.mubr.msk.bf16.gmra.mrb[12].mxu1 %vm8625_vm6, %v7873_v63  ;;  %v5407_v10 = vpop.permute.xlu1 %5406  ;;  %v3361_v43 = vsel %vm8631_vm8, %v2977_v55, %v5393_v56  ;;  %vm8632_vm9 = vmmov %vm8617_vm0  ;;  %v3359_v41 = vsel %vm8617_vm0, %v2975_v9, %v5383_v54  ;;  %vm8644_vm6 = vnez %v8643_v15 }
 0x447   : > { %v5409_v39 = vunpack.i.h.bf16 %v5407_v10  ;;  %v5408_v59 = vunpack.i.l.bf16 %v5407_v10  ;;  %v5397_v62 = vpop.permute.xlu0 %5396  ;;  %v3360_v14 = vsel %vm8632_vm9, %v7694_v36, %v5384_v21  ;;  %vm8633_vm5 = vmmov %vm8604_vm7  ;;  %v2979_v8 = vsel %vm8644_vm6, %v7707_v35, 0.0 }
 0x448   : > { %v5399_v42 = vunpack.i.h.bf16 %v5397_v62  ;;  %v5398_v27 = vunpack.i.l.bf16 %v5397_v62  ;;  %vm8634_vm15 = vmmov %vm8633_vm5 }
 0x449   : > { %v3393_v37 = vsel %vm8633_vm5, %v3361_v43, %v5408_v59  ;;  %v3394_v12 = vsel %vm8634_vm15, %v3362_v23, %v5409_v39  ;;  %vm8635_vm10 = vmmov %vm8633_vm5  ;;  %v8656_v59 = vld [vmem:[#allocation22_spill] sm:$0xff] }
 0x44a   : > { %v3414_v48 = vpack.c.bf16 %v3394_v12, %v3393_v37  ;;  %v3391_v25 = vsel %vm8635_vm10, %v3359_v41, %v5398_v27  ;;  %vm8636_vm11 = vmmov %vm8633_vm5  ;;  %v5412_v22 = vpop.permute.xlu1 %5411  ;;  %v8658_v23 = vld [vmem:[#allocation26_spill] sm:$0xff] }
 0x44b   : > { %v3392_v7 = vsel %vm8636_vm11, %v3360_v14, %v5399_v42  ;;  %v5402_v11 = vpop.permute.xlu0 %5401  ;;  %v7899_v0 = vld [vmem:[#allocation3 + $0x50] sm:$0xff]  ;;  %vm8637_vm7 = vmmov %vm8608_vm2  ;;  %v5414_v51 = vunpack.i.h.bf16 %v5412_v22  ;;  %v5413_v36 = vunpack.i.l.bf16 %v5412_v22 }
 0x44c   : > { %v3413_v53 = vpack.c.bf16 %v3392_v7, %v3391_v25  ;;  %3432 = vst.msk [vmem:[#allocation3 + $0x60] sm:$0xff] %vm8637_vm7, %v3414_v48  ;;  %v7902_v31 = vld [vmem:[#allocation3 + $0x48] sm:$0xff]  ;;  %vm8638_vm12 = vmmov %vm8608_vm2  ;;  %v5404_v46 = vunpack.i.h.bf16 %v5402_v11  ;;  %v5403_v44 = vunpack.i.l.bf16 %v5402_v11 }
 0x44d   : > { %vm8639_vm13 = vmmov %vm8608_vm2 }
 0x44e   : > { %3431 = vst.msk [vmem:[#allocation3 + $0x58] sm:$0xff] %vm8638_vm12, %v3413_v53  ;;  %4778 = vmatprep.mubr.msk.bf16.mxu1 %vm8639_vm13, %v7902_v31  ;;  %vm8640_vm14 = vmmov %vm8608_vm2  ;;  %v5427_v28 = vpop.permute.xlu1 %5426  ;;  %vm8642_vm2 = vnez %v8641_v58  ;;  %vm8657_vm13 = vnez %v8656_v59 }
 0x44f   : > { %4779 = vmatmul.mubr.msk.bf16.gmra.mrb[16].mxu1 %vm8640_vm14, %v7899_v0  ;;  %v2981_v38 = vsel %vm8642_vm2, %v7697_v5, 0.0  ;;  %v5429_v34 = vunpack.i.h.bf16 %v5427_v28  ;;  %v5428_v3 = vunpack.i.l.bf16 %v5427_v28  ;;  %v5417_v30 = vpop.permute.xlu0 %5416  ;;  %vm8645_vm3 = vmmov %vm8617_vm0  ;;  %v2985_v62 = vsel %vm8657_vm13, %v7720_v45, 0.0  ;;  %v5456_v28 = vld [vmem:[%s8116_s3 + $0x20] ss:$0 sps:$4 sm:$0xff]  }
 0x450   : > { %v3366_v18 = vsel %vm8645_vm3, %v7700_v20, %v5414_v51  ;;  %vm8646_vm4 = vmmov %vm8617_vm0  ;;  %v5419_v61 = vunpack.i.h.bf16 %v5417_v30  ;;  %v5418_v57 = vunpack.i.l.bf16 %v5417_v30  ;;  %vm8659_vm14 = vnez %v8658_v23 }
 0x451   : > { %v3365_v47 = vsel %vm8646_vm4, %v2981_v38, %v5413_v36  ;;  %vm8647_vm1 = vmmov %vm8617_vm0  ;;  %v2983_v43 = vsel %vm8659_vm14, %v7726_v40, 0.0 }
 0x452   : > { %v3364_v26 = vsel %vm8647_vm1, %v7710_v4, %v5404_v46  ;;  %vm8648_vm8 = vmmov %vm8617_vm0  ;;  %v5432_v21 = vpop.permute.xlu1 %5431 }
 0x453   : > { %v3363_v24 = vsel %vm8648_vm8, %v2979_v8, %v5403_v44  ;;  %vm8649_vm9 = vmmov %vm8633_vm5  ;;  %v5422_v54 = vpop.permute.xlu0 %5421  ;;  %v7925_v10 = vld [vmem:[#allocation3 + $0x60] sm:$0xff]  ;;  %v5434_v50 = vunpack.i.h.bf16 %v5432_v21  ;;  %v5433_v4 = vunpack.i.l.bf16 %v5432_v21 }
 0x454   : > { %v3397_v5 = vsel %vm8649_vm9, %v3365_v47, %v5428_v3  ;;  %vm8650_vm0 = vmmov %vm8633_vm5  ;;  %v5424_v17 = vunpack.i.h.bf16 %v5422_v54  ;;  %v5423_v9 = vunpack.i.l.bf16 %v5422_v54  ;;  %v3437_v44 = vld [vmem:[#allocation3] sm:$0xff] }
 0x455   : > { %v3398_v1 = vsel %vm8650_vm0, %v3366_v18, %v5429_v34  ;;  %vm8651_vm5 = vmmov %vm8650_vm0  ;;  %v7928_v55 = vld [vmem:[#allocation3 + $0x58] sm:$0xff] }
 0x456   : > { %v3416_v35 = vpack.c.bf16 %v3398_v1, %v3397_v5  ;;  %v3395_v60 = vsel %vm8651_vm5, %v3363_v24, %v5418_v57  ;;  %vm8652_vm15 = vmmov %vm8650_vm0  ;;  %4782 = vmatprep.mubr.msk.bf16.mxu1 %vm8637_vm7, %v7928_v55  ;;  %v5442_v39 = vpop.permute.xlu1 %5441 }
 0x457   : > { %v3396_v56 = vsel %vm8652_vm15, %v3364_v26, %v5419_v61  ;;  %vm8653_vm10 = vmmov %vm8637_vm7  ;;  %v5444_v42 = vunpack.i.h.bf16 %v5442_v39  ;;  %v5443_v27 = vunpack.i.l.bf16 %v5442_v39  ;;  %v5437_v14 = vpop.permute.xlu0 %5436 }
 0x458   : > { %v3415_v20 = vpack.c.bf16 %v3396_v56, %v3395_v60  ;;  %3434 = vst.msk [vmem:[#allocation3 + $0x70] sm:$0xff] %vm8653_vm10, %v3416_v35  ;;  %vm8654_vm11 = vmmov %vm8637_vm7  ;;  %v5439_v12 = vunpack.i.h.bf16 %v5437_v14  ;;  %v5438_v48 = vunpack.i.l.bf16 %v5437_v14 }
 0x459   : > { %vm8655_vm12 = vmmov %vm8637_vm7 }
 0x45a   : > { %3433 = vst.msk [vmem:[#allocation3 + $0x68] sm:$0xff] %vm8654_vm11, %v3415_v20  ;;  %4783 = vmatmul.mubr.msk.bf16.gmra.mrb[20].mxu1 %vm8655_vm12, %v7925_v10  ;;  %vm8660_vm2 = vmmov %vm8647_vm1 }
 0x45b   : > { %v3370_v41 = vsel %vm8660_vm2, %v7723_v29, %v5434_v50  ;;  %vm8661_vm6 = vmmov %vm8647_vm1 }
 0x45c   : > { %v3369_v37 = vsel %vm8661_vm6, %v2985_v62, %v5433_v4  ;;  %vm8662_vm3 = vmmov %vm8647_vm1  ;;  %vm8676_vm6 = vcmask 1043456  }
 0x45d   : > { %v3368_v25 = vsel %vm8662_vm3, %v7729_v2, %v5424_v17  ;;  %vm8663_vm4 = vmmov %vm8647_vm1 }
 0x45e   : > { %v3367_v7 = vsel %vm8663_vm4, %v2983_v43, %v5423_v9  ;;  %vm8664_vm1 = vmmov %vm8650_vm0  ;;  %v3400_v11 = vsel %vm8650_vm0, %v3368_v25, %v5439_v12 }
 0x45f   : > { %v3401_v45 = vsel %vm8664_vm1, %v3369_v37, %v5443_v27  ;;  %vm8665_vm8 = vmmov %vm8650_vm0  ;;  %v3451_v29 = vld [vmem:[#allocation3 + $0x70] sm:$0xff] }
 0x460   : > { %v3402_v22 = vsel %vm8665_vm8, %v3370_v41, %v5444_v42  ;;  %vm8666_vm9 = vmmov %vm8650_vm0 }
 0x461   : > { %v3418_v40 = vpack.c.bf16 %v3402_v22, %v3401_v45  ;;  %v3399_v53 = vsel %vm8666_vm9, %v3367_v7, %v5438_v48  ;;  %vm8667_vm5 = vmmov %vm8637_vm7  ;;  %v3450_v36 = vld [vmem:[#allocation3 + $0x68] sm:$0xff] }
 0x462   : > { %v3417_v51 = vpack.c.bf16 %v3400_v11, %v3399_v53  ;;  %vm8668_vm15 = vmmov %vm8667_vm5 }
 0x463   : > { %3436 = vst.msk [vmem:[#allocation3 + $0x80] sm:$0xff] %vm8667_vm5, %v3418_v40  ;;  %vm8669_vm10 = vmmov %vm8667_vm5 }
 0x464   : > { %3435 = vst.msk [vmem:[#allocation3 + $0x78] sm:$0xff] %vm8668_vm15, %v3417_v51  ;;  %4786 = vmatprep.mubr.msk.bf16.mxu1 %vm8669_vm10, %v3450_v36  ;;  %vm8670_vm11 = vmmov %vm8667_vm5 }
 0x465   : > { %4787 = vmatmul.mubr.msk.bf16.gmra.mrb[24].mxu1 %vm8670_vm11, %v3451_v29  ;;  %vm8671_vm7 = vmmov %vm8667_vm5 }
 0x466   : > { %vm8672_vm12 = vmmov %vm8667_vm5 }
 0x467   : > { %vm8673_vm13 = vmmov %vm8667_vm5 }
 0x468   : > { %vm8674_vm14 = vmmov %vm8667_vm5 }
 0x469   : > { %vm8675_vm2 = vmmov %vm8667_vm5 }
 0x46a   : > { %v3456_v2 = vld [vmem:[#allocation3 + $0x80] sm:$0xff]  ;;  %vm8677_vm3 = vmmov %vm8676_vm6 }
 0x46b   : > { %v3452_v46 = vld [vmem:[#allocation3 + $0x78] sm:$0xff]  ;;  %v3936_v58 = vsel %vm8677_vm3, %v5456_v28, 0  ;;  %vm8678_vm4 = vmmov %vm8675_vm2 }
 0x46c   : > { %4790 = vmatprep.mubr.msk.bf16.mxu1 %vm8671_vm7, %v3452_v46  ;;  %vm8679_vm1 = vmmov %vm8675_vm2 }
 0x46d   : > { %4791 = vmatmul.mubr.msk.bf16.gmra.mrb[28].mxu1 %vm8672_vm12, %v3456_v2  ;;  %vm8680_vm8 = vmmov %vm8679_vm1 }
 0x46e   : > { %4798 = vmatprep.mubr.msk.bf16.mxu1 %vm8673_vm13, %v3437_v44  ;;  %vm8681_vm9 = vmmov %vm8679_vm1 }
 0x46f   : > { %vm8682_vm0 = vmmov %vm8679_vm1 }
 0x470   : > { %vm8683_vm5 = vmmov %vm8682_vm0 }
 0x471   : > { %vm8684_vm15 = vmmov %vm8682_vm0 }
 0x472   : > { %vm8685_vm10 = vmmov %vm8682_vm0 }
 0x473   : > { %vm8686_vm11 = vmmov %vm8682_vm0 }
 0x474   : > { %vm8687_vm7 = vmmov %vm8682_vm0 }
 0x475   : > { %4799 = vmatmul.mubr.msk.bf16.vlgmr.msra.gmra.mrb[0].mxu1 %vm8674_vm14, %v7789_v49  ;;  %vm8688_vm12 = vmmov %vm8682_vm0  ;;  %v8021_v49 = vld [vmem:[%s8117_s4] ss:$0 sm:$0xff] }
 0x476   : > { %4831 = vmatpush3.bf16.msra.mxu1 %v7811_v16  ;;  %4802 = vmatprep.mubr.msk.bf16.mxu1 %vm8675_vm2, %v7783_v52  ;;  %vm8689_vm13 = vmmov %vm8682_vm0 }
 0x477   : > { %4999 = vmatprep.subr.msk.bf16.mxu1 %vm8676_vm6, %v5456_v28  ;;  %vm8690_vm14 = vmmov %vm8682_vm0 }
 0x478   : > { %vm8691_vm2 = vmmov %vm8682_vm0 }
 0x479   : > { %vm8692_vm6 = vmmov %vm8682_vm0 }
 0x47a   : > { %4833 = vmatpush3.bf16.msra.mxu1 %v3936_v58  ;;  %vm8693_vm3 = vmmov %vm8682_vm0 }
 0x47d   : > { %4803 = vmatmul.mubr.msk.bf16.gmra.mrb[4].mxu1 %vm8678_vm4, %v7823_v6  ;;  %vm8694_vm4 = vmmov %vm8682_vm0 }
 0x47e   : > { %4806 = vmatprep.mubr.msk.bf16.mxu1 %vm8679_vm1, %v7820_v32  ;;  %vm8695_vm1 = vmmov %vm8682_vm0 }
 0x485   : > { %4807 = vmatmul.mubr.msk.bf16.gmra.mrb[8].mxu1 %vm8680_vm8, %v7850_v19  ;;  %vm8696_vm8 = vmmov %vm8682_vm0 }
 0x486   : > { %4810 = vmatprep.mubr.msk.bf16.mxu1 %vm8681_vm9, %v7847_v13  ;;  %vm8697_vm9 = vmmov %vm8682_vm0 }
 0x48d   : > { %4811 = vmatmul.mubr.msk.bf16.gmra.mrb[12].mxu1 %vm8682_vm0, %v7876_v33 }
 0x48e   : > { %4814 = vmatprep.mubr.msk.bf16.mxu1 %vm8683_vm5, %v7873_v63  ;;  %vm8698_vm5 = vmmov %vm8682_vm0 }
 0x495   : > { %4815 = vmatmul.mubr.msk.bf16.gmra.mrb[16].mxu1 %vm8684_vm15, %v7902_v31  ;;  %vm8699_vm15 = vmmov %vm8682_vm0 }
 0x496   : > { %4818 = vmatprep.mubr.msk.bf16.mxu1 %vm8685_vm10, %v7899_v0  ;;  %vm8700_vm10 = vmmov %vm8682_vm0 }
 0x49d   : > { %4819 = vmatmul.mubr.msk.bf16.gmra.mrb[20].mxu1 %vm8686_vm11, %v7928_v55  ;;  %vm8701_vm11 = vmmov %vm8682_vm0 }
 0x49e   : > { %4822 = vmatprep.mubr.msk.bf16.mxu1 %vm8687_vm7, %v7925_v10  ;;  %vm8702_vm7 = vmmov %vm8682_vm0 }
 0x4a5   : > { %4823 = vmatmul.mubr.msk.bf16.gmra.mrb[24].mxu1 %vm8688_vm12, %v3450_v36  ;;  %vm8703_vm12 = vmmov %vm8682_vm0 }
 0x4a6   : > { %4826 = vmatprep.mubr.msk.bf16.mxu1 %vm8689_vm13, %v3451_v29  ;;  %vm8704_vm13 = vmmov %vm8682_vm0 }
 0x4ad   : > { %4827 = vmatmul.mubr.msk.bf16.gmra.mrb[28].mxu1 %vm8690_vm14, %v3452_v46  ;;  %vm8705_vm14 = vmmov %vm8682_vm0 }
 0x4ae   : > { %4834 = vmatprep.mubr.msk.bf16.mxu1 %vm8691_vm2, %v7783_v52  ;;  %v3873_v52 = vld [vmem:[#allocation3 + $0x88] sm:$0xff] }
 0x4b5   : > { %4835 = vmatmul.mubr.msk.bf16.vlgmr.msra.gmra.mrb[0].mxu1 %vm8692_vm6, %v7823_v6 }
 0x4b6   : > { %4838 = vmatprep.mubr.msk.bf16.mxu1 %vm8693_vm3, %v7820_v32 }
 0x4bd   : > { %4839 = vmatmul.mubr.msk.bf16.gmra.mrb[4].mxu1 %vm8694_vm4, %v7850_v19 }
 0x4be   : > { %4842 = vmatprep.mubr.msk.bf16.mxu1 %vm8695_vm1, %v7847_v13 }
 0x4c5   : > { %4843 = vmatmul.mubr.msk.bf16.gmra.mrb[8].mxu1 %vm8696_vm8, %v7876_v33 }
 0x4c6   : > { %4846 = vmatprep.mubr.msk.bf16.mxu1 %vm8697_vm9, %v7873_v63 }
 0x4cd   : > { %4847 = vmatmul.mubr.msk.bf16.gmra.mrb[12].mxu1 %vm8682_vm0, %v7902_v31 }
 0x4ce   : > { %4850 = vmatprep.mubr.msk.bf16.mxu1 %vm8698_vm5, %v7899_v0 }
 0x4d5   : > { %4851 = vmatmul.mubr.msk.bf16.gmra.mrb[16].mxu1 %vm8699_vm15, %v7928_v55 }
 0x4d6   : > { %4854 = vmatprep.mubr.msk.bf16.mxu1 %vm8700_vm10, %v7925_v10 }
 0x4dd   : > { %4855 = vmatmul.mubr.msk.bf16.gmra.mrb[20].mxu1 %vm8701_vm11, %v3450_v36 }
 0x4de   : > { %4858 = vmatprep.mubr.msk.bf16.mxu1 %vm8702_vm7, %v3451_v29 }
 0x4e5   : > { %4859 = vmatmul.mubr.msk.bf16.gmra.mrb[24].mxu1 %vm8703_vm12, %v3452_v46 }
 0x4e6   : > { %4862 = vmatprep.mubr.msk.bf16.mxu1 %vm8704_vm13, %v3456_v2 }
 0x4ed   : > { %4863 = vmatmul.mubr.msk.bf16.gmra.mrb[28].mxu1 %vm8705_vm14, %v3873_v52 }
 0x588   : > { %v4836_v16 = vpop.f32.mrb[0].mxu1 }
 0x589   : > { %v3972_v32 = vpop.f32.mrb[1].mxu1  ;;  %v4140_v0 = vadd.f32 %v4836_v16, %v8021_v49 }
 0x58a   : > { %v4138_v6 = vadd.f32 %v8021_v49, %v3972_v32  ;;  %v4837_v13 = vpop.f32.mrb[2].mxu1 }
 0x58b   : > { %v3975_v19 = vpop.f32.mrb[3].mxu1  ;;  %v4204_v34 = vmul.f32 0.2, %v4140_v0  ;;  %v4141_v3 = vadd.f32 %v4837_v13, %v8021_v49  ;;  %vm4172_vm3 = vcmp.gt.f32.partialorder %v4140_v0, 0.0 }
 0x58c   : > { %v4202_v63 = vmul.f32 0.2, %v4138_v6  ;;  %v4139_v33 = vadd.f32 %v8021_v49, %v3975_v19  ;;  %vm4170_vm2 = vcmp.gt.f32.partialorder %v4138_v6, 0.0 }
 0x58d   : > { %v4205_v61 = vmul.f32 0.2, %v4141_v3  ;;  %v4236_v26 = vsel %vm4172_vm3, %v4140_v0, %v4204_v34  ;;  %vm4173_vm4 = vcmp.gt.f32.partialorder %v4141_v3, 0.0 }
 0x58e   : > { %v4203_v31 = vmul.f32 0.2, %v4139_v33  ;;  %v4234_v38 = vsel %vm4170_vm2, %v4138_v6, %v4202_v63  ;;  %vm4171_vm6 = vcmp.gt.f32.partialorder %v4139_v33, 0.0 }
 0x58f   : > { %4266 = vxpose.xlu0.b32.start [1/16] (narrow) %v4234_v38, 8  ;;  %v4237_v56 = vsel %vm4173_vm4, %v4141_v3, %v4205_v61 }
 0x590   : > { %v4840_v15 = vpop.f32.mrb[4].mxu1  ;;  %v4235_v18 = vsel %vm4171_vm6, %v4139_v33, %v4203_v31 }
 0x591   : > { %v3988_v8 = vpop.f32.mrb[5].mxu1  ;;  %v4144_v20 = vadd.f32 %v4840_v15, %v8021_v49 }
 0x592   : > { %v4841_v30 = vpop.f32.mrb[6].mxu1  ;;  %v4142_v57 = vadd.f32 %v8021_v49, %v3988_v8 }
 0x593   : > { %4267 = vxpose.xlu0.b32.cont [2/16] (narrow) %v4235_v18, 8  ;;  %v3991_v47 = vpop.f32.mrb[7].mxu1  ;;  %v4208_v55 = vmul.f32 0.2, %v4144_v20  ;;  %v4145_v17 = vadd.f32 %v4841_v30, %v8021_v49  ;;  %vm4176_vm9 = vcmp.gt.f32.partialorder %v4144_v20, 0.0 }
 0x594   : > { %v4206_v1 = vmul.f32 0.2, %v4142_v57  ;;  %v4143_v35 = vadd.f32 %v8021_v49, %v3991_v47  ;;  %vm4174_vm1 = vcmp.gt.f32.partialorder %v4142_v57, 0.0 }
 0x595   : > { %v4209_v62 = vmul.f32 0.2, %v4145_v17  ;;  %v4240_v43 = vsel %vm4176_vm9, %v4144_v20, %v4208_v55  ;;  %vm4177_vm0 = vcmp.gt.f32.partialorder %v4145_v17, 0.0 }
 0x596   : > { %v4207_v54 = vmul.f32 0.2, %v4143_v35  ;;  %v4238_v10 = vsel %vm4174_vm1, %v4142_v57, %v4206_v1  ;;  %vm4175_vm8 = vcmp.gt.f32.partialorder %v4143_v35, 0.0 }
 0x597   : > { %4268 = vxpose.xlu0.b32.cont [3/16] (narrow) %v4236_v26, 8  ;;  %v4241_v48 = vsel %vm4177_vm0, %v4145_v17, %v4209_v62 }
 0x598   : > { %v4844_v24 = vpop.f32.mrb[8].mxu1  ;;  %v4239_v39 = vsel %vm4175_vm8, %v4143_v35, %v4207_v54 }
 0x599   : > { %v4004_v5 = vpop.f32.mrb[9].mxu1  ;;  %v4148_v22 = vadd.f32 %v4844_v24, %v8021_v49 }
 0x59a   : > { %v4845_v60 = vpop.f32.mrb[10].mxu1  ;;  %v4146_v23 = vadd.f32 %v8021_v49, %v4004_v5 }
 0x59b   : > { %4269 = vxpose.xlu0.b32.cont [4/16] (narrow) %v4237_v56, 8  ;;  %v4007_v21 = vpop.f32.mrb[11].mxu1  ;;  %v4212_v2 = vmul.f32 0.2, %v4148_v22  ;;  %v4149_v46 = vadd.f32 %v4845_v60, %v8021_v49  ;;  %vm4180_vm7 = vcmp.gt.f32.partialorder %v4148_v22, 0.0 }
 0x59c   : > { %v4147_v27 = vadd.f32 %v8021_v49, %v4007_v21  ;;  %v4210_v41 = vmul.f32 0.2, %v4146_v23  ;;  %vm4178_vm5 = vcmp.gt.f32.partialorder %v4146_v23, 0.0 }
 0x59d   : > { %vm4181_vm13 = vcmp.gt.f32.partialorder %v4149_v46, 0.0  ;;  %v4213_v13 = vmul.f32 0.2, %v4149_v46  ;;  %v4244_v0 = vsel %vm4180_vm7, %v4148_v22, %v4212_v2 }
 0x59e   : > { %v4211_v40 = vmul.f32 0.2, %v4147_v27  ;;  %v4242_v51 = vsel %vm4178_vm5, %v4146_v23, %v4210_v41  ;;  %vm4179_vm10 = vcmp.gt.f32.partialorder %v4147_v27, 0.0 }
 0x59f   : > { %4270 = vxpose.xlu0.b32.cont [5/16] (narrow) %v4238_v10, 8  ;;  %v4245_v30 = vsel %vm4181_vm13, %v4149_v46, %v4213_v13 }
 0x5a0   : > { %v8030_v50 = vpop.f32.mrb[12].mxu1  ;;  %v4243_v16 = vsel %vm4179_vm10, %v4147_v27, %v4211_v40 }
 0x5a1   : > { %v4020_v4 = vpop.f32.mrb[13].mxu1  ;;  %v4152_v35 = vadd.f32 %v8030_v50, %v8021_v49 }
 0x5a2   : > { %v8033_v9 = vpop.f32.mrb[14].mxu1  ;;  %v4150_v19 = vadd.f32 %v8021_v49, %v4020_v4 }
 0x5a3   : > { %4271 = vxpose.xlu0.b32.cont [6/16] (narrow) %v4239_v39, 8  ;;  %v4023_v59 = vpop.f32.mrb[15].mxu1  ;;  %v4216_v4 = vmul.f32 0.2, %v4152_v35  ;;  %v4153_v55 = vadd.f32 %v8033_v9, %v8021_v49  ;;  %vm4184_vm1 = vcmp.gt.f32.partialorder %v4152_v35, 0.0 }
 0x5a4   : > { %v4214_v15 = vmul.f32 0.2, %v4150_v19  ;;  %v4151_v8 = vadd.f32 %v8021_v49, %v4023_v59  ;;  %vm4182_vm2 = vcmp.gt.f32.partialorder %v4150_v19, 0.0 }
 0x5a5   : > { %v4217_v41 = vmul.f32 0.2, %v4153_v55  ;;  %vm4185_vm9 = vcmp.gt.f32.partialorder %v4153_v55, 0.0 }
 0x5a6   : > { %vm4183_vm3 = vcmp.gt.f32.partialorder %v4151_v8, 0.0  ;;  %v4215_v60 = vmul.f32 0.2, %v4151_v8  ;;  %v4246_v20 = vsel %vm4182_vm2, %v4150_v19, %v4214_v15 }
 0x5a7   : > { %4272 = vxpose.xlu0.b32.cont [7/16] (narrow) %v4240_v43, 8 }
 0x5a8   : > { %v4852_v42 = vpop.f32.mrb[16].mxu1  ;;  %v4247_v59 = vsel %vm4183_vm3, %v4151_v8, %v4215_v60 }
 0x5a9   : > { %v4036_v14 = vpop.f32.mrb[17].mxu1  ;;  %v4156_v53 = vadd.f32 %v4852_v42, %v8021_v49 }
 0x5aa   : > { %v4154_v37 = vadd.f32 %v8021_v49, %v4036_v14  ;;  %v4853_v12 = vpop.f32.mrb[18].mxu1 }
 0x5ab   : > { %4273 = vxpose.xlu0.b32.cont [8/16] (narrow) %v4241_v48, 8  ;;  %v4039_v25 = vpop.f32.mrb[19].mxu1  ;;  %v4220_v28 = vmul.f32 0.2, %v4156_v53  ;;  %v4157_v58 = vadd.f32 %v4853_v12, %v8021_v49  ;;  %vm4188_vm12 = vcmp.gt.f32.partialorder %v4156_v53, 0.0  ;;  %v4248_v12 = vsel %vm4184_vm1, %v4152_v35, %v4216_v4 }
 0x5ac   : > { %v4155_v7 = vadd.f32 %v8021_v49, %v4039_v25  ;;  %vm4186_vm15 = vcmp.gt.f32.partialorder %v4154_v37, 0.0  ;;  %v4218_v45 = vmul.f32 0.2, %v4154_v37 }
 0x5ad   : > { %v4221_v63 = vmul.f32 0.2, %v4157_v58  ;;  %v4252_v31 = vsel %vm4188_vm12, %v4156_v53, %v4220_v28  ;;  %vm4189_vm14 = vcmp.gt.f32.partialorder %v4157_v58, 0.0 }
 0x5ae   : > { %v4219_v11 = vmul.f32 0.2, %v4155_v7  ;;  %v4250_v29 = vsel %vm4186_vm15, %v4154_v37, %v4218_v45  ;;  %vm4187_vm11 = vcmp.gt.f32.partialorder %v4155_v7, 0.0 }
 0x5af   : > { %4274 = vxpose.xlu0.b32.cont [9/16] (narrow) %v4242_v51, 8  ;;  %4298 = vxpose.xlu1.b32.start [1/16] (narrow) %v4250_v29, 8  ;;  %v4253_v26 = vsel %vm4189_vm14, %v4157_v58, %v4221_v63 }
 0x5b0   : > { %v4856_v36 = vpop.f32.mrb[20].mxu1  ;;  %v4251_v32 = vsel %vm4187_vm11, %v4155_v7, %v4219_v11  ;;  %v4249_v7 = vsel %vm4185_vm9, %v4153_v55, %v4217_v41 }
 0x5b1   : > { %v4052_v44 = vpop.f32.mrb[21].mxu1  ;;  %v4160_v56 = vadd.f32 %v4856_v36, %v8021_v49 }
 0x5b2   : > { %v4857_v52 = vpop.f32.mrb[22].mxu1  ;;  %v4158_v33 = vadd.f32 %v8021_v49, %v4052_v44 }
 0x5b3   : > { %4275 = vxpose.xlu0.b32.cont [10/16] (narrow) %v4243_v16, 8  ;;  %4299 = vxpose.xlu1.b32.cont [2/16] (narrow) %v4251_v32, 8  ;;  %v4055_v6 = vpop.f32.mrb[23].mxu1  ;;  %v4224_v50 = vmul.f32 0.2, %v4160_v56  ;;  %v4161_v62 = vadd.f32 %v4857_v52, %v8021_v49  ;;  %vm4192_vm8 = vcmp.gt.f32.partialorder %v4160_v56, 0.0 }
 0x5b4   : > { %v4222_v18 = vmul.f32 0.2, %v4158_v33  ;;  %v4159_v47 = vadd.f32 %v8021_v49, %v4055_v6  ;;  %vm4190_vm6 = vcmp.gt.f32.partialorder %v4158_v33, 0.0 }
 0x5b5   : > { %v4225_v37 = vmul.f32 0.2, %v4161_v62  ;;  %v4256_v48 = vsel %vm4192_vm8, %v4160_v56, %v4224_v50  ;;  %vm4193_vm0 = vcmp.gt.f32.partialorder %v4161_v62, 0.0 }
 0x5b6   : > { %v4223_v21 = vmul.f32 0.2, %v4159_v47  ;;  %v4254_v54 = vsel %vm4190_vm6, %v4158_v33, %v4222_v18  ;;  %vm4191_vm4 = vcmp.gt.f32.partialorder %v4159_v47, 0.0 }
 0x5b7   : > { %4276 = vxpose.xlu0.b32.cont [11/16] (narrow) %v4244_v0, 8  ;;  %4300 = vxpose.xlu1.b32.cont [3/16] (narrow) %v4252_v31, 8  ;;  %v4257_v45 = vsel %vm4193_vm0, %v4161_v62, %v4225_v37 }
 0x5b8   : > { %v4860_v38 = vpop.f32.mrb[24].mxu1  ;;  %v4255_v42 = vsel %vm4191_vm4, %v4159_v47, %v4223_v21 }
 0x5b9   : > { %v8047_v34 = vadd.f32 %v4860_v38, %v8021_v49  ;;  %v4068_v3 = vpop.f32.mrb[25].mxu1 }
 0x5ba   : > { %v4162_v61 = vadd.f32 %v8021_v49, %v4068_v3  ;;  %v4861_v57 = vpop.f32.mrb[26].mxu1 }
 0x5bb   : > { %v4165_v24 = vadd.f32 %v4861_v57, %v8021_v49  ;;  %4277 = vxpose.xlu0.b32.cont [12/16] (narrow) %v4245_v30, 8  ;;  %4301 = vxpose.xlu1.b32.cont [4/16] (narrow) %v4253_v26, 8  ;;  %v4071_v5 = vpop.f32.mrb[27].mxu1  ;;  %vm4196_vm10 = vcmp.gt.f32.partialorder %v8047_v34, 0.0 }
 0x5bc   : > { %v4163_v1 = vadd.f32 %v8021_v49, %v4071_v5  ;;  %v4226_v25 = vmul.f32 0.2, %v4162_v61  ;;  %vm4194_vm5 = vcmp.gt.f32.partialorder %v4162_v61, 0.0 }
 0x5bd   : > { %v4229_v11 = vmul.f32 0.2, %v4165_v24  ;;  %vm4197_vm11 = vcmp.gt.f32.partialorder %v4165_v24, 0.0 }
 0x5be   : > { %v4227_v22 = vmul.f32 0.2, %v4163_v1  ;;  %v4258_v40 = vsel %vm4194_vm5, %v4162_v61, %v4226_v25  ;;  %vm4195_vm15 = vcmp.gt.f32.partialorder %v4163_v1, 0.0 }
 0x5bf   : > { %4278 = vxpose.xlu0.b32.cont [13/16] (narrow) %v4246_v20, 8  ;;  %4302 = vxpose.xlu1.b32.cont [5/16] (narrow) %v4254_v54, 8  ;;  %v4261_v36 = vsel %vm4197_vm11, %v4165_v24, %v4229_v11 }
 0x5c0   : > { %v4864_v10 = vpop.f32.mrb[28].mxu1  ;;  %v4259_v53 = vsel %vm4195_vm15, %v4163_v1, %v4227_v22 }
 0x5c1   : > { %v4168_v17 = vadd.f32 %v4864_v10, %v8021_v49  ;;  %v4084_v39 = vpop.f32.mrb[29].mxu1 }
 0x5c2   : > { %v4166_v23 = vadd.f32 %v8021_v49, %v4084_v39  ;;  %v4865_v43 = vpop.f32.mrb[30].mxu1 }
 0x5c3   : > { %v4169_v27 = vadd.f32 %v4865_v43, %v8021_v49  ;;  %4279 = vxpose.xlu0.b32.cont [14/16] (narrow) %v4247_v59, 8  ;;  %4303 = vxpose.xlu1.b32.cont [6/16] (narrow) %v4255_v42, 8  ;;  %v4087_v14 = vpop.f32.mrb[31].mxu1  ;;  %v4232_v44 = vmul.f32 0.2, %v4168_v17  ;;  %vm4200_vm13 = vcmp.gt.f32.partialorder %v4168_v17, 0.0 }
 0x5c4   : > { %v4167_v9 = vadd.f32 %v8021_v49, %v4087_v14  ;;  %v4228_v49 = vmul.f32 0.2, %v8047_v34  ;;  %v4230_v29 = vmul.f32 0.2, %v4166_v23  ;;  %vm4198_vm7 = vcmp.gt.f32.partialorder %v4166_v23, 0.0 }
 0x5c5   : > { %v4233_v58 = vmul.f32 0.2, %v4169_v27  ;;  %v4264_v52 = vsel %vm4200_vm13, %v4168_v17, %v4232_v44  ;;  %vm4201_vm14 = vcmp.gt.f32.partialorder %v4169_v27, 0.0 }
 0x5c6   : > { %v4260_v51 = vsel %vm4196_vm10, %v8047_v34, %v4228_v49  ;;  %v4231_v2 = vmul.f32 0.2, %v4167_v9  ;;  %v4262_v46 = vsel %vm4198_vm7, %v4166_v23, %v4230_v29  ;;  %vm4199_vm12 = vcmp.gt.f32.partialorder %v4167_v9, 0.0 }
 0x5c7   : > { %4280 = vxpose.xlu0.b32.cont [15/16] (narrow) %v4248_v12, 8  ;;  %4304 = vxpose.xlu1.b32.cont [7/16] (narrow) %v4256_v48, 8  ;;  %v4265_v16 = vsel %vm4201_vm14, %v4169_v27, %v4233_v58 }
 0x5c8   : > { %v4263_v28 = vsel %vm4199_vm12, %v4167_v9, %v4231_v2 }
 0x5cb   : > { %4281 = vxpose.xlu0.b32.end [16/16] (narrow) %v4249_v7, 8  ;;  %4305 = vxpose.xlu1.b32.cont [8/16] (narrow) %v4257_v45, 8 }
 0x5cf   : > { %4306 = vxpose.xlu1.b32.cont [9/16] (narrow) %v4258_v40, 8 }
 0x5d3   : > { %4307 = vxpose.xlu1.b32.cont [10/16] (narrow) %v4259_v53, 8 }
 0x5d7   : > { %4308 = vxpose.xlu1.b32.cont [11/16] (narrow) %v4260_v51, 8 }
 0x5db   : > { %4309 = vxpose.xlu1.b32.cont [12/16] (narrow) %v4261_v36, 8 }
 0x5df   : > { %4310 = vxpose.xlu1.b32.cont [13/16] (narrow) %v4262_v46, 8 }
 0x5e3   : > { %4311 = vxpose.xlu1.b32.cont [14/16] (narrow) %v4263_v28, 8 }
 0x5e7   : > { %4312 = vxpose.xlu1.b32.cont [15/16] (narrow) %v4264_v52, 8 }
 0x5eb   : > { %4313 = vxpose.xlu1.b32.end [16/16] (narrow) %v4265_v16, 8 }
 0x60f   : > { %v4282_v32 = vpop.trf.xlu0 }
 0x610   : > { %4330 = vst [vmem:[%s217_s12] sm:$0xff] %v4282_v32 }
 0x62f   : > { %v4314_v6 = vpop.trf.xlu1 }
 0x630   : > { %4331 = vst [vmem:[%s217_s12 + $0x8] sm:$0xff] %v4314_v6 }
 0x631   : > { %5474 = shalt.err (!%p5471_p3)
}
 0x632   : > { %s5475_s26 = scalar_lea.hbm %s8073_s17, 256  ;;  %s5479_s7 = scalar_lea.hbm %s8118_s5, 512 }
 0x633   : > { %p5476_p4 = scmp.ne.s32.totalorder %s8073_s17, %s5475_s26  ;;  %p5480_p9 = scmp.lt.u32.totalorder %s8073_s17, %s8118_s5 }
 0x634   : > { %p5481_p10 = scmp.lt.u32.totalorder %s5479_s7, %s5475_s26  ;;  %p5483_p12 = scmp.lt.u32.totalorder %s5475_s26, %s8073_s17 }
 0x635   : > { %p5477_p7 = pnand %p5476_p4, %p5597_p5 }
 0x636   : > { %p5482_p11 = por %p5481_p10, %p5480_p9 }
 0x637   : > { %p5478_p8 = pneg %p5477_p7 }
 0x638   : > { %p5484_p13 = por %p5483_p12, %p5482_p11 }
 0x63a   : > { %p5485_p0 = pnand %p5484_p13, %p5478_p8 }
 0x63c   : > { %5488 = shalt.err (!%p5485_p0)
}
 0x63d   : > { %5000 = dma.vmem_to_hbm [thread:$0]  (%p5597_p5), %s8068_s13, 256, %s8073_s17, %s4333_s10  }
 0x63e PF: > { %p5006_p1 = scmp.ge.s32.totalorder %s5523_s21, 2  ;;  %s4359_s12 = sand.u32 1, %s5511_s18  }
 0x63f   : > { %s4360_s14 = scalar_lea.sflag [#allocation5], %s4359_s12 }
 0x640   : > { %p5003_p2 = pnand %p5006_p1, %p5601_p6 }
 0x642   : > { %5506 = dma.done.wait (!%p5003_p2), %s4360_s14, 256  }
 0x643   : > { %5508 = vsyncadd (!%p5003_p2), %s4360_s14, 4294967040  ;;  %p15_p3 = scmp.ge.s32.totalorder %s5584_s24, 4   ;;  %s8706_s18 = smov %s5515_s19 }
 0x644   : > { %s8707_s19 = smov %s5519_s20  ;;  %s8708_s20 = smov %s5595_s27 }
 0x645   : > { %s8709_s21 = smov %s5584_s24  ;;  %17 = sbr.rel (!%p15_p3) target bundleno = 3 (0x3), region = 79 }
 0x64c   :  { %4365 = vsyncpa [#allocation5], 1 }
 0x64d   :  { %4367 = vsyncpa [#allocation5 + $0x1], 1 }

</bundles_post_ra>
